<compile_context>
chip_gen: v7x
topology: tpu7x:2x2x1
jax: 0.10.0
libtpu: 0.0.40
codegen_flags: <defaults>
</compile_context>

<pallas_src>
import functools

import jax
import jax.numpy as jnp
from jax.experimental import pallas as pl
from jax.experimental.pallas import tpu as pltpu

K1, OC1 = 3, 6      # conv1: Conv2d(in_dim, 6, 3, stride=1, padding=1)
K2, OC2 = 5, 16     # conv2: Conv2d(6, 16, 5, stride=1, padding=0)


# ---------------------------------------------------------------------------
# Kernel 1: conv1 + ReLU + maxpool + conv2 + ReLU + maxpool (one image / step)
# ---------------------------------------------------------------------------
def _conv_block_kernel(x_ref, mask_ref, w1_ref, b1_ref, s1_ref,
                       w2_ref, b2_ref, s2_ref, o_ref, pool1_ref,
                       *, c_in, h, w):
    hw = h * w
    p1h, p1w = h // 2, w // 2                 # pooled grid after stage 1
    p1 = p1h * p1w

    # ---- conv1 (3x3, pad=1) + ReLU: sum of 9 shifted taps -------------------
    xi = x_ref[0]                             # (c_in, hw + 2*w + 2) f32
    m_lo = mask_ref[0:1, :]                   # kills the lane wrapped from w == -1
    m_hi = mask_ref[1:2, :]                   # kills the lane wrapped from w == W
    acc1 = jnp.zeros((OC1, hw), jnp.float32)
    for i in range(K1):
        for j in range(K1):
            off = i * w + j
            v = xi[:, off:off + hw]           # (c_in, hw) contiguous tap
            if j == 0:
                v = v * m_lo
            elif j == K1 - 1:
                v = v * m_hi
            tap = w1_ref[i * K1 + j]          # (OC1, c_in)
            if c_in == 1:
                acc1 = acc1 + tap * v         # (OC1,1)*(1,hw) broadcast FMA (VPU)
            else:
                acc1 = acc1 + jnp.dot(tap.astype(jnp.bfloat16),
                                      v.astype(jnp.bfloat16),
                                      preferred_element_type=jnp.float32)
    y1 = jnp.maximum(acc1 + b1_ref[...], 0.0)             # (OC1, hw) lane-dense

    # ---- maxpool 2x2: 4-way shift-max + 0/1 gather matmul -------------------
    z1n = s1_ref.shape[0]
    z1 = jnp.maximum(jnp.maximum(y1[:, 0:z1n], y1[:, 1:1 + z1n]),
                     jnp.maximum(y1[:, w:w + z1n], y1[:, w + 1:w + 1 + z1n]))
    pooled1 = jnp.dot(z1, s1_ref[...], preferred_element_type=jnp.float32)

    # Stage-1 result (flat p1h x p1w grid) goes into a zero-padded VMEM scratch
    # so that every conv2 tap is again a plain contiguous slice.
    pool1_ref[...] = jnp.zeros_like(pool1_ref)
    pool1_ref[:, 0:p1] = pooled1

    # ---- conv2 (5x5, valid) + ReLU over the virtual p1h x p1w grid ----------
    acc2 = jnp.zeros((OC2, p1), jnp.float32)
    for i in range(K2):
        for j in range(K2):
            off = i * p1w + j
            v = pool1_ref[:, off:off + p1].astype(jnp.bfloat16)   # (OC1, p1)
            acc2 = acc2 + jnp.dot(w2_ref[i * K2 + j], v,
                                  preferred_element_type=jnp.float32)
    y2 = jnp.maximum(acc2 + b2_ref[...], 0.0)   # only the 10x10 corner is valid

    # ---- maxpool 2x2 of the valid region + flatten-select -------------------
    z2n = s2_ref.shape[0]
    z2 = jnp.maximum(jnp.maximum(y2[:, 0:z2n], y2[:, 1:1 + z2n]),
                     jnp.maximum(y2[:, p1w:p1w + z2n], y2[:, p1w + 1:p1w + 1 + z2n]))
    pooled2 = jnp.dot(z2, s2_ref[...], preferred_element_type=jnp.float32)

    o_ref[0] = pooled2                          # (OC2, 25) -> torch .view order


# ---------------------------------------------------------------------------
# Kernel 2: fc1 -> fc2 -> fc3 fused (no activations, matching the PyTorch spec)
# ---------------------------------------------------------------------------
def _fc_kernel(f_ref, w1_ref, b1_ref, w2_ref, b2_ref, w3_ref, b3_ref, o_ref):
    y = f_ref[...]
    y = jnp.dot(y.astype(jnp.bfloat16), w1_ref[...],
                preferred_element_type=jnp.float32) + b1_ref[...]
    y = jnp.dot(y.astype(jnp.bfloat16), w2_ref[...],
                preferred_element_type=jnp.float32) + b2_ref[...]
    y = jnp.dot(y.astype(jnp.bfloat16), w3_ref[...],
                preferred_element_type=jnp.float32) + b3_ref[...]
    o_ref[...] = y


def _const_spec(shape):
    nd = len(shape)
    return pl.BlockSpec(shape, lambda i, nd=nd: (0,) * nd)


def conv_features(xbuf, packed, *, c_in, h, w):
    b = xbuf.shape[0]
    p1h, p1w = h // 2, w // 2
    p1 = p1h * p1w
    p2 = ((p1h - K2 + 1) // 2) * ((p1w - K2 + 1) // 2)
    pbuf = p1 + (K2 - 1) * (p1w + 1)            # room for the largest conv2 tap shift

    kernel = functools.partial(_conv_block_kernel, c_in=c_in, h=h, w=w)
    return pl.pallas_call(
        kernel,
        out_shape=jax.ShapeDtypeStruct((b, OC2, p2), jnp.float32),
        grid_spec=pltpu.PrefetchScalarGridSpec(
            num_scalar_prefetch=0,
            grid=(b,),
            in_specs=[
                pl.BlockSpec((1, c_in, xbuf.shape[2]), lambda i: (i, 0, 0)),
                _const_spec(packed["edge_masks"].shape),
                _const_spec(packed["w1"].shape),
                _const_spec(packed["b1"].shape),
                _const_spec(packed["s1"].shape),
                _const_spec(packed["w2"].shape),
                _const_spec(packed["b2"].shape),
                _const_spec(packed["s2"].shape),
            ],
            out_specs=pl.BlockSpec((1, OC2, p2), lambda i: (i, 0, 0)),
            scratch_shapes=[pltpu.VMEM((OC1, pbuf), jnp.float32)],
        ),
        compiler_params=pltpu.CompilerParams(dimension_semantics=("parallel",)),
    )(xbuf, packed["edge_masks"], packed["w1"], packed["b1"], packed["s1"],
      packed["w2"], packed["b2"], packed["s2"])


def fc_head(feats, packed, n_class, *, block_m=256):
    b, d = feats.shape
    tm = min(block_m, b)
    return pl.pallas_call(
        _fc_kernel,
        out_shape=jax.ShapeDtypeStruct((b, n_class), jnp.float32),
        grid_spec=pltpu.PrefetchScalarGridSpec(
            num_scalar_prefetch=0,
            grid=(pl.cdiv(b, tm),),
            in_specs=[
                pl.BlockSpec((tm, d), lambda i: (i, 0)),
                _const_spec(packed["fw1"].shape), _const_spec(packed["fb1"].shape),
                _const_spec(packed["fw2"].shape), _const_spec(packed["fb2"].shape),
                _const_spec(packed["fw3"].shape), _const_spec(packed["fb3"].shape),
            ],
            out_specs=pl.BlockSpec((tm, n_class), lambda i: (i, 0)),
        ),
        compiler_params=pltpu.CompilerParams(dimension_semantics=("parallel",)),
    )(feats, packed["fw1"], packed["fb1"], packed["fw2"], packed["fb2"],
      packed["fw3"], packed["fb3"])


# ---------------------------------------------------------------------------
# Parameter init (PyTorch layouts) and one-time repack into kernel layouts
# ---------------------------------------------------------------------------
def init_params(key, in_dim, n_class):
    ks = jax.random.split(key, 10)
    p = {}
    p["conv1_w"] = 0.1 * jax.random.normal(ks[0], (OC1, in_dim, K1, K1), jnp.float32)
    p["conv1_b"] = 0.1 * jax.random.normal(ks[1], (OC1,), jnp.float32)
    p["conv2_w"] = 0.1 * jax.random.normal(ks[2], (OC2, OC1, K2, K2), jnp.float32)
    p["conv2_b"] = 0.1 * jax.random.normal(ks[3], (OC2,), jnp.float32)
    p["fc1_w"] = 0.05 * jax.random.normal(ks[4], (120, 400), jnp.float32)
    p["fc1_b"] = 0.05 * jax.random.normal(ks[5], (120,), jnp.float32)
    p["fc2_w"] = 0.05 * jax.random.normal(ks[6], (84, 120), jnp.float32)
    p["fc2_b"] = 0.05 * jax.random.normal(ks[7], (84,), jnp.float32)
    p["fc3_w"] = 0.05 * jax.random.normal(ks[8], (n_class, 84), jnp.float32)
    p["fc3_b"] = 0.05 * jax.random.normal(ks[9], (n_class,), jnp.float32)
    return p


def _pool_select(grid_w, ph, pw):
    """0/1 gather matrix S: (shift-maxed flat row-major grid) @ S = pooled, flattened."""
    zlen = 2 * (ph - 1) * grid_w + 2 * (pw - 1) + 1
    hp, wp = jnp.meshgrid(jnp.arange(ph), jnp.arange(pw), indexing="ij")
    rows = (2 * hp * grid_w + 2 * wp).reshape(-1)
    cols = (hp * pw + wp).reshape(-1)
    return jnp.zeros((zlen, ph * pw), jnp.float32).at[rows, cols].set(1.0)


def pack_params(params, in_dim, h=28, w=28):
    """One-time repack of PyTorch-layout weights into kernel-friendly layouts."""
    assert h == 28 and w == 28, "fc expects 16*5*5 = 400 features (28x28 input)"
    p1h, p1w = h // 2, w // 2
    p2h, p2w = (p1h - K2 + 1) // 2, (p1w - K2 + 1) // 2
    packed = {}
    # conv taps: (k*k, out_c, in_c); biases as (out_c, 1) columns.
    packed["w1"] = params["conv1_w"].transpose(2, 3, 0, 1).reshape(K1 * K1, OC1, in_dim)
    packed["b1"] = params["conv1_b"].reshape(OC1, 1)
    packed["w2"] = (params["conv2_w"].transpose(2, 3, 0, 1)
                    .reshape(K2 * K2, OC2, OC1).astype(jnp.bfloat16))
    packed["b2"] = params["conv2_b"].reshape(OC2, 1)
    # lane masks killing horizontally wrapped tap reads of the padded conv1.
    col = jnp.arange(h * w) % w
    packed["edge_masks"] = jnp.stack([(col != 0), (col != w - 1)]).astype(jnp.float32)
    # 2x2 max-pool gather matrices (also implement the flatten-select).
    packed["s1"] = _pool_select(w, p1h, p1w)            # (755, 196)
    packed["s2"] = _pool_select(p1w, p2h, p2w)          # (121, 25)
    # fc weights pre-transposed once to (in, out), bf16 for the MXU; biases (1, out).
    packed["fw1"] = params["fc1_w"].T.astype(jnp.bfloat16)
    packed["fb1"] = params["fc1_b"].reshape(1, -1)
    packed["fw2"] = params["fc2_w"].T.astype(jnp.bfloat16)
    packed["fb2"] = params["fc2_b"].reshape(1, -1)
    packed["fw3"] = params["fc3_w"].T.astype(jnp.bfloat16)
    packed["fb3"] = params["fc3_b"].reshape(1, -1)
    return packed


# ---------------------------------------------------------------------------
# Forward pass
# ---------------------------------------------------------------------------
def cnn_forward(packed, x, *, n_class):
    """x: (B, in_dim, 28, 28) NCHW -> (B, n_class)."""
    b, c_in, h, w = x.shape
    # Cheap layout prep on the raw input (no im2col blowup): flatten rows and
    # add one zero row above/below plus one pad slot at each end so every conv1
    # tap becomes a contiguous slice inside the kernel.
    xlen = h * w + 2 * w + 2
    xbuf = jnp.zeros((b, c_in, xlen), jnp.float32)
    xbuf = xbuf.at[:, :, w + 1:w + 1 + h * w].set(x.reshape(b, c_in, h * w))
    feats = conv_features(xbuf, packed, c_in=c_in, h=h, w=w)     # (B, 16, 25)
    feats = feats.reshape(b, -1)          # free reshape; matches torch .view order
    return fc_head(feats, packed, n_class)


def cnn_reference(params, x):
    """Pure-JAX/XLA reference used only for a sanity check in __main__."""
    dn = ("NCHW", "OIHW", "NCHW")
    y = jax.lax.conv_general_dilated(x, params["conv1_w"], (1, 1), ((1, 1), (1, 1)),
                                     dimension_numbers=dn)
    y = jnp.maximum(y + params["conv1_b"][None, :, None, None], 0.0)
    y = y.reshape(*y.shape[:2], y.shape[2] // 2, 2, y.shape[3] // 2, 2).max(axis=(3, 5))
    y = jax.lax.conv_general_dilated(y, params["conv2_w"], (1, 1), ((0, 0), (0, 0)),
                                     dimension_numbers=dn)
    y = jnp.maximum(y + params["conv2_b"][None, :, None, None], 0.0)
    y = y.reshape(*y.shape[:2], y.shape[2] // 2, 2, y.shape[3] // 2, 2).max(axis=(3, 5))
    f = y.reshape(y.shape[0], -1)
    f = f @ params["fc1_w"].T + params["fc1_b"]
    f = f @ params["fc2_w"].T + params["fc2_b"]
    f = f @ params["fc3_w"].T + params["fc3_b"]
    return f


if __name__ == "__main__":
    # TODO(synk): the host-side debug print(x.squeeze(0).size()) in the PyTorch
    # forward() is intentionally omitted (no effect on the computation).
    in_dim, n_class = 1, 10
    B, H, W = 2, 28, 28   # 28x28 input is implied by Linear(400, 120)

    x = jax.random.normal(jax.random.PRNGKey(0), (B, in_dim, H, W), jnp.float32)
    params = init_params(jax.random.PRNGKey(42), in_dim, n_class)
    packed = pack_params(params, in_dim, H, W)

    fwd = jax.jit(functools.partial(cnn_forward, n_class=n_class))
    logits = fwd(packed, x)
    jax.block_until_ready(logits)
    assert logits.shape == (B, n_class), logits.shape

    # Numerical sanity check vs. a plain-XLA reference (loose: bf16 matmuls).
    ref = jax.jit(cnn_reference)(params, x)
    err = float(jnp.max(jnp.abs(logits - ref)))
    scale = float(jnp.max(jnp.abs(ref)))
    assert err <= 5e-2 + 5e-2 * scale, (err, scale)

    print("KERNEL_OK")
</pallas_src>

<mosaic_0001>
module attributes {stable_mosaic.version = 11 : i64} {
  func.func @_fc_kernel(%arg0: i32, %arg1: memref<2x400xf32, #tpu.memory_space<vmem>>, %arg2: memref<400x120xbf16, #tpu.memory_space<vmem>>, %arg3: memref<1x120xf32, #tpu.memory_space<vmem>>, %arg4: memref<120x84xbf16, #tpu.memory_space<vmem>>, %arg5: memref<1x84xf32, #tpu.memory_space<vmem>>, %arg6: memref<84x10xbf16, #tpu.memory_space<vmem>>, %arg7: memref<1x10xf32, #tpu.memory_space<vmem>>, %arg8: memref<2x10xf32, #tpu.memory_space<vmem>>) attributes {dimension_semantics = [#tpu.dimension_semantics<parallel>], iteration_bounds = array<i64: 1>, scalar_prefetch = 0 : i64, scratch_operands = 0 : i64, tpu.core_type = #tpu.core_type<tc>, window_params = [{transform_indices = @transform_0, window_bounds = array<i64: 2, 400>}, {pipeline_mode = #tpu.pipeline_mode<synchronous>, transform_indices = @transform_1, window_bounds = array<i64: 400, 120>}, {pipeline_mode = #tpu.pipeline_mode<synchronous>, transform_indices = @transform_2, window_bounds = array<i64: 1, 120>}, {pipeline_mode = #tpu.pipeline_mode<synchronous>, transform_indices = @transform_3, window_bounds = array<i64: 120, 84>}, {pipeline_mode = #tpu.pipeline_mode<synchronous>, transform_indices = @transform_4, window_bounds = array<i64: 1, 84>}, {pipeline_mode = #tpu.pipeline_mode<synchronous>, transform_indices = @transform_5, window_bounds = array<i64: 84, 10>}, {pipeline_mode = #tpu.pipeline_mode<synchronous>, transform_indices = @transform_6, window_bounds = array<i64: 1, 10>}, {transform_indices = @transform_7, window_bounds = array<i64: 2, 10>}]} {
    %c0 = arith.constant 0 : index
    %c0_0 = arith.constant 0 : index
    %0 = vector.load %arg1[%c0, %c0_0] : memref<2x400xf32, #tpu.memory_space<vmem>>, vector<2x400xf32>
    %1 = arith.truncf %0 : vector<2x400xf32> to vector<2x400xbf16>
    %c0_1 = arith.constant 0 : index
    %c0_2 = arith.constant 0 : index
    %2 = vector.load %arg2[%c0_1, %c0_2] : memref<400x120xbf16, #tpu.memory_space<vmem>>, vector<400x120xbf16>
    %cst = arith.constant dense<0.000000e+00> : vector<2x120xf32>
    %3 = tpu.matmul %1, %2, %cst {dimension_numbers = #tpu.dot_dimension_numbers<[1], [0], [0], [1], [0, 0, 1, 1], [], []>} : vector<2x400xbf16>, vector<400x120xbf16>, vector<2x120xf32> -> vector<2x120xf32>
    %c0_3 = arith.constant 0 : index
    %c0_4 = arith.constant 0 : index
    %4 = vector.load %arg3[%c0_3, %c0_4] : memref<1x120xf32, #tpu.memory_space<vmem>>, vector<1x120xf32>
    %5 = vector.broadcast %4 : vector<1x120xf32> to vector<2x120xf32>
    %6 = arith.addf %3, %5 : vector<2x120xf32>
    %7 = arith.truncf %6 : vector<2x120xf32> to vector<2x120xbf16>
    %c0_5 = arith.constant 0 : index
    %c0_6 = arith.constant 0 : index
    %8 = vector.load %arg4[%c0_5, %c0_6] : memref<120x84xbf16, #tpu.memory_space<vmem>>, vector<120x84xbf16>
    %cst_7 = arith.constant dense<0.000000e+00> : vector<2x84xf32>
    %9 = tpu.matmul %7, %8, %cst_7 {dimension_numbers = #tpu.dot_dimension_numbers<[1], [0], [0], [1], [0, 0, 1, 1], [], []>} : vector<2x120xbf16>, vector<120x84xbf16>, vector<2x84xf32> -> vector<2x84xf32>
    %c0_8 = arith.constant 0 : index
    %c0_9 = arith.constant 0 : index
    %10 = vector.load %arg5[%c0_8, %c0_9] : memref<1x84xf32, #tpu.memory_space<vmem>>, vector<1x84xf32>
    %11 = vector.broadcast %10 : vector<1x84xf32> to vector<2x84xf32>
    %12 = arith.addf %9, %11 : vector<2x84xf32>
    %13 = arith.truncf %12 : vector<2x84xf32> to vector<2x84xbf16>
    %c0_10 = arith.constant 0 : index
    %c0_11 = arith.constant 0 : index
    %14 = vector.load %arg6[%c0_10, %c0_11] : memref<84x10xbf16, #tpu.memory_space<vmem>>, vector<84x10xbf16>
    %cst_12 = arith.constant dense<0.000000e+00> : vector<2x10xf32>
    %15 = tpu.matmul %13, %14, %cst_12 {dimension_numbers = #tpu.dot_dimension_numbers<[1], [0], [0], [1], [0, 0, 1, 1], [], []>} : vector<2x84xbf16>, vector<84x10xbf16>, vector<2x10xf32> -> vector<2x10xf32>
    %c0_13 = arith.constant 0 : index
    %c0_14 = arith.constant 0 : index
    %16 = vector.load %arg7[%c0_13, %c0_14] : memref<1x10xf32, #tpu.memory_space<vmem>>, vector<1x10xf32>
    %17 = vector.broadcast %16 : vector<1x10xf32> to vector<2x10xf32>
    %18 = arith.addf %15, %17 : vector<2x10xf32>
    %c0_15 = arith.constant 0 : index
    %c0_16 = arith.constant 0 : index
    %19 = vector.load %arg8[%c0_15, %c0_16] : memref<2x10xf32, #tpu.memory_space<vmem>>, vector<2x10xf32>
    tpu.vector_store %arg8[%c0_15, %c0_16], %18 {strides = array<i32>} : memref<2x10xf32, #tpu.memory_space<vmem>>, vector<2x10xf32>,
    return
  }
  func.func @transform_0(%arg0: i32) -> (i32, i32) {
    %c0_i32 = arith.constant 0 : i32
    %c0_i32_0 = arith.constant 0 : i32
    return %arg0, %c0_i32 : i32, i32
  }
  func.func @transform_1(%arg0: i32) -> (i32, i32) {
    %c0_i32 = arith.constant 0 : i32
    %c0_i32_0 = arith.constant 0 : i32
    %c0_i32_1 = arith.constant 0 : i32
    return %c0_i32, %c0_i32_0 : i32, i32
  }
  func.func @transform_2(%arg0: i32) -> (i32, i32) {
    %c0_i32 = arith.constant 0 : i32
    %c0_i32_0 = arith.constant 0 : i32
    %c0_i32_1 = arith.constant 0 : i32
    return %c0_i32, %c0_i32_0 : i32, i32
  }
  func.func @transform_3(%arg0: i32) -> (i32, i32) {
    %c0_i32 = arith.constant 0 : i32
    %c0_i32_0 = arith.constant 0 : i32
    %c0_i32_1 = arith.constant 0 : i32
    return %c0_i32, %c0_i32_0 : i32, i32
  }
  func.func @transform_4(%arg0: i32) -> (i32, i32) {
    %c0_i32 = arith.constant 0 : i32
    %c0_i32_0 = arith.constant 0 : i32
    %c0_i32_1 = arith.constant 0 : i32
    return %c0_i32, %c0_i32_0 : i32, i32
  }
  func.func @transform_5(%arg0: i32) -> (i32, i32) {
    %c0_i32 = arith.constant 0 : i32
    %c0_i32_0 = arith.constant 0 : i32
    %c0_i32_1 = arith.constant 0 : i32
    return %c0_i32, %c0_i32_0 : i32, i32
  }
  func.func @transform_6(%arg0: i32) -> (i32, i32) {
    %c0_i32 = arith.constant 0 : i32
    %c0_i32_0 = arith.constant 0 : i32
    %c0_i32_1 = arith.constant 0 : i32
    return %c0_i32, %c0_i32_0 : i32, i32
  }
  func.func @transform_7(%arg0: i32) -> (i32, i32) {
    %c0_i32 = arith.constant 0 : i32
    %c0_i32_0 = arith.constant 0 : i32
    return %arg0, %c0_i32 : i32, i32
  }
}

module attributes {stable_mosaic.version = 11 : i64} {
  func.func @_conv_block_kernel(%arg0: i32, %arg1: memref<1x1x842xf32, #tpu.memory_space<vmem>>, %arg2: memref<2x784xf32, #tpu.memory_space<vmem>>, %arg3: memref<9x6x1xf32, #tpu.memory_space<vmem>>, %arg4: memref<6x1xf32, #tpu.memory_space<vmem>>, %arg5: memref<755x196xf32, #tpu.memory_space<vmem>>, %arg6: memref<25x16x6xbf16, #tpu.memory_space<vmem>>, %arg7: memref<16x1xf32, #tpu.memory_space<vmem>>, %arg8: memref<121x25xf32, #tpu.memory_space<vmem>>, %arg9: memref<1x16x25xf32, #tpu.memory_space<vmem>>, %arg10: memref<6x256xf32, #tpu.memory_space<vmem>>) attributes {dimension_semantics = [#tpu.dimension_semantics<parallel>], iteration_bounds = array<i64: 2>, scalar_prefetch = 0 : i64, scratch_operands = 1 : i64, tpu.core_type = #tpu.core_type<tc>, window_params = [{transform_indices = @transform_0, window_bounds = array<i64: 1, 1, 842>}, {pipeline_mode = #tpu.pipeline_mode<synchronous>, transform_indices = @transform_1, window_bounds = array<i64: 2, 784>}, {pipeline_mode = #tpu.pipeline_mode<synchronous>, transform_indices = @transform_2, window_bounds = array<i64: 9, 6, 1>}, {pipeline_mode = #tpu.pipeline_mode<synchronous>, transform_indices = @transform_3, window_bounds = array<i64: 6, 1>}, {pipeline_mode = #tpu.pipeline_mode<synchronous>, transform_indices = @transform_4, window_bounds = array<i64: 755, 196>}, {pipeline_mode = #tpu.pipeline_mode<synchronous>, transform_indices = @transform_5, window_bounds = array<i64: 25, 16, 6>}, {pipeline_mode = #tpu.pipeline_mode<synchronous>, transform_indices = @transform_6, window_bounds = array<i64: 16, 1>}, {pipeline_mode = #tpu.pipeline_mode<synchronous>, transform_indices = @transform_7, window_bounds = array<i64: 121, 25>}, {transform_indices = @transform_8, window_bounds = array<i64: 1, 16, 25>}]} {
    %c0 = arith.constant 0 : index
    %c0_0 = arith.constant 0 : index
    %c0_1 = arith.constant 0 : index
    %0 = vector.load %arg1[%c0, %c0_0, %c0_1] : memref<1x1x842xf32, #tpu.memory_space<vmem>>, vector<1x1x842xf32>
    %1 = vector.shape_cast %0 : vector<1x1x842xf32> to vector<1x842xf32>
    %c0_2 = arith.constant 0 : index
    %c0_3 = arith.constant 0 : index
    %2 = vector.load %arg2[%c0_2, %c0_3] : memref<2x784xf32, #tpu.memory_space<vmem>>, vector<1x784xf32>
    %c1 = arith.constant 1 : index
    %c0_4 = arith.constant 0 : index
    %3 = vector.load %arg2[%c1, %c0_4] : memref<2x784xf32, #tpu.memory_space<vmem>>, vector<1x784xf32>
    %cst = arith.constant 0.000000e+00 : f32
    %4 = vector.broadcast %cst : f32 to vector<6x784xf32>
    %5 = vector.extract_strided_slice %1 {offsets = [0, 0], sizes = [1, 784], strides = [1, 1]} : vector<1x842xf32> to vector<1x784xf32>
    %6 = arith.mulf %5, %2 : vector<1x784xf32>
    %c0_5 = arith.constant 0 : index
    %c0_6 = arith.constant 0 : index
    %c0_7 = arith.constant 0 : index
    %7 = vector.load %arg3[%c0_5, %c0_6, %c0_7] : memref<9x6x1xf32, #tpu.memory_space<vmem>>, vector<1x6x1xf32>
    %8 = vector.shape_cast %7 : vector<1x6x1xf32> to vector<6x1xf32>
    %9 = vector.broadcast %8 : vector<6x1xf32> to vector<6x784xf32>
    %10 = vector.broadcast %6 : vector<1x784xf32> to vector<6x784xf32>
    %11 = arith.mulf %9, %10 : vector<6x784xf32>
    %12 = arith.addf %4, %11 : vector<6x784xf32>
    %13 = vector.extract_strided_slice %1 {offsets = [0, 1], sizes = [1, 784], strides = [1, 1]} : vector<1x842xf32> to vector<1x784xf32>
    %c1_8 = arith.constant 1 : index
    %c0_9 = arith.constant 0 : index
    %c0_10 = arith.constant 0 : index
    %14 = vector.load %arg3[%c1_8, %c0_9, %c0_10] : memref<9x6x1xf32, #tpu.memory_space<vmem>>, vector<1x6x1xf32>
    %15 = vector.shape_cast %14 : vector<1x6x1xf32> to vector<6x1xf32>
    %16 = vector.broadcast %15 : vector<6x1xf32> to vector<6x784xf32>
    %17 = vector.broadcast %13 : vector<1x784xf32> to vector<6x784xf32>
    %18 = arith.mulf %16, %17 : vector<6x784xf32>
    %19 = arith.addf %12, %18 : vector<6x784xf32>
    %20 = vector.extract_strided_slice %1 {offsets = [0, 2], sizes = [1, 784], strides = [1, 1]} : vector<1x842xf32> to vector<1x784xf32>
    %21 = arith.mulf %20, %3 : vector<1x784xf32>
    %c2 = arith.constant 2 : index
    %c0_11 = arith.constant 0 : index
    %c0_12 = arith.constant 0 : index
    %22 = vector.load %arg3[%c2, %c0_11, %c0_12] : memref<9x6x1xf32, #tpu.memory_space<vmem>>, vector<1x6x1xf32>
    %23 = vector.shape_cast %22 : vector<1x6x1xf32> to vector<6x1xf32>
    %24 = vector.broadcast %23 : vector<6x1xf32> to vector<6x784xf32>
    %25 = vector.broadcast %21 : vector<1x784xf32> to vector<6x784xf32>
    %26 = arith.mulf %24, %25 : vector<6x784xf32>
    %27 = arith.addf %19, %26 : vector<6x784xf32>
    %28 = vector.extract_strided_slice %1 {offsets = [0, 28], sizes = [1, 784], strides = [1, 1]} : vector<1x842xf32> to vector<1x784xf32>
    %29 = arith.mulf %28, %2 : vector<1x784xf32>
    %c3 = arith.constant 3 : index
    %c0_13 = arith.constant 0 : index
    %c0_14 = arith.constant 0 : index
    %30 = vector.load %arg3[%c3, %c0_13, %c0_14] : memref<9x6x1xf32, #tpu.memory_space<vmem>>, vector<1x6x1xf32>
    %31 = vector.shape_cast %30 : vector<1x6x1xf32> to vector<6x1xf32>
    %32 = vector.broadcast %31 : vector<6x1xf32> to vector<6x784xf32>
    %33 = vector.broadcast %29 : vector<1x784xf32> to vector<6x784xf32>
    %34 = arith.mulf %32, %33 : vector<6x784xf32>
    %35 = arith.addf %27, %34 : vector<6x784xf32>
    %36 = vector.extract_strided_slice %1 {offsets = [0, 29], sizes = [1, 784], strides = [1, 1]} : vector<1x842xf32> to vector<1x784xf32>
    %c4 = arith.constant 4 : index
    %c0_15 = arith.constant 0 : index
    %c0_16 = arith.constant 0 : index
    %37 = vector.load %arg3[%c4, %c0_15, %c0_16] : memref<9x6x1xf32, #tpu.memory_space<vmem>>, vector<1x6x1xf32>
    %38 = vector.shape_cast %37 : vector<1x6x1xf32> to vector<6x1xf32>
    %39 = vector.broadcast %38 : vector<6x1xf32> to vector<6x784xf32>
    %40 = vector.broadcast %36 : vector<1x784xf32> to vector<6x784xf32>
    %41 = arith.mulf %39, %40 : vector<6x784xf32>
    %42 = arith.addf %35, %41 : vector<6x784xf32>
    %43 = vector.extract_strided_slice %1 {offsets = [0, 30], sizes = [1, 784], strides = [1, 1]} : vector<1x842xf32> to vector<1x784xf32>
    %44 = arith.mulf %43, %3 : vector<1x784xf32>
    %c5 = arith.constant 5 : index
    %c0_17 = arith.constant 0 : index
    %c0_18 = arith.constant 0 : index
    %45 = vector.load %arg3[%c5, %c0_17, %c0_18] : memref<9x6x1xf32, #tpu.memory_space<vmem>>, vector<1x6x1xf32>
    %46 = vector.shape_cast %45 : vector<1x6x1xf32> to vector<6x1xf32>
    %47 = vector.broadcast %46 : vector<6x1xf32> to vector<6x784xf32>
    %48 = vector.broadcast %44 : vector<1x784xf32> to vector<6x784xf32>
    %49 = arith.mulf %47, %48 : vector<6x784xf32>
    %50 = arith.addf %42, %49 : vector<6x784xf32>
    %51 = vector.extract_strided_slice %1 {offsets = [0, 56], sizes = [1, 784], strides = [1, 1]} : vector<1x842xf32> to vector<1x784xf32>
    %52 = arith.mulf %51, %2 : vector<1x784xf32>
    %c6 = arith.constant 6 : index
    %c0_19 = arith.constant 0 : index
    %c0_20 = arith.constant 0 : index
    %53 = vector.load %arg3[%c6, %c0_19, %c0_20] : memref<9x6x1xf32, #tpu.memory_space<vmem>>, vector<1x6x1xf32>
    %54 = vector.shape_cast %53 : vector<1x6x1xf32> to vector<6x1xf32>
    %55 = vector.broadcast %54 : vector<6x1xf32> to vector<6x784xf32>
    %56 = vector.broadcast %52 : vector<1x784xf32> to vector<6x784xf32>
    %57 = arith.mulf %55, %56 : vector<6x784xf32>
    %58 = arith.addf %50, %57 : vector<6x784xf32>
    %59 = vector.extract_strided_slice %1 {offsets = [0, 57], sizes = [1, 784], strides = [1, 1]} : vector<1x842xf32> to vector<1x784xf32>
    %c7 = arith.constant 7 : index
    %c0_21 = arith.constant 0 : index
    %c0_22 = arith.constant 0 : index
    %60 = vector.load %arg3[%c7, %c0_21, %c0_22] : memref<9x6x1xf32, #tpu.memory_space<vmem>>, vector<1x6x1xf32>
    %61 = vector.shape_cast %60 : vector<1x6x1xf32> to vector<6x1xf32>
    %62 = vector.broadcast %61 : vector<6x1xf32> to vector<6x784xf32>
    %63 = vector.broadcast %59 : vector<1x784xf32> to vector<6x784xf32>
    %64 = arith.mulf %62, %63 : vector<6x784xf32>
    %65 = arith.addf %58, %64 : vector<6x784xf32>
    %66 = vector.extract_strided_slice %1 {offsets = [0, 58], sizes = [1, 784], strides = [1, 1]} : vector<1x842xf32> to vector<1x784xf32>
    %67 = arith.mulf %66, %3 : vector<1x784xf32>
    %c8 = arith.constant 8 : index
    %c0_23 = arith.constant 0 : index
    %c0_24 = arith.constant 0 : index
    %68 = vector.load %arg3[%c8, %c0_23, %c0_24] : memref<9x6x1xf32, #tpu.memory_space<vmem>>, vector<1x6x1xf32>
    %69 = vector.shape_cast %68 : vector<1x6x1xf32> to vector<6x1xf32>
    %70 = vector.broadcast %69 : vector<6x1xf32> to vector<6x784xf32>
    %71 = vector.broadcast %67 : vector<1x784xf32> to vector<6x784xf32>
    %72 = arith.mulf %70, %71 : vector<6x784xf32>
    %73 = arith.addf %65, %72 : vector<6x784xf32>
    %c0_25 = arith.constant 0 : index
    %c0_26 = arith.constant 0 : index
    %74 = vector.load %arg4[%c0_25, %c0_26] : memref<6x1xf32, #tpu.memory_space<vmem>>, vector<6x1xf32>
    %75 = vector.broadcast %74 : vector<6x1xf32> to vector<6x784xf32>
    %76 = arith.addf %73, %75 : vector<6x784xf32>
    %cst_27 = arith.constant 0.000000e+00 : f32
    %77 = vector.broadcast %cst_27 : f32 to vector<6x784xf32>
    %78 = arith.maximumf %76, %77 : vector<6x784xf32>
    %79 = vector.extract_strided_slice %78 {offsets = [0, 0], sizes = [6, 755], strides = [1, 1]} : vector<6x784xf32> to vector<6x755xf32>
    %80 = vector.extract_strided_slice %78 {offsets = [0, 1], sizes = [6, 755], strides = [1, 1]} : vector<6x784xf32> to vector<6x755xf32>
    %81 = arith.maximumf %79, %80 : vector<6x755xf32>
    %82 = vector.extract_strided_slice %78 {offsets = [0, 28], sizes = [6, 755], strides = [1, 1]} : vector<6x784xf32> to vector<6x755xf32>
    %83 = vector.extract_strided_slice %78 {offsets = [0, 29], sizes = [6, 755], strides = [1, 1]} : vector<6x784xf32> to vector<6x755xf32>
    %84 = arith.maximumf %82, %83 : vector<6x755xf32>
    %85 = arith.maximumf %81, %84 : vector<6x755xf32>
    %c0_28 = arith.constant 0 : index
    %c0_29 = arith.constant 0 : index
    %86 = vector.load %arg5[%c0_28, %c0_29] : memref<755x196xf32, #tpu.memory_space<vmem>>, vector<755x196xf32>
    %cst_30 = arith.constant dense<0.000000e+00> : vector<6x196xf32>
    %87 = tpu.matmul %85, %86, %cst_30 {dimension_numbers = #tpu.dot_dimension_numbers<[1], [0], [0], [1], [0, 0, 1, 1], [], []>} : vector<6x755xf32>, vector<755x196xf32>, vector<6x196xf32> -> vector<6x196xf32>
    %cst_31 = arith.constant 0.000000e+00 : f32
    %88 = vector.broadcast %cst_31 : f32 to vector<6x256xf32>
    %c0_32 = arith.constant 0 : index
    %c0_33 = arith.constant 0 : index
    %89 = vector.load %arg10[%c0_32, %c0_33] : memref<6x256xf32, #tpu.memory_space<vmem>>, vector<6x256xf32>
    tpu.vector_store %arg10[%c0_32, %c0_33], %88 {strides = array<i32>} : memref<6x256xf32, #tpu.memory_space<vmem>>, vector<6x256xf32>,
    %c0_34 = arith.constant 0 : index
    %c0_35 = arith.constant 0 : index
    %90 = vector.load %arg10[%c0_34, %c0_35] : memref<6x256xf32, #tpu.memory_space<vmem>>, vector<6x196xf32>
    tpu.vector_store %arg10[%c0_34, %c0_35], %87 {strides = array<i32>} : memref<6x256xf32, #tpu.memory_space<vmem>>, vector<6x196xf32>,
    %cst_36 = arith.constant 0.000000e+00 : f32
    %91 = vector.broadcast %cst_36 : f32 to vector<16x196xf32>
    %c0_37 = arith.constant 0 : index
    %c0_38 = arith.constant 0 : index
    %92 = vector.load %arg10[%c0_37, %c0_38] : memref<6x256xf32, #tpu.memory_space<vmem>>, vector<6x196xf32>
    %93 = arith.truncf %92 : vector<6x196xf32> to vector<6x196xbf16>
    %c0_39 = arith.constant 0 : index
    %c0_40 = arith.constant 0 : index
    %c0_41 = arith.constant 0 : index
    %94 = vector.load %arg6[%c0_39, %c0_40, %c0_41] : memref<25x16x6xbf16, #tpu.memory_space<vmem>>, vector<1x16x6xbf16>
    %95 = vector.shape_cast %94 : vector<1x16x6xbf16> to vector<16x6xbf16>
    %cst_42 = arith.constant dense<0.000000e+00> : vector<16x196xf32>
    %96 = tpu.matmul %95, %93, %cst_42 {dimension_numbers = #tpu.dot_dimension_numbers<[1], [0], [0], [1], [0, 0, 1, 1], [], []>} : vector<16x6xbf16>, vector<6x196xbf16>, vector<16x196xf32> -> vector<16x196xf32>
    %97 = arith.addf %91, %96 : vector<16x196xf32>
    %c0_43 = arith.constant 0 : index
    %c1_44 = arith.constant 1 : index
    %98 = vector.load %arg10[%c0_43, %c1_44] : memref<6x256xf32, #tpu.memory_space<vmem>>, vector<6x196xf32>
    %99 = arith.truncf %98 : vector<6x196xf32> to vector<6x196xbf16>
    %c1_45 = arith.constant 1 : index
    %c0_46 = arith.constant 0 : index
    %c0_47 = arith.constant 0 : index
    %100 = vector.load %arg6[%c1_45, %c0_46, %c0_47] : memref<25x16x6xbf16, #tpu.memory_space<vmem>>, vector<1x16x6xbf16>
    %101 = vector.shape_cast %100 : vector<1x16x6xbf16> to vector<16x6xbf16>
    %cst_48 = arith.constant dense<0.000000e+00> : vector<16x196xf32>
    %102 = tpu.matmul %101, %99, %cst_48 {dimension_numbers = #tpu.dot_dimension_numbers<[1], [0], [0], [1], [0, 0, 1, 1], [], []>} : vector<16x6xbf16>, vector<6x196xbf16>, vector<16x196xf32> -> vector<16x196xf32>
    %103 = arith.addf %97, %102 : vector<16x196xf32>
    %c0_49 = arith.constant 0 : index
    %c2_50 = arith.constant 2 : index
    %104 = vector.load %arg10[%c0_49, %c2_50] : memref<6x256xf32, #tpu.memory_space<vmem>>, vector<6x196xf32>
    %105 = arith.truncf %104 : vector<6x196xf32> to vector<6x196xbf16>
    %c2_51 = arith.constant 2 : index
    %c0_52 = arith.constant 0 : index
    %c0_53 = arith.constant 0 : index
    %106 = vector.load %arg6[%c2_51, %c0_52, %c0_53] : memref<25x16x6xbf16, #tpu.memory_space<vmem>>, vector<1x16x6xbf16>
    %107 = vector.shape_cast %106 : vector<1x16x6xbf16> to vector<16x6xbf16>
    %cst_54 = arith.constant dense<0.000000e+00> : vector<16x196xf32>
    %108 = tpu.matmul %107, %105, %cst_54 {dimension_numbers = #tpu.dot_dimension_numbers<[1], [0], [0], [1], [0, 0, 1, 1], [], []>} : vector<16x6xbf16>, vector<6x196xbf16>, vector<16x196xf32> -> vector<16x196xf32>
    %109 = arith.addf %103, %108 : vector<16x196xf32>
    %c0_55 = arith.constant 0 : index
    %c3_56 = arith.constant 3 : index
    %110 = vector.load %arg10[%c0_55, %c3_56] : memref<6x256xf32, #tpu.memory_space<vmem>>, vector<6x196xf32>
    %111 = arith.truncf %110 : vector<6x196xf32> to vector<6x196xbf16>
    %c3_57 = arith.constant 3 : index
    %c0_58 = arith.constant 0 : index
    %c0_59 = arith.constant 0 : index
    %112 = vector.load %arg6[%c3_57, %c0_58, %c0_59] : memref<25x16x6xbf16, #tpu.memory_space<vmem>>, vector<1x16x6xbf16>
    %113 = vector.shape_cast %112 : vector<1x16x6xbf16> to vector<16x6xbf16>
    %cst_60 = arith.constant dense<0.000000e+00> : vector<16x196xf32>
    %114 = tpu.matmul %113, %111, %cst_60 {dimension_numbers = #tpu.dot_dimension_numbers<[1], [0], [0], [1], [0, 0, 1, 1], [], []>} : vector<16x6xbf16>, vector<6x196xbf16>, vector<16x196xf32> -> vector<16x196xf32>
    %115 = arith.addf %109, %114 : vector<16x196xf32>
    %c0_61 = arith.constant 0 : index
    %c4_62 = arith.constant 4 : index
    %116 = vector.load %arg10[%c0_61, %c4_62] : memref<6x256xf32, #tpu.memory_space<vmem>>, vector<6x196xf32>
    %117 = arith.truncf %116 : vector<6x196xf32> to vector<6x196xbf16>
    %c4_63 = arith.constant 4 : index
    %c0_64 = arith.constant 0 : index
    %c0_65 = arith.constant 0 : index
    %118 = vector.load %arg6[%c4_63, %c0_64, %c0_65] : memref<25x16x6xbf16, #tpu.memory_space<vmem>>, vector<1x16x6xbf16>
    %119 = vector.shape_cast %118 : vector<1x16x6xbf16> to vector<16x6xbf16>
    %cst_66 = arith.constant dense<0.000000e+00> : vector<16x196xf32>
    %120 = tpu.matmul %119, %117, %cst_66 {dimension_numbers = #tpu.dot_dimension_numbers<[1], [0], [0], [1], [0, 0, 1, 1], [], []>} : vector<16x6xbf16>, vector<6x196xbf16>, vector<16x196xf32> -> vector<16x196xf32>
    %121 = arith.addf %115, %120 : vector<16x196xf32>
    %c0_67 = arith.constant 0 : index
    %c14 = arith.constant 14 : index
    %122 = vector.load %arg10[%c0_67, %c14] : memref<6x256xf32, #tpu.memory_space<vmem>>, vector<6x196xf32>
    %123 = arith.truncf %122 : vector<6x196xf32> to vector<6x196xbf16>
    %c5_68 = arith.constant 5 : index
    %c0_69 = arith.constant 0 : index
    %c0_70 = arith.constant 0 : index
    %124 = vector.load %arg6[%c5_68, %c0_69, %c0_70] : memref<25x16x6xbf16, #tpu.memory_space<vmem>>, vector<1x16x6xbf16>
    %125 = vector.shape_cast %124 : vector<1x16x6xbf16> to vector<16x6xbf16>
    %cst_71 = arith.constant dense<0.000000e+00> : vector<16x196xf32>
    %126 = tpu.matmul %125, %123, %cst_71 {dimension_numbers = #tpu.dot_dimension_numbers<[1], [0], [0], [1], [0, 0, 1, 1], [], []>} : vector<16x6xbf16>, vector<6x196xbf16>, vector<16x196xf32> -> vector<16x196xf32>
    %127 = arith.addf %121, %126 : vector<16x196xf32>
    %c0_72 = arith.constant 0 : index
    %c15 = arith.constant 15 : index
    %128 = vector.load %arg10[%c0_72, %c15] : memref<6x256xf32, #tpu.memory_space<vmem>>, vector<6x196xf32>
    %129 = arith.truncf %128 : vector<6x196xf32> to vector<6x196xbf16>
    %c6_73 = arith.constant 6 : index
    %c0_74 = arith.constant 0 : index
    %c0_75 = arith.constant 0 : index
    %130 = vector.load %arg6[%c6_73, %c0_74, %c0_75] : memref<25x16x6xbf16, #tpu.memory_space<vmem>>, vector<1x16x6xbf16>
    %131 = vector.shape_cast %130 : vector<1x16x6xbf16> to vector<16x6xbf16>
    %cst_76 = arith.constant dense<0.000000e+00> : vector<16x196xf32>
    %132 = tpu.matmul %131, %129, %cst_76 {dimension_numbers = #tpu.dot_dimension_numbers<[1], [0], [0], [1], [0, 0, 1, 1], [], []>} : vector<16x6xbf16>, vector<6x196xbf16>, vector<16x196xf32> -> vector<16x196xf32>
    %133 = arith.addf %127, %132 : vector<16x196xf32>
    %c0_77 = arith.constant 0 : index
    %c16 = arith.constant 16 : index
    %134 = vector.load %arg10[%c0_77, %c16] : memref<6x256xf32, #tpu.memory_space<vmem>>, vector<6x196xf32>
    %135 = arith.truncf %134 : vector<6x196xf32> to vector<6x196xbf16>
    %c7_78 = arith.constant 7 : index
    %c0_79 = arith.constant 0 : index
    %c0_80 = arith.constant 0 : index
    %136 = vector.load %arg6[%c7_78, %c0_79, %c0_80] : memref<25x16x6xbf16, #tpu.memory_space<vmem>>, vector<1x16x6xbf16>
    %137 = vector.shape_cast %136 : vector<1x16x6xbf16> to vector<16x6xbf16>
    %cst_81 = arith.constant dense<0.000000e+00> : vector<16x196xf32>
    %138 = tpu.matmul %137, %135, %cst_81 {dimension_numbers = #tpu.dot_dimension_numbers<[1], [0], [0], [1], [0, 0, 1, 1], [], []>} : vector<16x6xbf16>, vector<6x196xbf16>, vector<16x196xf32> -> vector<16x196xf32>
    %139 = arith.addf %133, %138 : vector<16x196xf32>
    %c0_82 = arith.constant 0 : index
    %c17 = arith.constant 17 : index
    %140 = vector.load %arg10[%c0_82, %c17] : memref<6x256xf32, #tpu.memory_space<vmem>>, vector<6x196xf32>
    %141 = arith.truncf %140 : vector<6x196xf32> to vector<6x196xbf16>
    %c8_83 = arith.constant 8 : index
    %c0_84 = arith.constant 0 : index
    %c0_85 = arith.constant 0 : index
    %142 = vector.load %arg6[%c8_83, %c0_84, %c0_85] : memref<25x16x6xbf16, #tpu.memory_space<vmem>>, vector<1x16x6xbf16>
    %143 = vector.shape_cast %142 : vector<1x16x6xbf16> to vector<16x6xbf16>
    %cst_86 = arith.constant dense<0.000000e+00> : vector<16x196xf32>
    %144 = tpu.matmul %143, %141, %cst_86 {dimension_numbers = #tpu.dot_dimension_numbers<[1], [0], [0], [1], [0, 0, 1, 1], [], []>} : vector<16x6xbf16>, vector<6x196xbf16>, vector<16x196xf32> -> vector<16x196xf32>
    %145 = arith.addf %139, %144 : vector<16x196xf32>
    %c0_87 = arith.constant 0 : index
    %c18 = arith.constant 18 : index
    %146 = vector.load %arg10[%c0_87, %c18] : memref<6x256xf32, #tpu.memory_space<vmem>>, vector<6x196xf32>
    %147 = arith.truncf %146 : vector<6x196xf32> to vector<6x196xbf16>
    %c9 = arith.constant 9 : index
    %c0_88 = arith.constant 0 : index
    %c0_89 = arith.constant 0 : index
    %148 = vector.load %arg6[%c9, %c0_88, %c0_89] : memref<25x16x6xbf16, #tpu.memory_space<vmem>>, vector<1x16x6xbf16>
    %149 = vector.shape_cast %148 : vector<1x16x6xbf16> to vector<16x6xbf16>
    %cst_90 = arith.constant dense<0.000000e+00> : vector<16x196xf32>
    %150 = tpu.matmul %149, %147, %cst_90 {dimension_numbers = #tpu.dot_dimension_numbers<[1], [0], [0], [1], [0, 0, 1, 1], [], []>} : vector<16x6xbf16>, vector<6x196xbf16>, vector<16x196xf32> -> vector<16x196xf32>
    %151 = arith.addf %145, %150 : vector<16x196xf32>
    %c0_91 = arith.constant 0 : index
    %c28 = arith.constant 28 : index
    %152 = vector.load %arg10[%c0_91, %c28] : memref<6x256xf32, #tpu.memory_space<vmem>>, vector<6x196xf32>
    %153 = arith.truncf %152 : vector<6x196xf32> to vector<6x196xbf16>
    %c10 = arith.constant 10 : index
    %c0_92 = arith.constant 0 : index
    %c0_93 = arith.constant 0 : index
    %154 = vector.load %arg6[%c10, %c0_92, %c0_93] : memref<25x16x6xbf16, #tpu.memory_space<vmem>>, vector<1x16x6xbf16>
    %155 = vector.shape_cast %154 : vector<1x16x6xbf16> to vector<16x6xbf16>
    %cst_94 = arith.constant dense<0.000000e+00> : vector<16x196xf32>
    %156 = tpu.matmul %155, %153, %cst_94 {dimension_numbers = #tpu.dot_dimension_numbers<[1], [0], [0], [1], [0, 0, 1, 1], [], []>} : vector<16x6xbf16>, vector<6x196xbf16>, vector<16x196xf32> -> vector<16x196xf32>
    %157 = arith.addf %151, %156 : vector<16x196xf32>
    %c0_95 = arith.constant 0 : index
    %c29 = arith.constant 29 : index
    %158 = vector.load %arg10[%c0_95, %c29] : memref<6x256xf32, #tpu.memory_space<vmem>>, vector<6x196xf32>
    %159 = arith.truncf %158 : vector<6x196xf32> to vector<6x196xbf16>
    %c11 = arith.constant 11 : index
    %c0_96 = arith.constant 0 : index
    %c0_97 = arith.constant 0 : index
    %160 = vector.load %arg6[%c11, %c0_96, %c0_97] : memref<25x16x6xbf16, #tpu.memory_space<vmem>>, vector<1x16x6xbf16>
    %161 = vector.shape_cast %160 : vector<1x16x6xbf16> to vector<16x6xbf16>
    %cst_98 = arith.constant dense<0.000000e+00> : vector<16x196xf32>
    %162 = tpu.matmul %161, %159, %cst_98 {dimension_numbers = #tpu.dot_dimension_numbers<[1], [0], [0], [1], [0, 0, 1, 1], [], []>} : vector<16x6xbf16>, vector<6x196xbf16>, vector<16x196xf32> -> vector<16x196xf32>
    %163 = arith.addf %157, %162 : vector<16x196xf32>
    %c0_99 = arith.constant 0 : index
    %c30 = arith.constant 30 : index
    %164 = vector.load %arg10[%c0_99, %c30] : memref<6x256xf32, #tpu.memory_space<vmem>>, vector<6x196xf32>
    %165 = arith.truncf %164 : vector<6x196xf32> to vector<6x196xbf16>
    %c12 = arith.constant 12 : index
    %c0_100 = arith.constant 0 : index
    %c0_101 = arith.constant 0 : index
    %166 = vector.load %arg6[%c12, %c0_100, %c0_101] : memref<25x16x6xbf16, #tpu.memory_space<vmem>>, vector<1x16x6xbf16>
    %167 = vector.shape_cast %166 : vector<1x16x6xbf16> to vector<16x6xbf16>
    %cst_102 = arith.constant dense<0.000000e+00> : vector<16x196xf32>
    %168 = tpu.matmul %167, %165, %cst_102 {dimension_numbers = #tpu.dot_dimension_numbers<[1], [0], [0], [1], [0, 0, 1, 1], [], []>} : vector<16x6xbf16>, vector<6x196xbf16>, vector<16x196xf32> -> vector<16x196xf32>
    %169 = arith.addf %163, %168 : vector<16x196xf32>
    %c0_103 = arith.constant 0 : index
    %c31 = arith.constant 31 : index
    %170 = vector.load %arg10[%c0_103, %c31] : memref<6x256xf32, #tpu.memory_space<vmem>>, vector<6x196xf32>
    %171 = arith.truncf %170 : vector<6x196xf32> to vector<6x196xbf16>
    %c13 = arith.constant 13 : index
    %c0_104 = arith.constant 0 : index
    %c0_105 = arith.constant 0 : index
    %172 = vector.load %arg6[%c13, %c0_104, %c0_105] : memref<25x16x6xbf16, #tpu.memory_space<vmem>>, vector<1x16x6xbf16>
    %173 = vector.shape_cast %172 : vector<1x16x6xbf16> to vector<16x6xbf16>
    %cst_106 = arith.constant dense<0.000000e+00> : vector<16x196xf32>
    %174 = tpu.matmul %173, %171, %cst_106 {dimension_numbers = #tpu.dot_dimension_numbers<[1], [0], [0], [1], [0, 0, 1, 1], [], []>} : vector<16x6xbf16>, vector<6x196xbf16>, vector<16x196xf32> -> vector<16x196xf32>
    %175 = arith.addf %169, %174 : vector<16x196xf32>
    %c0_107 = arith.constant 0 : index
    %c32 = arith.constant 32 : index
    %176 = vector.load %arg10[%c0_107, %c32] : memref<6x256xf32, #tpu.memory_space<vmem>>, vector<6x196xf32>
    %177 = arith.truncf %176 : vector<6x196xf32> to vector<6x196xbf16>
    %c14_108 = arith.constant 14 : index
    %c0_109 = arith.constant 0 : index
    %c0_110 = arith.constant 0 : index
    %178 = vector.load %arg6[%c14_108, %c0_109, %c0_110] : memref<25x16x6xbf16, #tpu.memory_space<vmem>>, vector<1x16x6xbf16>
    %179 = vector.shape_cast %178 : vector<1x16x6xbf16> to vector<16x6xbf16>
    %cst_111 = arith.constant dense<0.000000e+00> : vector<16x196xf32>
    %180 = tpu.matmul %179, %177, %cst_111 {dimension_numbers = #tpu.dot_dimension_numbers<[1], [0], [0], [1], [0, 0, 1, 1], [], []>} : vector<16x6xbf16>, vector<6x196xbf16>, vector<16x196xf32> -> vector<16x196xf32>
    %181 = arith.addf %175, %180 : vector<16x196xf32>
    %c0_112 = arith.constant 0 : index
    %c42 = arith.constant 42 : index
    %182 = vector.load %arg10[%c0_112, %c42] : memref<6x256xf32, #tpu.memory_space<vmem>>, vector<6x196xf32>
    %183 = arith.truncf %182 : vector<6x196xf32> to vector<6x196xbf16>
    %c15_113 = arith.constant 15 : index
    %c0_114 = arith.constant 0 : index
    %c0_115 = arith.constant 0 : index
    %184 = vector.load %arg6[%c15_113, %c0_114, %c0_115] : memref<25x16x6xbf16, #tpu.memory_space<vmem>>, vector<1x16x6xbf16>
    %185 = vector.shape_cast %184 : vector<1x16x6xbf16> to vector<16x6xbf16>
    %cst_116 = arith.constant dense<0.000000e+00> : vector<16x196xf32>
    %186 = tpu.matmul %185, %183, %cst_116 {dimension_numbers = #tpu.dot_dimension_numbers<[1], [0], [0], [1], [0, 0, 1, 1], [], []>} : vector<16x6xbf16>, vector<6x196xbf16>, vector<16x196xf32> -> vector<16x196xf32>
    %187 = arith.addf %181, %186 : vector<16x196xf32>
    %c0_117 = arith.constant 0 : index
    %c43 = arith.constant 43 : index
    %188 = vector.load %arg10[%c0_117, %c43] : memref<6x256xf32, #tpu.memory_space<vmem>>, vector<6x196xf32>
    %189 = arith.truncf %188 : vector<6x196xf32> to vector<6x196xbf16>
    %c16_118 = arith.constant 16 : index
    %c0_119 = arith.constant 0 : index
    %c0_120 = arith.constant 0 : index
    %190 = vector.load %arg6[%c16_118, %c0_119, %c0_120] : memref<25x16x6xbf16, #tpu.memory_space<vmem>>, vector<1x16x6xbf16>
    %191 = vector.shape_cast %190 : vector<1x16x6xbf16> to vector<16x6xbf16>
    %cst_121 = arith.constant dense<0.000000e+00> : vector<16x196xf32>
    %192 = tpu.matmul %191, %189, %cst_121 {dimension_numbers = #tpu.dot_dimension_numbers<[1], [0], [0], [1], [0, 0, 1, 1], [], []>} : vector<16x6xbf16>, vector<6x196xbf16>, vector<16x196xf32> -> vector<16x196xf32>
    %193 = arith.addf %187, %192 : vector<16x196xf32>
    %c0_122 = arith.constant 0 : index
    %c44 = arith.constant 44 : index
    %194 = vector.load %arg10[%c0_122, %c44] : memref<6x256xf32, #tpu.memory_space<vmem>>, vector<6x196xf32>
    %195 = arith.truncf %194 : vector<6x196xf32> to vector<6x196xbf16>
    %c17_123 = arith.constant 17 : index
    %c0_124 = arith.constant 0 : index
    %c0_125 = arith.constant 0 : index
    %196 = vector.load %arg6[%c17_123, %c0_124, %c0_125] : memref<25x16x6xbf16, #tpu.memory_space<vmem>>, vector<1x16x6xbf16>
    %197 = vector.shape_cast %196 : vector<1x16x6xbf16> to vector<16x6xbf16>
    %cst_126 = arith.constant dense<0.000000e+00> : vector<16x196xf32>
    %198 = tpu.matmul %197, %195, %cst_126 {dimension_numbers = #tpu.dot_dimension_numbers<[1], [0], [0], [1], [0, 0, 1, 1], [], []>} : vector<16x6xbf16>, vector<6x196xbf16>, vector<16x196xf32> -> vector<16x196xf32>
    %199 = arith.addf %193, %198 : vector<16x196xf32>
    %c0_127 = arith.constant 0 : index
    %c45 = arith.constant 45 : index
    %200 = vector.load %arg10[%c0_127, %c45] : memref<6x256xf32, #tpu.memory_space<vmem>>, vector<6x196xf32>
    %201 = arith.truncf %200 : vector<6x196xf32> to vector<6x196xbf16>
    %c18_128 = arith.constant 18 : index
    %c0_129 = arith.constant 0 : index
    %c0_130 = arith.constant 0 : index
    %202 = vector.load %arg6[%c18_128, %c0_129, %c0_130] : memref<25x16x6xbf16, #tpu.memory_space<vmem>>, vector<1x16x6xbf16>
    %203 = vector.shape_cast %202 : vector<1x16x6xbf16> to vector<16x6xbf16>
    %cst_131 = arith.constant dense<0.000000e+00> : vector<16x196xf32>
    %204 = tpu.matmul %203, %201, %cst_131 {dimension_numbers = #tpu.dot_dimension_numbers<[1], [0], [0], [1], [0, 0, 1, 1], [], []>} : vector<16x6xbf16>, vector<6x196xbf16>, vector<16x196xf32> -> vector<16x196xf32>
    %205 = arith.addf %199, %204 : vector<16x196xf32>
    %c0_132 = arith.constant 0 : index
    %c46 = arith.constant 46 : index
    %206 = vector.load %arg10[%c0_132, %c46] : memref<6x256xf32, #tpu.memory_space<vmem>>, vector<6x196xf32>
    %207 = arith.truncf %206 : vector<6x196xf32> to vector<6x196xbf16>
    %c19 = arith.constant 19 : index
    %c0_133 = arith.constant 0 : index
    %c0_134 = arith.constant 0 : index
    %208 = vector.load %arg6[%c19, %c0_133, %c0_134] : memref<25x16x6xbf16, #tpu.memory_space<vmem>>, vector<1x16x6xbf16>
    %209 = vector.shape_cast %208 : vector<1x16x6xbf16> to vector<16x6xbf16>
    %cst_135 = arith.constant dense<0.000000e+00> : vector<16x196xf32>
    %210 = tpu.matmul %209, %207, %cst_135 {dimension_numbers = #tpu.dot_dimension_numbers<[1], [0], [0], [1], [0, 0, 1, 1], [], []>} : vector<16x6xbf16>, vector<6x196xbf16>, vector<16x196xf32> -> vector<16x196xf32>
    %211 = arith.addf %205, %210 : vector<16x196xf32>
    %c0_136 = arith.constant 0 : index
    %c56 = arith.constant 56 : index
    %212 = vector.load %arg10[%c0_136, %c56] : memref<6x256xf32, #tpu.memory_space<vmem>>, vector<6x196xf32>
    %213 = arith.truncf %212 : vector<6x196xf32> to vector<6x196xbf16>
    %c20 = arith.constant 20 : index
    %c0_137 = arith.constant 0 : index
    %c0_138 = arith.constant 0 : index
    %214 = vector.load %arg6[%c20, %c0_137, %c0_138] : memref<25x16x6xbf16, #tpu.memory_space<vmem>>, vector<1x16x6xbf16>
    %215 = vector.shape_cast %214 : vector<1x16x6xbf16> to vector<16x6xbf16>
    %cst_139 = arith.constant dense<0.000000e+00> : vector<16x196xf32>
    %216 = tpu.matmul %215, %213, %cst_139 {dimension_numbers = #tpu.dot_dimension_numbers<[1], [0], [0], [1], [0, 0, 1, 1], [], []>} : vector<16x6xbf16>, vector<6x196xbf16>, vector<16x196xf32> -> vector<16x196xf32>
    %217 = arith.addf %211, %216 : vector<16x196xf32>
    %c0_140 = arith.constant 0 : index
    %c57 = arith.constant 57 : index
    %218 = vector.load %arg10[%c0_140, %c57] : memref<6x256xf32, #tpu.memory_space<vmem>>, vector<6x196xf32>
    %219 = arith.truncf %218 : vector<6x196xf32> to vector<6x196xbf16>
    %c21 = arith.constant 21 : index
    %c0_141 = arith.constant 0 : index
    %c0_142 = arith.constant 0 : index
    %220 = vector.load %arg6[%c21, %c0_141, %c0_142] : memref<25x16x6xbf16, #tpu.memory_space<vmem>>, vector<1x16x6xbf16>
    %221 = vector.shape_cast %220 : vector<1x16x6xbf16> to vector<16x6xbf16>
    %cst_143 = arith.constant dense<0.000000e+00> : vector<16x196xf32>
    %222 = tpu.matmul %221, %219, %cst_143 {dimension_numbers = #tpu.dot_dimension_numbers<[1], [0], [0], [1], [0, 0, 1, 1], [], []>} : vector<16x6xbf16>, vector<6x196xbf16>, vector<16x196xf32> -> vector<16x196xf32>
    %223 = arith.addf %217, %222 : vector<16x196xf32>
    %c0_144 = arith.constant 0 : index
    %c58 = arith.constant 58 : index
    %224 = vector.load %arg10[%c0_144, %c58] : memref<6x256xf32, #tpu.memory_space<vmem>>, vector<6x196xf32>
    %225 = arith.truncf %224 : vector<6x196xf32> to vector<6x196xbf16>
    %c22 = arith.constant 22 : index
    %c0_145 = arith.constant 0 : index
    %c0_146 = arith.constant 0 : index
    %226 = vector.load %arg6[%c22, %c0_145, %c0_146] : memref<25x16x6xbf16, #tpu.memory_space<vmem>>, vector<1x16x6xbf16>
    %227 = vector.shape_cast %226 : vector<1x16x6xbf16> to vector<16x6xbf16>
    %cst_147 = arith.constant dense<0.000000e+00> : vector<16x196xf32>
    %228 = tpu.matmul %227, %225, %cst_147 {dimension_numbers = #tpu.dot_dimension_numbers<[1], [0], [0], [1], [0, 0, 1, 1], [], []>} : vector<16x6xbf16>, vector<6x196xbf16>, vector<16x196xf32> -> vector<16x196xf32>
    %229 = arith.addf %223, %228 : vector<16x196xf32>
    %c0_148 = arith.constant 0 : index
    %c59 = arith.constant 59 : index
    %230 = vector.load %arg10[%c0_148, %c59] : memref<6x256xf32, #tpu.memory_space<vmem>>, vector<6x196xf32>
    %231 = arith.truncf %230 : vector<6x196xf32> to vector<6x196xbf16>
    %c23 = arith.constant 23 : index
    %c0_149 = arith.constant 0 : index
    %c0_150 = arith.constant 0 : index
    %232 = vector.load %arg6[%c23, %c0_149, %c0_150] : memref<25x16x6xbf16, #tpu.memory_space<vmem>>, vector<1x16x6xbf16>
    %233 = vector.shape_cast %232 : vector<1x16x6xbf16> to vector<16x6xbf16>
    %cst_151 = arith.constant dense<0.000000e+00> : vector<16x196xf32>
    %234 = tpu.matmul %233, %231, %cst_151 {dimension_numbers = #tpu.dot_dimension_numbers<[1], [0], [0], [1], [0, 0, 1, 1], [], []>} : vector<16x6xbf16>, vector<6x196xbf16>, vector<16x196xf32> -> vector<16x196xf32>
    %235 = arith.addf %229, %234 : vector<16x196xf32>
    %c0_152 = arith.constant 0 : index
    %c60 = arith.constant 60 : index
    %236 = vector.load %arg10[%c0_152, %c60] : memref<6x256xf32, #tpu.memory_space<vmem>>, vector<6x196xf32>
    %237 = arith.truncf %236 : vector<6x196xf32> to vector<6x196xbf16>
    %c24 = arith.constant 24 : index
    %c0_153 = arith.constant 0 : index
    %c0_154 = arith.constant 0 : index
    %238 = vector.load %arg6[%c24, %c0_153, %c0_154] : memref<25x16x6xbf16, #tpu.memory_space<vmem>>, vector<1x16x6xbf16>
    %239 = vector.shape_cast %238 : vector<1x16x6xbf16> to vector<16x6xbf16>
    %cst_155 = arith.constant dense<0.000000e+00> : vector<16x196xf32>
    %240 = tpu.matmul %239, %237, %cst_155 {dimension_numbers = #tpu.dot_dimension_numbers<[1], [0], [0], [1], [0, 0, 1, 1], [], []>} : vector<16x6xbf16>, vector<6x196xbf16>, vector<16x196xf32> -> vector<16x196xf32>
    %241 = arith.addf %235, %240 : vector<16x196xf32>
    %c0_156 = arith.constant 0 : index
    %c0_157 = arith.constant 0 : index
    %242 = vector.load %arg7[%c0_156, %c0_157] : memref<16x1xf32, #tpu.memory_space<vmem>>, vector<16x1xf32>
    %243 = vector.broadcast %242 : vector<16x1xf32> to vector<16x196xf32>
    %244 = arith.addf %241, %243 : vector<16x196xf32>
    %cst_158 = arith.constant 0.000000e+00 : f32
    %245 = vector.broadcast %cst_158 : f32 to vector<16x196xf32>
    %246 = arith.maximumf %244, %245 : vector<16x196xf32>
    %247 = vector.extract_strided_slice %246 {offsets = [0, 0], sizes = [16, 121], strides = [1, 1]} : vector<16x196xf32> to vector<16x121xf32>
    %248 = vector.extract_strided_slice %246 {offsets = [0, 1], sizes = [16, 121], strides = [1, 1]} : vector<16x196xf32> to vector<16x121xf32>
    %249 = arith.maximumf %247, %248 : vector<16x121xf32>
    %250 = vector.extract_strided_slice %246 {offsets = [0, 14], sizes = [16, 121], strides = [1, 1]} : vector<16x196xf32> to vector<16x121xf32>
    %251 = vector.extract_strided_slice %246 {offsets = [0, 15], sizes = [16, 121], strides = [1, 1]} : vector<16x196xf32> to vector<16x121xf32>
    %252 = arith.maximumf %250, %251 : vector<16x121xf32>
    %253 = arith.maximumf %249, %252 : vector<16x121xf32>
    %c0_159 = arith.constant 0 : index
    %c0_160 = arith.constant 0 : index
    %254 = vector.load %arg8[%c0_159, %c0_160] : memref<121x25xf32, #tpu.memory_space<vmem>>, vector<121x25xf32>
    %cst_161 = arith.constant dense<0.000000e+00> : vector<16x25xf32>
    %255 = tpu.matmul %253, %254, %cst_161 {dimension_numbers = #tpu.dot_dimension_numbers<[1], [0], [0], [1], [0, 0, 1, 1], [], []>} : vector<16x121xf32>, vector<121x25xf32>, vector<16x25xf32> -> vector<16x25xf32>
    %c0_162 = arith.constant 0 : index
    %c0_163 = arith.constant 0 : index
    %c0_164 = arith.constant 0 : index
    %256 = vector.load %arg9[%c0_162, %c0_163, %c0_164] : memref<1x16x25xf32, #tpu.memory_space<vmem>>, vector<1x16x25xf32>
    %257 = vector.shape_cast %256 : vector<1x16x25xf32> to vector<16x25xf32>
    %258 = vector.shape_cast %255 : vector<16x25xf32> to vector<1x16x25xf32>
    tpu.vector_store %arg9[%c0_162, %c0_163, %c0_164], %258 {strides = array<i32>} : memref<1x16x25xf32, #tpu.memory_space<vmem>>, vector<1x16x25xf32>,
    return
  }
  func.func @transform_0(%arg0: i32) -> (i32, i32, i32) {
    %c0_i32 = arith.constant 0 : i32
    %c0_i32_0 = arith.constant 0 : i32
    %c0_i32_1 = arith.constant 0 : i32
    return %arg0, %c0_i32, %c0_i32_0 : i32, i32, i32
  }
  func.func @transform_1(%arg0: i32) -> (i32, i32) {
    %c0_i32 = arith.constant 0 : i32
    %c0_i32_0 = arith.constant 0 : i32
    %c0_i32_1 = arith.constant 0 : i32
    return %c0_i32, %c0_i32_0 : i32, i32
  }
  func.func @transform_2(%arg0: i32) -> (i32, i32, i32) {
    %c0_i32 = arith.constant 0 : i32
    %c0_i32_0 = arith.constant 0 : i32
    %c0_i32_1 = arith.constant 0 : i32
    %c0_i32_2 = arith.constant 0 : i32
    return %c0_i32, %c0_i32_0, %c0_i32_1 : i32, i32, i32
  }
  func.func @transform_3(%arg0: i32) -> (i32, i32) {
    %c0_i32 = arith.constant 0 : i32
    %c0_i32_0 = arith.constant 0 : i32
    %c0_i32_1 = arith.constant 0 : i32
    return %c0_i32, %c0_i32_0 : i32, i32
  }
  func.func @transform_4(%arg0: i32) -> (i32, i32) {
    %c0_i32 = arith.constant 0 : i32
    %c0_i32_0 = arith.constant 0 : i32
    %c0_i32_1 = arith.constant 0 : i32
    return %c0_i32, %c0_i32_0 : i32, i32
  }
  func.func @transform_5(%arg0: i32) -> (i32, i32, i32) {
    %c0_i32 = arith.constant 0 : i32
    %c0_i32_0 = arith.constant 0 : i32
    %c0_i32_1 = arith.constant 0 : i32
    %c0_i32_2 = arith.constant 0 : i32
    return %c0_i32, %c0_i32_0, %c0_i32_1 : i32, i32, i32
  }
  func.func @transform_6(%arg0: i32) -> (i32, i32) {
    %c0_i32 = arith.constant 0 : i32
    %c0_i32_0 = arith.constant 0 : i32
    %c0_i32_1 = arith.constant 0 : i32
    return %c0_i32, %c0_i32_0 : i32, i32
  }
  func.func @transform_7(%arg0: i32) -> (i32, i32) {
    %c0_i32 = arith.constant 0 : i32
    %c0_i32_0 = arith.constant 0 : i32
    %c0_i32_1 = arith.constant 0 : i32
    return %c0_i32, %c0_i32_0 : i32, i32
  }
  func.func @transform_8(%arg0: i32) -> (i32, i32, i32) {
    %c0_i32 = arith.constant 0 : i32
    %c0_i32_0 = arith.constant 0 : i32
    %c0_i32_1 = arith.constant 0 : i32
    return %arg0, %c0_i32, %c0_i32_0 : i32, i32, i32
  }
}

</mosaic_0001>

<bundles_post_ra>
// kernel: cnn_forward.3
= control target key start
LH: loop header
LB: loop body
LE: loop exit
PB: predicated region body
PF: predicated region fallthrough
CT: control target
= control target key end

     0   :  { %v766_v1 = vmov 0   ;;  %v34_v18 = vlaneseq  ;;  %v767_v26 = vmov 1983009808   ;;  %vm262_vm0 = vcmask 130048   ;;  %s962_s0 = inlined_call_operand.vmem [shape: f32[2,400], index: 0, kind: input, shape index: {}]   ;;  %s963_s1 = inlined_call_operand.vmem [shape: bf16[400,120], index: 1, kind: input, shape index: {}]   ;;  %s964_s2 = inlined_call_operand.vmem [shape: f32[1,120], index: 2, kind: input, shape index: {}]   ;;  %s965_s3 = inlined_call_operand.vmem [shape: bf16[120,84], index: 3, kind: input, shape index: {}]   ;;  %s966_s4 = inlined_call_operand.vmem [shape: f32[1,84], index: 4, kind: input, shape index: {}]   ;;  %s967_s5 = inlined_call_operand.vmem [shape: bf16[84,10], index: 5, kind: input, shape index: {}]   ;;  %s968_s6 = inlined_call_operand.vmem [shape: f32[1,10], index: 6, kind: input, shape index: {}]   ;;  %s969_s7 = inlined_call_operand.hbm [shape: f32[2,10], index: 7, kind: output, shape index: {}]  }
   0x1   :  { %v702_v0 = vld [vmem:[%s963_s1 + $0x40] sm:$0xff]   ;;  %306 = vmatprep.subr.bf16.mxu1 %v766_v1  ;;  %v705_v4 = vld [vmem:[%s963_s1 + $0x48] sm:$0xff]   ;;  %v708_v7 = vld [vmem:[%s963_s1 + $0x50] sm:$0xff]   ;;  %v32_v27 = vunpack.c.l.s4 %v767_v26  ;;  %v768_v38 = vmov 0.0  }
   0x2   :  { %v703_v2 = vld [vmem:[%s963_s1 + $0x80] sm:$0xff]   ;;  %623 = vmatprep.subr.bf16.mxu0 %v702_v0  ;;  %v706_v5 = vld [vmem:[%s963_s1 + $0x88] sm:$0xff]   ;;  %v709_v8 = vld [vmem:[%s963_s1 + $0x90] sm:$0xff]   ;;  %v35_v23 = vshrl.u32 %v34_v18, 7 }
   0x3   :  { %v704_v3 = vld [vmem:[%s963_s1] sm:$0xff]   ;;  %307 = vmatpush1.bf16.msra.mxu1 %v703_v2  ;;  %v707_v6 = vld [vmem:[%s963_s1 + $0x8] sm:$0xff]   ;;  %v710_v9 = vld [vmem:[%s963_s1 + $0x10] sm:$0xff]   ;;  %v33_v30 = vunpack.c.0.s8 %v32_v27 }
   0x4   :  { %624 = vmatpush3.bf16.msra.mxu0 %v704_v3  ;;  %308 = vmatprep.subr.bf16.mxu1 %v766_v1  ;;  %v711_v10 = vld [vmem:[%s963_s1 + $0x58] sm:$0xff]   ;;  %v714_v13 = vld [vmem:[%s963_s1 + $0x60] sm:$0xff]   ;;  %v717_v16 = vld [vmem:[%s963_s1 + $0x68] sm:$0xff]  }
   0x5   :  { %625 = vmatprep.subr.bf16.mxu0 %v705_v4  ;;  %v712_v11 = vld [vmem:[%s963_s1 + $0x98] sm:$0xff]   ;;  %v715_v14 = vld [vmem:[%s963_s1 + $0xa0] sm:$0xff]   ;;  %v718_v17 = vld [vmem:[%s963_s1 + $0xa8] sm:$0xff]   ;;  %v36_v32 = vsub.s32 %v33_v30, %v35_v23 }
   0x6   :  { %v713_v12 = vld [vmem:[%s963_s1 + $0x18] sm:$0xff]   ;;  %v716_v15 = vld [vmem:[%s963_s1 + $0x20] sm:$0xff]   ;;  %v719_v19 = vld [vmem:[%s963_s1 + $0x28] sm:$0xff]  }
   0x7   :  { %309 = vmatpush1.bf16.msra.mxu1 %v706_v5  ;;  %v720_v20 = vld [vmem:[%s963_s1 + $0x70] sm:$0xff]   ;;  %v723_v24 = vld [vmem:[%s963_s1 + $0x78] sm:$0xff]   ;;  %v28_v25 = vld [vmem:[%s962_s0] sm:$0xff] }
   0x8   :  { %626 = vmatpush3.bf16.msra.mxu0 %v707_v6  ;;  %310 = vmatprep.subr.bf16.mxu1 %v766_v1  ;;  %v721_v21 = vld [vmem:[%s963_s1 + $0xb0] sm:$0xff]   ;;  %v724_v28 = vld [vmem:[%s963_s1 + $0xb8] sm:$0xff]   ;;  %v30_v29 = vcombine.high %v28_v25, %v28_v25  ;;  %v37_v33 = vrot.slane %v28_v25, %v36_v32  ;;  %v727_v34 = vld [vmem:[%s963_s1 + $0xc0] sm:$0xff]  }
   0x9   :  { %627 = vmatprep.subr.bf16.mxu0 %v708_v7  ;;  %v722_v22 = vld [vmem:[%s963_s1 + $0x30] sm:$0xff]   ;;  %v725_v31 = vld [vmem:[%s963_s1 + $0x38] sm:$0xff]   ;;  %v728_v39 = vld [vmem:[%s965_s3] sm:$0xff]  }
   0xa   :  { %v44_v35 = vrot.slane %v30_v29, %v36_v32  ;;  %v45_v36 = vcombine.high %v37_v33, %v37_v33  ;;  %v51_v40 = vpack.c.bf16 %v37_v33, %v37_v33 }
   0xb   :  { %311 = vmatpush1.bf16.msra.mxu1 %v709_v8 }
   0xc   :  { %628 = vmatpush3.bf16.msra.mxu0 %v710_v9  ;;  %312 = vmatprep.subr.bf16.mxu1 %v766_v1  ;;  %v46_v37 = vcombine.high %v44_v35, %v44_v35  ;;  %v53_v41 = vpack.c.bf16 %v44_v35, %v44_v35  ;;  %v52_v42 = vpack.c.bf16 %v45_v36, %v45_v36 }
   0xd   :  { %629 = vmatprep.subr.bf16.mxu0 %v711_v10 }
   0xe   :  { %v54_v43 = vpack.c.bf16 %v46_v37, %v46_v37 }
   0xf   :  { %313 = vmatpush1.bf16.msra.mxu1 %v712_v11 }
  0x10   :  { %630 = vmatpush3.bf16.msra.mxu0 %v713_v12  ;;  %314 = vmatprep.subr.bf16.mxu1 %v766_v1 }
  0x11   :  { %631 = vmatprep.subr.bf16.mxu0 %v714_v13 }
  0x13   :  { %315 = vmatpush1.bf16.msra.mxu1 %v715_v14 }
  0x14   :  { %632 = vmatpush3.bf16.msra.mxu0 %v716_v15  ;;  %316 = vmatprep.subr.bf16.mxu1 %v766_v1 }
  0x15   :  { %633 = vmatprep.subr.bf16.mxu0 %v717_v16 }
  0x17   :  { %317 = vmatpush1.bf16.msra.mxu1 %v718_v17 }
  0x18   :  { %634 = vmatpush3.bf16.msra.mxu0 %v719_v19  ;;  %318 = vmatprep.subr.bf16.mxu1 %v766_v1 }
  0x19   :  { %635 = vmatprep.subr.bf16.mxu0 %v720_v20 }
  0x1b   :  { %319 = vmatpush1.bf16.msra.mxu1 %v721_v21 }
  0x1c   :  { %636 = vmatpush3.bf16.msra.mxu0 %v722_v22  ;;  %320 = vmatprep.subr.bf16.mxu1 %v766_v1 }
  0x1d   :  { %637 = vmatprep.subr.bf16.mxu0 %v723_v24 }
  0x1f   :  { %321 = vmatpush1.bf16.msra.mxu1 %v724_v28 }
  0x20   :  { %638 = vmatpush3.bf16.msra.mxu0 %v725_v31  ;;  %322 = vmatprep.subr.bf16.mxu1 %v766_v1 }
  0x21   :  { %661 = vmatprep.subr.bf16.mxu0 %v768_v38 }
  0x23   :  { %323 = vmatpush1.bf16.msra.mxu1 %v727_v34 }
  0x24   :  { %681 = vmatprep.subr.bf16.mxu1 %v768_v38 }
  0x25   :  { %12 = vsyncpa [#allocation3], 0  ;;  %298 = vmatprep.mubr.bf16.mxu0 %v52_v42  ;;  %604 = vmatprep.mubr.msk.bf16.mxu1 %vm262_vm0, %v54_v43  ;;  %v729_v44 = vld [vmem:[%s965_s3 + $0x8] sm:$0xff]   ;;  %v730_v45 = vld [vmem:[%s965_s3 + $0x10] sm:$0xff]   ;;  %vm418_vm1 = vcmask 1043456   ;;  %vm769_vm2 = vmmov 0  }
  0x26   :  { %299 = vmatmul.mubr.bf16.vlgmr.msra.gmra.mrb[0].mxu0 %v51_v40  ;;  %339 = vmatmul.mubr.bf16.vlgmr.msra.gmra.mrb[0].mxu1 %v53_v41  ;;  %v731_v46 = vld [vmem:[%s965_s3 + $0x18] sm:$0xff]   ;;  %v732_v47 = vld [vmem:[%s965_s3 + $0x20] sm:$0xff]   ;;  %v733_v48 = vld [vmem:[%s965_s3 + $0x28] sm:$0xff]   ;;  %vm414_vm3 = vcmask 982016   ;;  %vm518_vm4 = vcmask 1041408   ;;  %vm514_vm5 = vcmask 687104  }
  0x27   :  { %662 = vmatpush3.bf16.msra.mxu0 %v728_v39  ;;  %v734_v49 = vld [vmem:[%s965_s3 + $0x30] sm:$0xff]   ;;  %v735_v50 = vld [vmem:[%s965_s3 + $0x38] ss:$0 sps:$4 sm:$0xff]   ;;  %677 = vmatprep.mubr.msk.bf16.mxu0 %vm769_vm2, %v768_v38  ;;  %v736_v52 = vld [vmem:[%s967_s5] sm:$0xff]   ;;  %vm562_vm6 = vcmask 74752  }
  0x28   :  { %663 = vmatprep.subr.bf16.mxu0 %v768_v38  ;;  %v420_v51 = vsel %vm418_vm1, %v735_v50, 0  ;;  %693 = vmatprep.mubr.msk.bf16.mxu1 %vm769_vm2, %v768_v38  ;;  %v737_v53 = vld [vmem:[%s967_s5 + $0x8] sm:$0xff]   ;;  %v738_v54 = vld [vmem:[%s967_s5 + $0x10] sm:$0xff]   ;;  %v739_v55 = vld [vmem:[%s967_s5 + $0x18] sm:$0xff]  }
  0x29   :  { %682 = vmatpush3.bf16.msra.mxu1 %v736_v52  ;;  %v740_v56 = vld [vmem:[%s967_s5 + $0x20] sm:$0xff]   ;;  %v741_v6 = vld [vmem:[%s967_s5 + $0x28] ss:$0 sps:$4 sm:$0x33]   ;;  %s770_s5 = smov [#allocation2]  }
  0x2a   :  { %683 = vmatprep.subr.bf16.mxu1 %v768_v38  ;;  %v578_v60 = vld [vmem:[%s964_s2] ss:$0 sm:$0xff]  ;;  %v520_v7 = vsel %vm518_vm4, %v741_v6, 0  ;;  %s570_s12 = sshll.u32 %s770_s5, 4  ;;  %s571_s12 = int_to_ptr.vmem [resolvable:$true] %s570_s12 }
  0x2b   :  { %664 = vmatpush3.bf16.msra.mxu0 %v729_v44  ;;  %v605_v8 = vld [vmem:[%s966_s4] ss:$0 sm:$0xff]  ;;  %s742_s4 = scalar_lea.vmem %s571_s12, 32  ;;  %p747_p1 = scmp.lt.s32.totalorder %s571_s12, %s571_s12 }
  0x2c   :  { %665 = vmatprep.subr.bf16.mxu0 %v768_v38  ;;  %v615_v15 = vld [vmem:[%s968_s6] ss:$0 sm:$0xff]  ;;  %p743_p0 = scmp.ne.s32.totalorder %s571_s12, %s742_s4  ;;  %p748_p2 = scmp.lt.s32.totalorder %s742_s4, %s742_s4 }
  0x2d   :  { %684 = vmatpush3.bf16.msra.mxu1 %v737_v53 }
  0x2e   :  { %685 = vmatprep.subr.bf16.mxu1 %v768_v38  ;;  %p749_p3 = por %p748_p2, %p747_p1 }
  0x2f   :  { %666 = vmatpush3.bf16.msra.mxu0 %v730_v45 }
  0x30   :  { %667 = vmatprep.subr.bf16.mxu0 %v768_v38  ;;  %p750_p4 = pnand %p749_p3, %p743_p0 }
  0x31   :  { %686 = vmatpush3.bf16.msra.mxu1 %v738_v54 }
  0x32   :  { %687 = vmatprep.subr.bf16.mxu1 %v768_v38 }
  0x33   :  { %668 = vmatpush3.bf16.msra.mxu0 %v731_v46 }
  0x34   :  { %669 = vmatprep.subr.bf16.mxu0 %v768_v38 }
  0x35   :  { %688 = vmatpush3.bf16.msra.mxu1 %v739_v55 }
  0x36   :  { %689 = vmatprep.subr.bf16.mxu1 %v768_v38 }
  0x37   :  { %670 = vmatpush3.bf16.msra.mxu0 %v732_v47 }
  0x38   :  { %671 = vmatprep.subr.bf16.mxu0 %v768_v38 }
  0x39   :  { %690 = vmatpush3.bf16.msra.mxu1 %v740_v56 }
  0x3a   :  { %691 = vmatprep.subr.bf16.mxu1 %v768_v38 }
  0x3b   :  { %672 = vmatpush3.bf16.msra.mxu0 %v733_v48 }
  0x3c   :  { %673 = vmatprep.subr.bf16.mxu0 %v768_v38 }
  0x3d   :  { %692 = vmatpush3.bf16.msra.mxu1 %v520_v7 }
  0x3f   :  { %674 = vmatpush3.bf16.msra.mxu0 %v734_v49 }
  0x40   :  { %675 = vmatprep.subr.bf16.mxu0 %v768_v38 }
  0x43   :  { %676 = vmatpush3.bf16.msra.mxu0 %v420_v51 }
  0xf9   :  { %v639_v57 = vpop.f32.mrb[0].mxu0  ;;  %v340_v58 = vpop.f32.mrb[0].mxu1 }
  0xfa   :  { %v640_v59 = vpop.f32.mrb[1].mxu0  ;;  %v342_v61 = vpop.f32.mrb[1].mxu1 }
  0xfb   :  { %v641_v62 = vadd.f32 %v640_v59, %v639_v57  ;;  %v642_v63 = vpop.f32.mrb[2].mxu0  ;;  %v343_v0 = vpop.f32.mrb[2].mxu1 }
  0xfc   :  { %v643_v1 = vpop.f32.mrb[3].mxu0  ;;  %v344_v2 = vpop.f32.mrb[3].mxu1 }
  0xfd   :  { %v301_v3 = vadd.f32 %v641_v62, %v578_v60 }
  0xff   :  { %v341_v4 = vadd.f32 %v340_v58, %v301_v3 }
 0x101   :  { %v346_v5 = vpack.c.bf16 %v341_v4, %v341_v4 }
 0x103   :  { %678 = vmatmul.mubr.msk.bf16.vlgmr.msra.gmra.mrb[4].mxu0 %vm414_vm3, %v346_v5 }
 0x1d6   :  { %v456_v9 = vpop.f32.mrb[4].mxu0 }
 0x1d7   :  { %v457_v10 = vadd.f32 %v605_v8, %v456_v9  ;;  %v679_v11 = vpop.f32.mrb[5].mxu0 }
 0x1d8   :  { %v459_v12 = vpop.f32.mrb[6].mxu0 }
 0x1d9   :  { %v462_v13 = vpack.c.bf16 %v457_v10, %v457_v10  ;;  %v680_v14 = vpop.f32.mrb[7].mxu0 }
 0x1db   :  { %694 = vmatmul.mubr.msk.bf16.vlgmr.msra.gmra.mrb[4].mxu1 %vm514_vm5, %v462_v13 }
 0x2ae   :  { %v556_v16 = vpop.f32.mrb[4].mxu1 }
 0x2af   :  { %v557_v17 = vadd.f32 %v615_v15, %v556_v16  ;;  %v695_v18 = vpop.f32.mrb[5].mxu1 }
 0x2b0   :  { %v559_v19 = vpop.f32.mrb[6].mxu1 }
 0x2b1   :  { %v696_v20 = vpop.f32.mrb[7].mxu1  ;;  %563 = vst.msk [vmem:[#allocation2] sm:$0x3] %vm562_vm6, %v557_v17 }
 0x2b2   :  { %753 = shalt.err (!%p750_p4)
}
 0x2b3   :  { %s754_s6 = scalar_lea.hbm %s969_s7, 32 }
 0x2b4   :  { %p755_p5 = scmp.ne.s32.totalorder %s969_s7, %s754_s6  ;;  %p758_p6 = scmp.lt.u32.totalorder %s754_s6, %s969_s7 }
 0x2b6   :  { %p760_p7 = pnand %p758_p6, %p755_p5 }
 0x2b8   :  { %763 = shalt.err (!%p760_p7)
}
 0x2b9   :  { %573 = dma.vmem_to_hbm [thread:$0]  %s571_s12, 32, %s969_s7, [#allocation3]  }
 0x2ba   :  { %764 = dma.done.wait [#allocation3], 32  }
 0x2bb   :  { %765 = vsyncadd [#allocation3], 4294967264 }
 0x2bc   :  { %577 = vsyncpa [#allocation3], 1 }

// kernel: cnn_forward.2
= control target key start
LH: loop header
LB: loop body
LE: loop exit
PB: predicated region body
PF: predicated region fallthrough
CT: control target
= control target key end

     0   :  { %s4250_s27 = smov 0   ;;  %s5771_s0 = inlined_call_operand.vmem [shape: f32[2,1,842], index: 0, kind: input, shape index: {}]   ;;  %s5772_s1 = inlined_call_operand.vmem [shape: f32[2,784], index: 1, kind: input, shape index: {}]   ;;  %s5773_s2 = inlined_call_operand.vmem [shape: f32[9,6,1], index: 2, kind: input, shape index: {}]   ;;  %s5774_s3 = inlined_call_operand.vmem [shape: f32[6,1], index: 3, kind: input, shape index: {}]   ;;  %s5775_s4 = inlined_call_operand.vmem [shape: f32[755,196], index: 4, kind: input, shape index: {}]   ;;  %s5776_s5 = inlined_call_operand.vmem [shape: bf16[25,16,6], index: 5, kind: input, shape index: {}]   ;;  %s5777_s6 = inlined_call_operand.vmem [shape: f32[16,1], index: 6, kind: input, shape index: {}]   ;;  %s5778_s7 = inlined_call_operand.vmem [shape: f32[121,25], index: 7, kind: input, shape index: {}]   ;;  %s5779_s8 = inlined_call_operand.vmem [shape: f32[2,16,25], index: 8, kind: output, shape index: {}]  }
   0x1 LB: > { %s3554_s28 = sadd.s32 4294967295, %s4171_s27   ;;  %p3558_p0 = scmp.ge.s32.totalorder %s4171_s27, 1  ;;  %s4171_s27 = sphi %s4250_s27, %s18_s27  }
   0x2   : > { %p261_p1 = scmp.lt.s32.totalorder %s4171_s27, 3 }
   0x4   : > { %p262_p2 = pnand %p3558_p0, %p261_p1 }
   0x5   : > { %v3563_v0 = vld [vmem:[%s5773_s2 + $0x10] sm:$0x3f] (!%p262_p2)  ;;  %v3562_v1 = vld [vmem:[%s5773_s2 + $0x8] sm:$0x3f] (!%p262_p2)  ;;  %v4173_v2 = vmov (!%p262_p2), 0   ;;  %s4174_s15 = smov (!%p262_p2), 2   ;;  %v316_v13 = vlaneseq (!%p262_p2) }
   0x6   : > { %265 = sbr.rel (%p262_p2) target bundleno = 2072 (0x818), region = 52  ;;  %4119 = vset.pattern.permute.xlu1 (!%p262_p2), %v4173_v2  ;;  %4118 = vset.pattern.permute.xlu0 (!%p262_p2), %v4173_v2  ;;  %v3561_v3 = vld [vmem:[%s5772_s1 + $0x1] ss:$2 sm:$0x7f] (!%p262_p2)  ;;  %s4175_s16 = smov (!%p262_p2), 28   ;;  %vm461_vm0 = vcmask (!%p262_p2), 15360  }
   0x7   : > { %469 = vperm.xlu1 (!%p262_p2), %4119, %v3563_v0   ;;  %369 = vperm.xlu0 (!%p262_p2), %4118, %v3562_v1   ;;  %v4272_v4 = vld [vmem:[%s5772_s1] ss:$2 sm:$0x7f] (!%p262_p2)  ;;  %v3564_v5 = vld [vmem:[%s5773_s2 + $0x18] sm:$0x3f] (!%p262_p2)  ;;  %s4176_s23 = smov (!%p262_p2), 30  }
   0x8   : > { %1651 = vmatprep.mubr.bf16.mxu1 (!%p262_p2), %v4173_v2  ;;  %v3565_v6 = vld [vmem:[%s5773_s2 + $0x20] sm:$0x3f] (!%p262_p2)  ;;  %v3566_v7 = vld [vmem:[%s5773_s2 + $0x28] sm:$0x3f] (!%p262_p2)  ;;  %v3567_v8 = vld [vmem:[%s5773_s2 + $0x30] sm:$0x3f] (!%p262_p2) }
   0x9   : > { %v3568_v9 = vld [vmem:[%s5773_s2 + $0x38] sm:$0x3f] (!%p262_p2)  ;;  %s4177_s30 = smov (!%p262_p2), 56   ;;  %v3569_v10 = vld [vmem:[%s5773_s2 + $0x40] sm:$0x3f] (!%p262_p2)  ;;  %s4178_s13 = smov (!%p262_p2), 58  }
   0xa   : > { %v309_v11 = vld [vmem:[%s5773_s2] sm:$0x3f] (!%p262_p2)  ;;  %p294_p3 = scmp.lt.s32.totalorder (!%p262_p2), %s3554_s28, 1  ;;  %v4308_v14 = vshrl.u32 (!%p262_p2), %v316_v13, 7  ;;  %s4179_s20 = smov (!%p262_p2), 127   ;;  %vm561_vm1 = vcmask (!%p262_p2), 228352  }
   0xb   : > { %458 = vrot.lane.b32.xlu0 (!%p262_p2), %v3561_v3, %s4174_s15  ;;  %558 = vrot.lane.b32.xlu1 (!%p262_p2), %v4272_v4, %s4175_s16  ;;  %v1066_v12 = vld [vmem:[%s5774_s3] sm:$0x3f] (!%p262_p2)  ;;  %s4180_s21 = smov (!%p262_p2), 126   ;;  %s4181_s22 = smov (!%p262_p2), 100   ;;  %vm716_vm2 = vcmask (!%p262_p2), 244736   ;;  %vm815_vm3 = vcmask (!%p262_p2), 457728  }
   0xc   : > { %v4314_v15 = vsub.s32 (!%p262_p2), 2, %v4308_v14  ;;  %v4317_v16 = vsub.s32 (!%p262_p2), 1, %v4308_v14  ;;  %v4330_v20 = vsub.s32 (!%p262_p2), 4, %v4308_v14  ;;  %v4333_v21 = vsub.s32 (!%p262_p2), 3, %v4308_v14  ;;  %s4183_s24 = smov (!%p262_p2), 98   ;;  %s4184_s25 = smov (!%p262_p2), 72  }
   0xd   : > { %s5781_s28 = smov (!%p294_p3, %s3554_s28), 1  ;;  %v4340_v24 = vsub.s32 0, %v4308_v14  ;;  %vm970_vm4 = vcmask 474112   ;;  %s4185_s26 = smov 71   ;;  %vm436_vm5 = vcmask 1039360   ;;  %vm536_vm6 = vcmask 1031168  }
   0xe   : > { %s4077_s16 = smul.u32 7, %s5781_s28  ;;  %s4186_s29 = smov 70   ;;  %vm636_vm7 = vcmask 818176   ;;  %vm692_vm8 = vcmask 809984   ;;  %vm791_vm9 = vcmask 801792   ;;  %vm890_vm10 = vcmask 588800  }
   0xf   : > { %569 = vperm.xlu0 %4118, %v3564_v5   ;;  %661 = vperm.xlu1 %4119, %v3565_v6   ;;  %vm946_vm11 = vcmask 580608   ;;  %vm1045_vm12 = vcmask 572416   ;;  %vm1358_vm13 = vcmask 941056   ;;  %vm1362_vm14 = vcmask 1042432   ;;  %s4189_s17 = smov 124   ;;  %s4190_s18 = smov 114  }
  0x10   : > { %s297_s19 = scalar_lea.vmem %s5771_s0, %s4077_s16  ;;  %vm1585_vm15 = vcmask 553984   ;;  %s4188_s16 = smov 125  }
  0x11   : > { %v4319_v17 = vld [vmem:[%s297_s19] sm:$0x7f]  ;;  %s4191_s19 = smov 113   ;;  %s4194_s9 = smov 110  }
  0x12   : > { %v4323_v18 = vrot.slane %v4319_v17, %v4314_v15  ;;  %v4327_v19 = vrot.slane %v4319_v17, %v4317_v16  ;;  %v4348_v27 = vrot.slane %v4319_v17, %v4330_v20  ;;  %v4352_v28 = vrot.slane %v4319_v17, %v4333_v21  ;;  %s4195_s10 = smov 97   ;;  %s4196_s11 = smov 96  }
  0x13   : > { %713 = vrot.lane.b32.xlu0 %v3561_v3, %s4176_s23  ;;  %724 = vperm.xlu1 %4119, %v3566_v7   ;;  %v4362_v34 = vrot.slane %v4319_v17, %v4340_v24  ;;  %s4182_s23 = smov 99   ;;  %s4200_s12 = smov 83  }
  0x14   : > { %s4202_s14 = smov 69   ;;  %s4203_s15 = smov 68  }
  0x17   : > { %812 = vrot.lane.b32.xlu0 %v4272_v4, %s4177_s30  ;;  %823 = vperm.xlu1 %4119, %v3567_v8   ;;  %s4193_s30 = smov 111  }
  0x1b   : > { %915 = vperm.xlu0 %4118, %v3568_v9   ;;  %967 = vrot.lane.b32.xlu1 %v3561_v3, %s4178_s13  ;;  %s4201_s13 = smov 82  }
  0x1f   : > { %978 = vperm.xlu0 %4118, %v3569_v10   ;;  %312 = vperm.xlu1 %4119, %v309_v11  }
  0x23   : > { %1069 = vperm.xlu1 %4119, %v1066_v12  }
  0x86   : > { %v4335_v22 = vpop.permute.xlu1 %469  ;;  %v4337_v23 = vpop.permute.xlu0 %369 }
  0x87   : > { %v410_v25 = vmul.f32 %v4323_v18, %v4337_v23  ;;  %v409_v26 = vmul.f32 %v4327_v19, %v4337_v23  ;;  %v412_v32 = vmul.f32 %v4348_v27, %v4337_v23  ;;  %v411_v33 = vmul.f32 %v4352_v28, %v4337_v23 }
  0x88   : > { %v408_v38 = vmul.f32 %v4362_v34, %v4337_v23 }
  0x89   : > { %426 = vrot.lane.b32.xlu1 %v410_v25, %s4179_s20  ;;  %424 = vrot.lane.b32.xlu0 %v409_v26, %s4179_s20 }
  0x8a   : > { %v459_v29 = vpop.permute.xlu0 %458  ;;  %v559_v30 = vpop.permute.xlu1 %558 }
  0x8b   : > { %v460_v31 = vrot.slane %v459_v29, 7  ;;  %v560_v35 = vrot.slane %v559_v30, 7 }
  0x8d   : > { %v462_v36 = vsel %vm461_vm0, %v460_v31, %v459_v29  ;;  %430 = vrot.lane.b32.xlu1 %v412_v32, %s4179_s20  ;;  %428 = vrot.lane.b32.xlu0 %v411_v33, %s4179_s20  ;;  %v562_v39 = vsel %vm561_vm1, %v560_v35, %v559_v30  ;;  %vm1609_vm0 = vcmask 48128   ;;  %vm1801_vm1 = vcmask 1022976  }
  0x8e   : > { %v4367_v37 = vmul.f32 %v462_v36, %v4319_v17  ;;  %v4381_v45 = vmul.f32 %v562_v39, %v4319_v17  ;;  %v4390_v49 = vpop.permute.xlu0 %569  ;;  %v4414_v63 = vpop.permute.xlu1 %661 }
  0x8f   : > { %v665_v3 = vmul.f32 %v4414_v63, %v4327_v19  ;;  %v666_v6 = vmul.f32 %v4414_v63, %v4323_v18  ;;  %v667_v8 = vmul.f32 %v4414_v63, %v4352_v28  ;;  %v668_v10 = vmul.f32 %v4414_v63, %v4348_v27 }
  0x90   : > { %v480_v40 = vrot.slane %v4367_v37, %v4317_v16  ;;  %v484_v41 = vrot.slane %v4367_v37, %v4314_v15  ;;  %v488_v44 = vrot.slane %v4367_v37, %v4333_v21  ;;  %v492_v46 = vrot.slane %v4367_v37, %v4330_v20 }
  0x91   : > { %422 = vrot.lane.b32.xlu0 %v408_v38, %s4179_s20  ;;  %v476_v48 = vrot.slane %v4367_v37, %v4340_v24  ;;  %v580_v51 = vrot.slane %v4381_v45, %v4317_v16  ;;  %v584_v53 = vrot.slane %v4381_v45, %v4314_v15  ;;  %v588_v55 = vrot.slane %v4381_v45, %v4333_v21 }
  0x92   : > { %v509_v42 = vmul.f32 %v480_v40, %v4335_v22  ;;  %v510_v43 = vmul.f32 %v484_v41, %v4335_v22  ;;  %v511_v47 = vmul.f32 %v488_v44, %v4335_v22  ;;  %v512_v50 = vmul.f32 %v492_v46, %v4335_v22  ;;  %v714_v56 = vpop.permute.xlu0 %713  ;;  %v4436_v12 = vpop.permute.xlu1 %724 }
  0x93   : > { %v508_v52 = vmul.f32 %v476_v48, %v4335_v22  ;;  %v609_v54 = vmul.f32 %v580_v51, %v4390_v49  ;;  %v610_v57 = vmul.f32 %v584_v53, %v4390_v49  ;;  %v592_v58 = vrot.slane %v4381_v45, %v4330_v20 }
  0x94   : > { %524 = vrot.lane.b32.xlu1 %v509_v42, %s4180_s21  ;;  %v611_v59 = vmul.f32 %v588_v55, %v4390_v49  ;;  %v576_v60 = vrot.slane %v4381_v45, %v4340_v24  ;;  %v715_v61 = vrot.slane %v714_v56, 7  ;;  %v664_v13 = vmul.f32 %v4414_v63, %v4362_v34 }
  0x95   : > { %526 = vrot.lane.b32.xlu0 %v510_v43, %s4180_s21  ;;  %v612_v62 = vmul.f32 %v592_v58, %v4390_v49 }
  0x96   : > { %v608_v0 = vmul.f32 %v576_v60, %v4390_v49  ;;  %v717_v1 = vsel %vm716_vm2, %v715_v61, %v714_v56  ;;  %v813_v7 = vpop.permute.xlu0 %812  ;;  %v4458_v38 = vpop.permute.xlu1 %823  ;;  %vm1871_vm2 = vcmask 1014784  }
  0x97   : > { %v4422_v5 = vmul.f32 %v717_v1, %v4319_v17  ;;  %v814_v9 = vrot.slane %v813_v7, 7 }
  0x98   : > { %528 = vrot.lane.b32.xlu1 %v511_v47, %s4180_s21 }
  0x99   : > { %530 = vrot.lane.b32.xlu0 %v512_v50, %s4180_s21  ;;  %v735_v11 = vrot.slane %v4422_v5, %v4317_v16  ;;  %v739_v25 = vrot.slane %v4422_v5, %v4314_v15  ;;  %v816_v26 = vsel %vm815_vm3, %v814_v9, %v813_v7  ;;  %v743_v30 = vrot.slane %v4422_v5, %v4333_v21 }
  0x9a   : > { %v4448_v31 = vmul.f32 %v816_v26, %v4319_v17  ;;  %v747_v33 = vrot.slane %v4422_v5, %v4330_v20  ;;  %v731_v36 = vrot.slane %v4422_v5, %v4340_v24  ;;  %v968_v48 = vpop.permute.xlu1 %967  ;;  %v4477_v51 = vpop.permute.xlu0 %915  ;;  %vm1941_vm3 = vcmask 932864  }
  0x9b   : > { %v764_v29 = vmul.f32 %v735_v11, %v4436_v12  ;;  %v765_v32 = vmul.f32 %v739_v25, %v4436_v12  ;;  %v766_v35 = vmul.f32 %v743_v30, %v4436_v12  ;;  %v919_v55 = vmul.f32 %v4477_v51, %v4327_v19 }
  0x9c   : > { %522 = vrot.lane.b32.xlu1 %v508_v52, %s4180_s21  ;;  %v767_v39 = vmul.f32 %v747_v33, %v4436_v12  ;;  %v834_v40 = vrot.slane %v4448_v31, %v4317_v16  ;;  %v763_v41 = vmul.f32 %v731_v36, %v4436_v12  ;;  %v838_v42 = vrot.slane %v4448_v31, %v4314_v15 }
  0x9d   : > { %624 = vrot.lane.b32.xlu0 %v609_v54, %s4181_s22  ;;  %v842_v44 = vrot.slane %v4448_v31, %v4333_v21  ;;  %v846_v47 = vrot.slane %v4448_v31, %v4330_v20  ;;  %v969_v52 = vrot.slane %v968_v48, 7  ;;  %v830_v54 = vrot.slane %v4448_v31, %v4340_v24 }
  0x9e   : > { %v863_v43 = vmul.f32 %v834_v40, %v4458_v38  ;;  %v864_v46 = vmul.f32 %v838_v42, %v4458_v38  ;;  %v920_v60 = vmul.f32 %v4477_v51, %v4323_v18  ;;  %v918_v19 = vmul.f32 %v4477_v51, %v4362_v34 }
  0x9f   : > { %v865_v50 = vmul.f32 %v842_v44, %v4458_v38  ;;  %v866_v53 = vmul.f32 %v846_v47, %v4458_v38  ;;  %v971_v56 = vsel %vm970_vm4, %v969_v52, %v968_v48  ;;  %v4511_v34 = vsub.s32 5, %v4308_v14 }
  0xa0   : > { %626 = vrot.lane.b32.xlu1 %v610_v57, %s4181_s22  ;;  %v862_v57 = vmul.f32 %v830_v54, %v4458_v38  ;;  %v4490_v58 = vmul.f32 %v971_v56, %v4319_v17  ;;  %vm2011_vm4 = vcmask 924672  }
  0xa1   : > { %628 = vrot.lane.b32.xlu0 %v611_v59, %s4181_s22  ;;  %v921_v59 = vmul.f32 %v4477_v51, %v4352_v28  ;;  %v979_v28 = vpop.permute.xlu0 %978  ;;  %v396_v7 = vrot.slane %v4319_v17, %v4511_v34 }
  0xa2   : > { %v993_v61 = vrot.slane %v4490_v58, %v4314_v15  ;;  %v1001_v1 = vrot.slane %v4490_v58, %v4330_v20  ;;  %v985_v9 = vrot.slane %v4490_v58, %v4340_v24 }
  0xa3   : > { %v413_v11 = vmul.f32 %v396_v7, %v4337_v23 }
  0xa4   : > { %630 = vrot.lane.b32.xlu1 %v612_v62, %s4181_s22  ;;  %v922_v62 = vmul.f32 %v4477_v51, %v4348_v27  ;;  %v1019_v18 = vmul.f32 %v993_v61, %v979_v28  ;;  %v1021_v27 = vmul.f32 %v1001_v1, %v979_v28  ;;  %v1017_v25 = vmul.f32 %v985_v9, %v979_v28 }
  0xa5   : > { %622 = vrot.lane.b32.xlu0 %v608_v0, %s4181_s22  ;;  %v989_v0 = vrot.slane %v4490_v58, %v4317_v16 }
  0xa8   : > { %680 = vrot.lane.b32.xlu1 %v665_v3, %s4182_s23  ;;  %v1018_v3 = vmul.f32 %v989_v0, %v979_v28 }
  0xa9   : > { %682 = vrot.lane.b32.xlu0 %v666_v6, %s4182_s23  ;;  %v997_v6 = vrot.slane %v4490_v58, %v4333_v21 }
  0xac   : > { %684 = vrot.lane.b32.xlu1 %v667_v8, %s4182_s23  ;;  %v1020_v8 = vmul.f32 %v997_v6, %v979_v28 }
  0xad   : > { %686 = vrot.lane.b32.xlu0 %v668_v10, %s4182_s23  ;;  %v4522_v10 = vsub.s32 6, %v4308_v14 }
  0xaf   : > { %v400_v26 = vrot.slane %v4319_v17, %v4522_v10  ;;  %v600_v36 = vrot.slane %v4381_v45, %v4522_v10  ;;  %v1009_v47 = vrot.slane %v4490_v58, %v4522_v10 }
  0xb0   : > { %678 = vrot.lane.b32.xlu1 %v664_v13, %s4182_s23  ;;  %v496_v13 = vrot.slane %v4367_v37, %v4511_v34 }
  0xb1   : > { %779 = vrot.lane.b32.xlu0 %v764_v29, %s4183_s24  ;;  %v596_v29 = vrot.slane %v4381_v45, %v4511_v34  ;;  %v414_v30 = vmul.f32 %v400_v26, %v4337_v23  ;;  %v669_v23 = vmul.f32 %v4414_v63, %v396_v7  ;;  %v850_v45 = vrot.slane %v4448_v31, %v4511_v34 }
  0xb2   : > { %v513_v14 = vmul.f32 %v496_v13, %v4335_v22  ;;  %v670_v40 = vmul.f32 %v4414_v63, %v400_v26  ;;  %v923_v63 = vmul.f32 %v4477_v51, %v396_v7  ;;  %v1023_v48 = vmul.f32 %v1009_v47, %v979_v28 }
  0xb3   : > { %v613_v33 = vmul.f32 %v596_v29, %v4390_v49  ;;  %v4611_v13 = vmul.f32 %v4272_v4, %v4319_v17 }
  0xb4   : > { %781 = vrot.lane.b32.xlu1 %v765_v32, %s4183_s24  ;;  %v500_v32 = vrot.slane %v4367_v37, %v4522_v10  ;;  %v751_v37 = vrot.slane %v4422_v5, %v4511_v34 }
  0xb5   : > { %783 = vrot.lane.b32.xlu0 %v766_v35, %s4183_s24  ;;  %v331_v17 = vrot.slane %v4611_v13, %v4333_v21 }
  0xb6   : > { %v514_v35 = vmul.f32 %v500_v32, %v4335_v22  ;;  %v768_v22 = vmul.f32 %v751_v37, %v4436_v12 }
  0xb8   : > { %785 = vrot.lane.b32.xlu1 %v767_v39, %s4183_s24  ;;  %v614_v39 = vmul.f32 %v600_v36, %v4390_v49  ;;  %v867_v49 = vmul.f32 %v850_v45, %v4458_v38 }
  0xb9   : > { %777 = vrot.lane.b32.xlu0 %v763_v41, %s4183_s24  ;;  %v755_v41 = vrot.slane %v4422_v5, %v4522_v10  ;;  %v1005_v5 = vrot.slane %v4490_v58, %v4511_v34 }
  0xbb   : > { %v769_v42 = vmul.f32 %v755_v41, %v4436_v12  ;;  %v1022_v12 = vmul.f32 %v1005_v5, %v979_v28 }
  0xbc   : > { %878 = vrot.lane.b32.xlu1 %v863_v43, %s4184_s25  ;;  %v854_v43 = vrot.slane %v4448_v31, %v4522_v10  ;;  %v924_v31 = vmul.f32 %v4477_v51, %v400_v26 }
  0xbd   : > { %880 = vrot.lane.b32.xlu0 %v864_v46, %s4184_s25  ;;  %v4573_v46 = vpop.permute.xlu1 %312 }
  0xbe   : > { %v868_v44 = vmul.f32 %v854_v43, %v4458_v38 }
  0xc0   : > { %882 = vrot.lane.b32.xlu1 %v865_v50, %s4184_s25 }
  0xc1   : > { %884 = vrot.lane.b32.xlu0 %v866_v53, %s4184_s25  ;;  %v4580_v50 = vpop.permute.xlu1 %1069 }
  0xc4   : > { %934 = vrot.lane.b32.xlu1 %v919_v55, %s4185_s26 }
  0xc5   : > { %876 = vrot.lane.b32.xlu0 %v862_v57, %s4184_s25 }
  0xc8   : > { %938 = vrot.lane.b32.xlu1 %v921_v59, %s4185_s26 }
  0xc9   : > { %936 = vrot.lane.b32.xlu0 %v920_v60, %s4185_s26 }
  0xcc   : > { %932 = vrot.lane.b32.xlu1 %v918_v19, %s4185_s26 }
  0xcd   : > { %940 = vrot.lane.b32.xlu0 %v922_v62, %s4185_s26 }
  0xd0   : > { %1035 = vrot.lane.b32.xlu1 %v1019_v18, %s4186_s29 }
  0xd1   : > { %1033 = vrot.lane.b32.xlu0 %v1018_v3, %s4186_s29 }
  0xd4   : > { %1039 = vrot.lane.b32.xlu1 %v1021_v27, %s4186_s29 }
  0xd5   : > { %1037 = vrot.lane.b32.xlu0 %v1020_v8, %s4186_s29 }
  0xd8   : > { %432 = vrot.lane.b32.xlu1 %v413_v11, %s4179_s20 }
  0xd9   : > { %1031 = vrot.lane.b32.xlu0 %v1017_v25, %s4186_s29 }
  0xdc   : > { %532 = vrot.lane.b32.xlu1 %v513_v14, %s4180_s21  ;;  %v323_v14 = vrot.slane %v4611_v13, %v4317_v16 }
  0xdd   : > { %434 = vrot.lane.b32.xlu0 %v414_v30, %s4179_s20 }
  0xde   : > { %v352_v4 = vmul.f32 %v323_v14, %v4573_v46 }
  0xe0   : > { %632 = vrot.lane.b32.xlu1 %v613_v33, %s4181_s22  ;;  %v327_v33 = vrot.slane %v4611_v13, %v4314_v15 }
  0xe1   : > { %534 = vrot.lane.b32.xlu0 %v514_v35, %s4180_s21  ;;  %v319_v35 = vrot.slane %v4611_v13, %v4340_v24 }
  0xe2   : > { %v353_v15 = vmul.f32 %v327_v33, %v4573_v46 }
  0xe3   : > { %v351_v45 = vmul.f32 %v319_v35, %v4573_v46 }
  0xe4   : > { %688 = vrot.lane.b32.xlu1 %v669_v23, %s4182_s23 }
  0xe5   : > { %634 = vrot.lane.b32.xlu0 %v614_v39, %s4181_s22 }
  0xe8   : > { %787 = vrot.lane.b32.xlu1 %v768_v22, %s4183_s24  ;;  %v354_v22 = vmul.f32 %v331_v17, %v4573_v46 }
  0xe9   : > { %690 = vrot.lane.b32.xlu0 %v670_v40, %s4182_s23 }
  0xec   : > { %886 = vrot.lane.b32.xlu1 %v867_v49, %s4184_s25 }
  0xed   : > { %789 = vrot.lane.b32.xlu0 %v769_v42, %s4183_s24 }
  0xf0   : > { %942 = vrot.lane.b32.xlu1 %v923_v63, %s4185_s26 }
  0xf1   : > { %888 = vrot.lane.b32.xlu0 %v868_v44, %s4184_s25 }
  0xf4   : > { %1041 = vrot.lane.b32.xlu1 %v1022_v12, %s4186_s29 }
  0xf5   : > { %944 = vrot.lane.b32.xlu0 %v924_v31, %s4185_s26 }
  0xf9   : > { %1043 = vrot.lane.b32.xlu0 %v1023_v48, %s4186_s29 }
  0xfb   : > { %v4583_v38 = vpop.permute.xlu0 %424  ;;  %v427_v52 = vpop.permute.xlu1 %426 }
  0xfc   : > { %v438_v32 = vsel %vm436_vm5, %v4583_v38, %v427_v52 }
  0xfd   : > { %v451_v23 = vadd.f32 %v438_v32, %v352_v4 }
  0xff   : > { %v429_v53 = vpop.permute.xlu0 %428  ;;  %v4585_v54 = vpop.permute.xlu1 %430 }
 0x100   : > { %v439_v39 = vsel %vm436_vm5, %v427_v52, %v429_v53  ;;  %v440_v21 = vsel %vm436_vm5, %v429_v53, %v4585_v54 }
 0x101   : > { %v452_v63 = vadd.f32 %v439_v39, %v353_v15  ;;  %v453_v5 = vadd.f32 %v440_v21, %v354_v22 }
 0x103   : > { %v423_v55 = vpop.permute.xlu0 %422 }
 0x104   : > { %v437_v31 = vsel %vm436_vm5, %v423_v55, %v4583_v38 }
 0x106   : > { %v4587_v51 = vpop.permute.xlu1 %524 }
 0x107   : > { %v527_v56 = vpop.permute.xlu0 %526 }
 0x108   : > { %v538_v16 = vsel %vm536_vm6, %v4587_v51, %v527_v56 }
 0x109   : > { %v551_v40 = vadd.f32 %v538_v16, %v451_v23 }
 0x10a   : > { %v529_v57 = vpop.permute.xlu1 %528 }
 0x10b   : > { %v4589_v58 = vpop.permute.xlu0 %530  ;;  %v539_v41 = vsel %vm536_vm6, %v527_v56, %v529_v57 }
 0x10c   : > { %v540_v49 = vsel %vm536_vm6, %v529_v57, %v4589_v58  ;;  %v552_v53 = vadd.f32 %v539_v41, %v452_v63 }
 0x10d   : > { %v553_v56 = vadd.f32 %v540_v49, %v453_v5 }
 0x10e   : > { %v523_v59 = vpop.permute.xlu1 %522 }
 0x10f   : > { %v4591_v60 = vpop.permute.xlu0 %624  ;;  %v537_v14 = vsel %vm536_vm6, %v523_v59, %v4587_v51 }
 0x112   : > { %v627_v19 = vpop.permute.xlu1 %626 }
 0x113   : > { %v629_v61 = vpop.permute.xlu0 %628  ;;  %v638_v24 = vsel %vm636_vm7, %v4591_v60, %v627_v19 }
 0x114   : > { %v651_v44 = vadd.f32 %v638_v24, %v551_v40  ;;  %v639_v47 = vsel %vm636_vm7, %v627_v19, %v629_v61 }
 0x115   : > { %v652_v33 = vadd.f32 %v639_v47, %v552_v53 }
 0x116   : > { %v4593_v62 = vpop.permute.xlu1 %630 }
 0x117   : > { %v4595_v0 = vpop.permute.xlu0 %622  ;;  %v640_v48 = vsel %vm636_vm7, %v629_v61, %v4593_v62  ;;  %v450_v61 = vadd.f32 %v437_v31, %v351_v45 }
 0x118   : > { %v653_v4 = vadd.f32 %v640_v48, %v553_v56  ;;  %v637_v51 = vsel %vm636_vm7, %v4595_v0, %v4591_v60 }
 0x119   : > { %v550_v16 = vadd.f32 %v537_v14, %v450_v61 }
 0x11a   : > { %v4597_v28 = vpop.permute.xlu1 %680 }
 0x11b   : > { %v683_v18 = vpop.permute.xlu0 %682 }
 0x11c   : > { %v694_v42 = vsel %vm692_vm8, %v4597_v28, %v683_v18 }
 0x11d   : > { %v707_v57 = vadd.f32 %v694_v42, %v651_v44 }
 0x11e   : > { %v685_v1 = vpop.permute.xlu1 %684 }
 0x11f   : > { %v4599_v3 = vpop.permute.xlu0 %686  ;;  %v695_v32 = vsel %vm692_vm8, %v683_v18, %v685_v1 }
 0x120   : > { %v696_v38 = vsel %vm692_vm8, %v685_v1, %v4599_v3  ;;  %v708_v23 = vadd.f32 %v695_v32, %v652_v33 }
 0x121   : > { %v709_v15 = vadd.f32 %v696_v38, %v653_v4 }
 0x122   : > { %v4601_v6 = vpop.permute.xlu1 %678 }
 0x123   : > { %v4603_v27 = vpop.permute.xlu0 %779  ;;  %v693_v21 = vsel %vm692_vm8, %v4601_v6, %v4597_v28 }
 0x126   : > { %v782_v7 = vpop.permute.xlu1 %781 }
 0x127   : > { %v784_v8 = vpop.permute.xlu0 %783  ;;  %v793_v52 = vsel %vm791_vm9, %v4603_v27, %v782_v7 }
 0x128   : > { %v806_v17 = vadd.f32 %v793_v52, %v707_v57  ;;  %v794_v59 = vsel %vm791_vm9, %v782_v7, %v784_v8  ;;  %v650_v7 = vadd.f32 %v637_v51, %v550_v16  ;;  %v335_v51 = vrot.slane %v4611_v13, %v4330_v20 }
 0x12a   : > { %v4605_v9 = vpop.permute.xlu1 %785 }
 0x12b   : > { %v4607_v11 = vpop.permute.xlu0 %777  ;;  %v795_v18 = vsel %vm791_vm9, %v784_v8, %v4605_v9  ;;  %v807_v8 = vadd.f32 %v794_v59, %v708_v23 }
 0x12c   : > { %v808_v22 = vadd.f32 %v795_v18, %v709_v15  ;;  %v792_v41 = vsel %vm791_vm9, %v4607_v11, %v4603_v27  ;;  %v355_v15 = vmul.f32 %v335_v51, %v4573_v46 }
 0x12e   : > { %v4613_v25 = vpop.permute.xlu1 %878 }
 0x12f   : > { %v4615_v26 = vpop.permute.xlu0 %880 }
 0x130   : > { %v892_v55 = vsel %vm890_vm10, %v4613_v25, %v4615_v26 }
 0x131   : > { %v905_v39 = vadd.f32 %v892_v55, %v806_v17 }
 0x132   : > { %v883_v29 = vpop.permute.xlu1 %882 }
 0x133   : > { %v4619_v30 = vpop.permute.xlu0 %884  ;;  %v893_v24 = vsel %vm890_vm10, %v4615_v26, %v883_v29  ;;  %v706_v26 = vadd.f32 %v693_v21, %v650_v7 }
 0x134   : > { %v894_v60 = vsel %vm890_vm10, %v883_v29, %v4619_v30  ;;  %v906_v42 = vadd.f32 %v893_v24, %v807_v8  ;;  %v1169_v24 = vld [vmem:[%s5775_s4 + $0x8] sm:$0xff]  ;;  %v1170_v8 = vld [vmem:[%s5775_s4 + $0x10] sm:$0xff] }
 0x135   : > { %v907_v29 = vadd.f32 %v894_v60, %v808_v22  ;;  %v805_v31 = vadd.f32 %v792_v41, %v706_v26  ;;  %v1171_v60 = vld [vmem:[%s5775_s4 + $0x18] sm:$0xff] }
 0x136   : > { %v4632_v36 = vpop.permute.xlu1 %934  ;;  %v3755_v7 = vpack.c.bf16 %v1171_v60, %v1169_v24  ;;  %v1175_v22 = vld [vmem:[%s5775_s4 + $0x38] sm:$0xff] }
 0x137   : > { %v4634_v37 = vpop.permute.xlu0 %876 }
 0x138   : > { %v891_v5 = vsel %vm890_vm10, %v4634_v37, %v4613_v25  ;;  %3756 = vmatprep.subr.bf16.mxu0 %v3755_v7  ;;  %v1188_v7 = vld [vmem:[%s5775_s4 + $0xa0] sm:$0xff] }
 0x139   : > { %v904_v52 = vadd.f32 %v891_v5, %v805_v31 }
 0x13a   : > { %v939_v43 = vpop.permute.xlu1 %938 }
 0x13b   : > { %v937_v12 = vpop.permute.xlu0 %936 }
 0x13c   : > { %v948_v1 = vsel %vm946_vm11, %v4632_v36, %v937_v12  ;;  %v949_v49 = vsel %vm946_vm11, %v937_v12, %v939_v43 }
 0x13d   : > { %v961_v45 = vadd.f32 %v948_v1, %v905_v39  ;;  %v962_v47 = vadd.f32 %v949_v49, %v906_v42  ;;  %v1172_v49 = vld [vmem:[%s5775_s4 + $0x20] sm:$0xff] }
 0x13e   : > { %v933_v19 = vpop.permute.xlu1 %932 }
 0x13f   : > { %v4664_v35 = vpop.permute.xlu0 %940  ;;  %v947_v12 = vsel %vm946_vm11, %v933_v19, %v4632_v36 }
 0x140   : > { %v950_v28 = vsel %vm946_vm11, %v939_v43, %v4664_v35  ;;  %v960_v57 = vadd.f32 %v947_v12, %v904_v52 }
 0x141   : > { %v963_v27 = vadd.f32 %v950_v28, %v907_v29  ;;  %v1174_v28 = vld [vmem:[%s5775_s4 + $0x30] sm:$0xff] }
 0x142   : > { %v1036_v0 = vpop.permute.xlu1 %1035 }
 0x143   : > { %v1034_v40 = vpop.permute.xlu0 %1033 }
 0x144   : > { %v1047_v6 = vsel %vm1045_vm12, %v1034_v40, %v1036_v0 }
 0x145   : > { %v1060_v63 = vadd.f32 %v1047_v6, %v961_v45  ;;  %v1177_v6 = vld [vmem:[%s5775_s4 + $0x48] sm:$0xff] }
 0x146   : > { %v4691_v44 = vpop.permute.xlu1 %1039 }
 0x147   : > { %v1038_v11 = vpop.permute.xlu0 %1037  ;;  %v4699_v53 = vadd.f32 %v4580_v50, %v1060_v63  ;;  %v3761_v63 = vpack.c.bf16 %v1174_v28, %v1172_v49  ;;  %v1197_v49 = vld [vmem:[%s5775_s4 + $0xe8] sm:$0xff]  ;;  %v1199_v28 = vld [vmem:[%s5775_s4 + $0xf8] sm:$0xff] }
 0x148   : > { %v1048_v43 = vsel %vm1045_vm12, %v1036_v0, %v1038_v11  ;;  %v1049_v48 = vsel %vm1045_vm12, %v1038_v11, %v4691_v44  ;;  %v1181_v11 = vld [vmem:[%s5775_s4 + $0x68] sm:$0xff] }
 0x149   : > { %v1061_v56 = vadd.f32 %v1048_v43, %v962_v47  ;;  %v1062_v25 = vadd.f32 %v1049_v48, %v963_v27  ;;  %v1080_v38 = vmax.f32 %v4699_v53, 0.0  ;;  %v1176_v47 = vld [vmem:[%s5775_s4 + $0x40] sm:$0xff]  ;;  %v1178_v27 = vld [vmem:[%s5775_s4 + $0x50] sm:$0xff]  ;;  %v1233_v53 = vld [vmem:[%s5775_s4 + $0x208] sm:$0xff] }
 0x14a   : > { %v4701_v37 = vpop.permute.xlu1 %432  ;;  %v3765_v52 = vpack.c.bf16 %v1178_v27, %v1176_v47  ;;  %v1200_v27 = vld [vmem:[%s5775_s4 + $0x100] sm:$0xff] }
 0x14b   : > { %v4704_v14 = vadd.f32 %v4580_v50, %v1061_v56  ;;  %v1032_v32 = vpop.permute.xlu0 %1031  ;;  %v4709_v55 = vadd.f32 %v4580_v50, %v1062_v25  ;;  %v441_v16 = vsel %vm436_vm5, %v4585_v54, %v4701_v37 }
 0x14c   : > { %v1046_v36 = vsel %vm1045_vm12, %v1032_v32, %v1034_v40  ;;  %v454_v39 = vadd.f32 %v441_v16, %v355_v15  ;;  %v1182_v32 = vld [vmem:[%s5775_s4 + $0x70] sm:$0xff]  ;;  %v1184_v15 = vld [vmem:[%s5775_s4 + $0x80] sm:$0xff] }
 0x14d   : > { %v1081_v19 = vmax.f32 %v4704_v14, 0.0  ;;  %v1059_v61 = vadd.f32 %v1046_v36, %v960_v57  ;;  %v1082_v59 = vmax.f32 %v4709_v55, 0.0  ;;  %v1180_v57 = vld [vmem:[%s5775_s4 + $0x60] sm:$0xff]  ;;  %v1185_v36 = vld [vmem:[%s5775_s4 + $0x88] sm:$0xff]  ;;  %v1235_v14 = vld [vmem:[%s5775_s4 + $0x218] sm:$0xff] }
 0x14e   : > { %v4712_v33 = vpop.permute.xlu1 %532  ;;  %v3769_v51 = vpack.c.bf16 %v1182_v32, %v1180_v57  ;;  %v1209_v57 = vld [vmem:[%s5775_s4 + $0x148] sm:$0xff]  ;;  %v1211_v32 = vld [vmem:[%s5775_s4 + $0x158] sm:$0xff] }
 0x14f   : > { %v4715_v4 = vadd.f32 %v4580_v50, %v1059_v61  ;;  %v4120_v17 = vpack.i.bf16 %v1081_v19, %v1080_v38  ;;  %v541_v20 = vsel %vm536_vm6, %v4589_v58, %v4712_v33  ;;  %v1168_v58 = vld [vmem:[%s5775_s4] sm:$0xff] }
 0x150   : > { %v554_v0 = vadd.f32 %v541_v20, %v454_v39  ;;  %v3757_v40 = vpack.c.bf16 %v1170_v8, %v1168_v58  ;;  %v1186_v20 = vld [vmem:[%s5775_s4 + $0x90] sm:$0xff]  ;;  %v1189_v39 = vld [vmem:[%s5775_s4 + $0xa8] sm:$0xff] }
 0x151   : > { %v1079_v18 = vmax.f32 %v4715_v4, 0.0  ;;  %4121 = vrot.lane.b32.xlu1 %v4120_v17, %s4179_s20  ;;  %v3773_v60 = vpack.c.bf16 %v1186_v20, %v1184_v15  ;;  %v1190_v8 = vld [vmem:[%s5775_s4 + $0xb0] sm:$0xff] }
 0x152   : > { %v4726_v1 = vpop.permute.xlu1 %632  ;;  %3758 = vmatpush1.bf16.msra.mxu0 %v3757_v40  ;;  %v1192_v40 = vld [vmem:[%s5775_s4 + $0xc0] sm:$0xff] }
 0x153   : > { %v4125_v23 = vpack.i.bf16 %v1079_v18, %v1082_v59  ;;  %v641_v54 = vsel %vm636_vm7, %v4593_v62, %v4726_v1  ;;  %v1173_v62 = vld [vmem:[%s5775_s4 + $0x28] sm:$0xff] }
 0x154   : > { %v3759_v41 = vpack.c.bf16 %v1175_v22, %v1173_v62  ;;  %v654_v26 = vadd.f32 %v641_v54, %v554_v0  ;;  %v1193_v62 = vld [vmem:[%s5775_s4 + $0xc8] sm:$0xff]  ;;  %v3777_v22 = vpack.c.bf16 %v1190_v8, %v1188_v7  ;;  %v1216_v8 = vld [vmem:[%s5775_s4 + $0x180] sm:$0xff] }
 0x155   : > { %4126 = vrot.lane.b32.xlu0 %v4125_v23, %s4179_s20 }
 0x156   : > { %v4740_v21 = vpop.permute.xlu1 %688  ;;  %3760 = vmatprep.subr.bf16.mxu0 %v3759_v41  ;;  %v1194_v41 = vld [vmem:[%s5775_s4 + $0xd0] sm:$0xff] }
 0x157   : > { %v697_v45 = vsel %vm692_vm8, %v4599_v3, %v4740_v21  ;;  %v1179_v3 = vld [vmem:[%s5775_s4 + $0x58] sm:$0xff]  ;;  %3762 = vmatpush1.bf16.msra.mxu0 %v3761_v63  ;;  %v1201_v63 = vld [vmem:[%s5775_s4 + $0x108] sm:$0xff] }
 0x158   : > { %v710_v5 = vadd.f32 %v697_v45, %v654_v26  ;;  %v3763_v31 = vpack.c.bf16 %v1179_v3, %v1177_v6  ;;  %v3781_v6 = vpack.c.bf16 %v1194_v41, %v1192_v40  ;;  %v3783_v26 = vpack.c.bf16 %v1199_v28, %v1197_v49  ;;  %v1196_v3 = vld [vmem:[%s5775_s4 + $0xe0] sm:$0xff]  ;;  %v1222_v49 = vld [vmem:[%s5775_s4 + $0x1b0] sm:$0xff] }
 0x159   : > { %v1220_v41 = vld [vmem:[%s5775_s4 + $0x1a0] sm:$0xff] }
 0x15a   : > { %v4775_v42 = vpop.permute.xlu1 %787  ;;  %3764 = vmatprep.subr.bf16.mxu0 %v3763_v31  ;;  %v3809_v28 = vpack.c.bf16 %v1222_v49, %v1220_v41 }
 0x15b   : > { %v796_v29 = vsel %vm791_vm9, %v4605_v9, %v4775_v42  ;;  %v1183_v9 = vld [vmem:[%s5775_s4 + $0x78] sm:$0xff]  ;;  %3766 = vmatpush1.bf16.msra.mxu0 %v3765_v52 }
 0x15c   : > { %v809_v12 = vadd.f32 %v796_v29, %v710_v5  ;;  %v3767_v25 = vpack.c.bf16 %v1183_v9, %v1181_v11  ;;  %v1198_v29 = vld [vmem:[%s5775_s4 + $0xf0] sm:$0xff]  ;;  %v1203_v5 = vld [vmem:[%s5775_s4 + $0x118] sm:$0xff]  ;;  %v1205_v9 = vld [vmem:[%s5775_s4 + $0x128] sm:$0xff] }
 0x15d   : > { %v3785_v31 = vpack.c.bf16 %v1198_v29, %v1196_v3  ;;  %v3787_v47 = vpack.c.bf16 %v1203_v5, %v1201_v63  ;;  %v1202_v11 = vld [vmem:[%s5775_s4 + $0x110] sm:$0xff]  ;;  %v339_v5 = vrot.slane %v4611_v13, %v4511_v34 }
 0x15e   : > { %v4795_v43 = vpop.permute.xlu1 %886  ;;  %3768 = vmatprep.subr.bf16.mxu0 %v3767_v25  ;;  %v1206_v25 = vld [vmem:[%s5775_s4 + $0x130] sm:$0xff] }
 0x15f   : > { %v895_v48 = vsel %vm890_vm10, %v4619_v30, %v4795_v43  ;;  %v1187_v30 = vld [vmem:[%s5775_s4 + $0x98] sm:$0xff]  ;;  %3770 = vmatpush1.bf16.msra.mxu0 %v3769_v51  ;;  %v1210_v51 = vld [vmem:[%s5775_s4 + $0x150] sm:$0xff] }
 0x160   : > { %v908_v56 = vadd.f32 %v895_v48, %v809_v12  ;;  %v3771_v23 = vpack.c.bf16 %v1187_v30, %v1185_v36  ;;  %v1207_v12 = vld [vmem:[%s5775_s4 + $0x138] sm:$0xff]  ;;  %v3789_v48 = vpack.c.bf16 %v1202_v11, %v1200_v27  ;;  %v3795_v30 = vpack.c.bf16 %v1211_v32, %v1209_v57 }
 0x161   : > { %v3791_v52 = vpack.c.bf16 %v1207_v12, %v1205_v9  ;;  %v356_v27 = vmul.f32 %v339_v5, %v4573_v46  ;;  %v343_v11 = vrot.slane %v4611_v13, %v4522_v10  ;;  %v1225_v13 = vld [vmem:[%s5775_s4 + $0x1c8] sm:$0xff] }
 0x162   : > { %v4812_v61 = vpop.permute.xlu1 %942  ;;  %3772 = vmatprep.subr.bf16.mxu0 %v3771_v23  ;;  %v1215_v23 = vld [vmem:[%s5775_s4 + $0x178] sm:$0xff] }
 0x163   : > { %v951_v17 = vsel %vm946_vm11, %v4664_v35, %v4812_v61  ;;  %v1191_v35 = vld [vmem:[%s5775_s4 + $0xb8] sm:$0xff]  ;;  %3774 = vmatpush1.bf16.msra.mxu0 %v3773_v60  ;;  %v357_v34 = vmul.f32 %v343_v11, %v4573_v46  ;;  %v1224_v46 = vld [vmem:[%s5775_s4 + $0x1c0] sm:$0xff] }
 0x164   : > { %v964_v16 = vadd.f32 %v951_v17, %v908_v56  ;;  %v3775_v0 = vpack.c.bf16 %v1191_v35, %v1189_v39  ;;  %v1204_v56 = vld [vmem:[%s5775_s4 + $0x120] sm:$0xff]  ;;  %v1214_v35 = vld [vmem:[%s5775_s4 + $0x170] sm:$0xff]  ;;  %v1219_v60 = vld [vmem:[%s5775_s4 + $0x198] sm:$0xff] }
 0x165   : > { %v3793_v36 = vpack.c.bf16 %v1206_v25, %v1204_v56  ;;  %v1208_v17 = vld [vmem:[%s5775_s4 + $0x140] sm:$0xff] }
 0x166   : > { %v4829_v54 = vpop.permute.xlu1 %1041  ;;  %3776 = vmatprep.subr.bf16.mxu0 %v3775_v0  ;;  %v3797_v15 = vpack.c.bf16 %v1210_v51, %v1208_v17  ;;  %v1212_v39 = vld [vmem:[%s5775_s4 + $0x160] sm:$0xff] }
 0x167   : > { %v1050_v24 = vsel %vm1045_vm12, %v4691_v44, %v4829_v54  ;;  %v1195_v44 = vld [vmem:[%s5775_s4 + $0xd8] sm:$0xff]  ;;  %3778 = vmatpush1.bf16.msra.mxu0 %v3777_v22  ;;  %v3801_v0 = vpack.c.bf16 %v1214_v35, %v1212_v39 }
 0x168   : > { %v4834_v58 = vadd.f32 %v1050_v24, %v964_v16  ;;  %v3779_v45 = vpack.c.bf16 %v1195_v44, %v1193_v62  ;;  %v1213_v16 = vld [vmem:[%s5775_s4 + $0x168] sm:$0xff]  ;;  %v1218_v62 = vld [vmem:[%s5775_s4 + $0x190] sm:$0xff]  ;;  %v1223_v22 = vld [vmem:[%s5775_s4 + $0x1b8] sm:$0xff] }
 0x169   : > { %v3799_v20 = vpack.c.bf16 %v1215_v23, %v1213_v16  ;;  %v1217_v24 = vld [vmem:[%s5775_s4 + $0x188] sm:$0xff] }
 0x16a   : > { %3780 = vmatprep.subr.bf16.mxu0 %v3779_v45  ;;  %v3803_v7 = vpack.c.bf16 %v1219_v60, %v1217_v24  ;;  %v1221_v44 = vld [vmem:[%s5775_s4 + $0x1a8] sm:$0xff]  ;;  %v3805_v45 = vpack.c.bf16 %v1218_v62, %v1216_v8  ;;  %v1076_v11 = vadd.f32 %v4580_v50, %v4834_v58 }
 0x16b   : > { %3782 = vmatpush1.bf16.msra.mxu0 %v3781_v6  ;;  %v3807_v40 = vpack.c.bf16 %v1223_v22, %v1221_v44  ;;  %v435_v6 = vpop.permute.xlu0 %434  ;;  %v1229_v60 = vld [vmem:[%s5775_s4 + $0x1e8] sm:$0xff] }
 0x16c   : > { %3784 = vmatprep.subr.bf16.mxu0 %v3783_v26  ;;  %v456_v57 = vadd.f32 %v435_v6, %v357_v34  ;;  %v1237_v34 = vld [vmem:[%s5775_s4 + $0x228] sm:$0xff] }
 0x16f   : > { %3786 = vmatpush1.bf16.msra.mxu0 %v3785_v31  ;;  %v535_v26 = vpop.permute.xlu0 %534 }
 0x170   : > { %3788 = vmatprep.subr.bf16.mxu0 %v3787_v47  ;;  %v442_v47 = vsel %vm436_vm5, %v4701_v37, %v435_v6  ;;  %v542_v9 = vsel %vm536_vm6, %v4712_v33, %v535_v26  ;;  %v1227_v33 = vld [vmem:[%s5775_s4 + $0x1d8] sm:$0xff] }
 0x171   : > { %v455_v12 = vadd.f32 %v442_v47, %v356_v27 }
 0x173   : > { %3790 = vmatpush1.bf16.msra.mxu0 %v3789_v48  ;;  %v635_v3 = vpop.permute.xlu0 %634 }
 0x174   : > { %3792 = vmatprep.subr.bf16.mxu0 %v3791_v52  ;;  %v642_v48 = vsel %vm636_vm7, %v4726_v1, %v635_v3  ;;  %v555_v52 = vadd.f32 %v542_v9, %v455_v12  ;;  %v556_v1 = vadd.f32 %v535_v26, %v456_v57 }
 0x176   : > { %v655_v37 = vadd.f32 %v642_v48, %v555_v52  ;;  %v656_v16 = vadd.f32 %v635_v3, %v556_v1 }
 0x177   : > { %3794 = vmatpush1.bf16.msra.mxu0 %v3793_v36  ;;  %v691_v29 = vpop.permute.xlu0 %690  ;;  %v3811_v36 = vpack.c.bf16 %v1227_v33, %v1225_v13 }
 0x178   : > { %3796 = vmatprep.subr.bf16.mxu0 %v3795_v30  ;;  %v698_v25 = vsel %vm692_vm8, %v4740_v21, %v691_v29  ;;  %v712_v39 = vadd.f32 %v691_v29, %v656_v16  ;;  %v1241_v16 = vld [vmem:[%s5775_s4 + $0x248] sm:$0xff] }
 0x179   : > { %v711_v10 = vadd.f32 %v698_v25, %v655_v37  ;;  %v1239_v25 = vld [vmem:[%s5775_s4 + $0x238] sm:$0xff] }
 0x17b   : > { %3798 = vmatpush1.bf16.msra.mxu0 %v3797_v15  ;;  %v790_v63 = vpop.permute.xlu0 %789 }
 0x17c   : > { %3800 = vmatprep.subr.bf16.mxu0 %v3799_v20  ;;  %v797_v32 = vsel %vm791_vm9, %v4775_v42, %v790_v63  ;;  %v1226_v42 = vld [vmem:[%s5775_s4 + $0x1d0] sm:$0xff]  ;;  %v811_v62 = vadd.f32 %v790_v63, %v712_v39 }
 0x17d   : > { %v810_v30 = vadd.f32 %v797_v32, %v711_v10  ;;  %v3813_v51 = vpack.c.bf16 %v1226_v42, %v1224_v46  ;;  %v1236_v42 = vld [vmem:[%s5775_s4 + $0x220] sm:$0xff] }
 0x17f   : > { %3802 = vmatpush1.bf16.msra.mxu0 %v3801_v0  ;;  %v889_v31 = vpop.permute.xlu0 %888  ;;  %v1231_v0 = vld [vmem:[%s5775_s4 + $0x1f8] sm:$0xff] }
 0x180   : > { %3804 = vmatprep.subr.bf16.mxu0 %v3803_v7  ;;  %v896_v21 = vsel %vm890_vm10, %v4795_v43, %v889_v31  ;;  %v3815_v8 = vpack.c.bf16 %v1231_v0, %v1229_v60  ;;  %v1245_v60 = vld [vmem:[%s5775_s4 + $0x268] sm:$0xff]  ;;  %v1247_v0 = vld [vmem:[%s5775_s4 + $0x278] sm:$0xff] }
 0x181   : > { %v909_v15 = vadd.f32 %v896_v21, %v810_v30  ;;  %v1238_v30 = vld [vmem:[%s5775_s4 + $0x230] sm:$0xff] }
 0x182   : > { %v3825_v55 = vpack.c.bf16 %v1238_v30, %v1236_v42  ;;  %v1275_v42 = vld [vmem:[%s5775_s4 + $0x358] sm:$0xff] }
 0x183   : > { %3806 = vmatpush1.bf16.msra.mxu0 %v3805_v45  ;;  %v945_v56 = vpop.permute.xlu0 %944 }
 0x184   : > { %3808 = vmatprep.subr.bf16.mxu0 %v3807_v40  ;;  %v952_v23 = vsel %vm946_vm11, %v4812_v61, %v945_v56  ;;  %v1228_v61 = vld [vmem:[%s5775_s4 + $0x1e0] sm:$0xff]  ;;  %v910_v40 = vadd.f32 %v889_v31, %v811_v62  ;;  %v1246_v62 = vld [vmem:[%s5775_s4 + $0x270] sm:$0xff] }
 0x185   : > { %v965_v7 = vadd.f32 %v952_v23, %v909_v15  ;;  %v1243_v23 = vld [vmem:[%s5775_s4 + $0x258] sm:$0xff] }
 0x186   : > { %v966_v6 = vadd.f32 %v945_v56, %v910_v40  ;;  %v1234_v56 = vld [vmem:[%s5775_s4 + $0x210] sm:$0xff]  ;;  %v3827_v39 = vpack.c.bf16 %v1243_v23, %v1241_v16  ;;  %v1272_v23 = vld [vmem:[%s5775_s4 + $0x340] sm:$0xff] }
 0x187   : > { %3810 = vmatpush1.bf16.msra.mxu0 %v3809_v28  ;;  %v1044_v17 = vpop.permute.xlu0 %1043 }
 0x188   : > { %3812 = vmatprep.subr.bf16.mxu0 %v3811_v36  ;;  %v1051_v43 = vsel %vm1045_vm12, %v4829_v54, %v1044_v17  ;;  %v1230_v54 = vld [vmem:[%s5775_s4 + $0x1f0] sm:$0xff]  ;;  %v1065_v47 = vadd.f32 %v1044_v17, %v966_v6  ;;  %v3823_v36 = vpack.c.bf16 %v1239_v25, %v1237_v34  ;;  %v1255_v6 = vld [vmem:[%s5775_s4 + $0x2b8] sm:$0xff] }
 0x189   : > { %v3817_v44 = vpack.c.bf16 %v1230_v54, %v1228_v61  ;;  %v1064_v22 = vadd.f32 %v1051_v43, %v965_v7  ;;  %v1240_v43 = vld [vmem:[%s5775_s4 + $0x240] sm:$0xff] }
 0x18a   : > { %v1244_v54 = vld [vmem:[%s5775_s4 + $0x260] sm:$0xff] }
 0x18b   : > { %3814 = vmatpush1.bf16.msra.mxu0 %v3813_v51  ;;  %v1077_v31 = vadd.f32 %v4580_v50, %v1064_v22  ;;  %v1251_v22 = vld [vmem:[%s5775_s4 + $0x298] sm:$0xff] }
 0x18c   : > { %3816 = vmatprep.subr.bf16.mxu0 %v3815_v8  ;;  %v3831_v8 = vpack.c.bf16 %v1247_v0, %v1245_v60  ;;  %v1283_v60 = vld [vmem:[%s5775_s4 + $0x398] sm:$0xff] }
 0x18d   : > { %v5001_v4 = vmax.f32 %v1077_v31, 0.0  ;;  %v1257_v31 = vld [vmem:[%s5775_s4 + $0x2c8] sm:$0xff] }
 0x18f   : > { %3818 = vmatpush1.bf16.msra.mxu0 %v3817_v44  ;;  %v1249_v44 = vld [vmem:[%s5775_s4 + $0x288] sm:$0xff] }
 0x190   : > { %v3835_v40 = vpack.c.bf16 %v1251_v22, %v1249_v44 }
 0x1c3   : > { %v4122_v20 = vpop.permute.xlu1 %4121 }
 0x1c4   : > { %v4124_v35 = vunpack.i.h.bf16 %v4122_v20  ;;  %v4123_v24 = vunpack.i.l.bf16 %v4122_v20 }
 0x1c6   : > { %v1105_v41 = vsel %vm436_vm5, %v4123_v24, %v4124_v35 }
 0x1c7   : > { %v4127_v45 = vpop.permute.xlu0 %4126  ;;  %v1116_v63 = vmax.f32 %v1080_v38, %v1105_v41  ;;  %v3819_v38 = vpack.c.bf16 %v1235_v14, %v1233_v53  ;;  %v1248_v41 = vld [vmem:[%s5775_s4 + $0x280] sm:$0xff]  ;;  %v1258_v14 = vld [vmem:[%s5775_s4 + $0x2d0] sm:$0xff] }
 0x1c8   : > { %v4129_v49 = vunpack.i.h.bf16 %v4127_v45  ;;  %v4128_v28 = vunpack.i.l.bf16 %v4127_v45  ;;  %v3833_v45 = vpack.c.bf16 %v1246_v62, %v1244_v54  ;;  %v1256_v53 = vld [vmem:[%s5775_s4 + $0x2c0] sm:$0xff]  ;;  %v1285_v54 = vld [vmem:[%s5775_s4 + $0x3a8] sm:$0xff]  ;;  %v1287_v62 = vld [vmem:[%s5775_s4 + $0x3b8] sm:$0xff] }
 0x1c9   : > { %3820 = vmatprep.subr.bf16.mxu0 %v3819_v38  ;;  %v1261_v38 = vld [vmem:[%s5775_s4 + $0x2e8] sm:$0xff]  ;;  %v3871_v22 = vpack.c.bf16 %v1287_v62, %v1285_v54 }
 0x1ca   : > { %v1106_v26 = vsel %vm436_vm5, %v4124_v35, %v4128_v28  ;;  %v1104_v3 = vsel %vm436_vm5, %v4129_v49, %v4123_v24  ;;  %v1242_v35 = vld [vmem:[%s5775_s4 + $0x250] sm:$0xff] }
 0x1cb   : > { %v1115_v29 = vmax.f32 %v1079_v18, %v1104_v3  ;;  %v4993_v5 = vmax.f32 %v1081_v19, %v1106_v26  ;;  %v1078_v19 = vadd.f32 %v4580_v50, %v1065_v47  ;;  %v1083_v18 = vmax.f32 %v1076_v11, 0.0  ;;  %v1232_v50 = vld [vmem:[%s5775_s4 + $0x200] sm:$0xff]  ;;  %v1250_v49 = vld [vmem:[%s5775_s4 + $0x290] sm:$0xff]  ;;  %v1259_v47 = vld [vmem:[%s5775_s4 + $0x2d8] sm:$0xff] }
 0x1cc   : > { %v3821_v46 = vpack.c.bf16 %v1234_v56, %v1232_v50  ;;  %v3829_v7 = vpack.c.bf16 %v1242_v35, %v1240_v43  ;;  %v3837_v26 = vpack.c.bf16 %v1250_v49, %v1248_v41  ;;  %v3843_v11 = vpack.c.bf16 %v1259_v47, %v1257_v31  ;;  %v1265_v50 = vld [vmem:[%s5775_s4 + $0x308] sm:$0xff]  ;;  %v1267_v56 = vld [vmem:[%s5775_s4 + $0x318] sm:$0xff]  ;;  %v1276_v43 = vld [vmem:[%s5775_s4 + $0x360] sm:$0xff] }
 0x1cd   : > { %1136 = vrot.lane.b32.xlu0 %v1115_v29, %s4181_s22  ;;  %v4130_v27 = vpack.i.bf16 %v4993_v5, %v1116_v63  ;;  %v1085_v58 = vmax.f32 %v1078_v19, 0.0  ;;  %v1263_v19 = vld [vmem:[%s5775_s4 + $0x2f8] sm:$0xff]  ;;  %v3851_v25 = vpack.c.bf16 %v1267_v56, %v1265_v50  ;;  %v1278_v35 = vld [vmem:[%s5775_s4 + $0x370] sm:$0xff]  ;;  %v1289_v41 = vld [vmem:[%s5775_s4 + $0x3c8] sm:$0xff] }
 0x1ce   : > { %v3865_v0 = vpack.c.bf16 %v1278_v35, %v1276_v43  ;;  %v1291_v49 = vld [vmem:[%s5775_s4 + $0x3d8] sm:$0xff]  ;;  %v1298_v50 = vld [vmem:[%s5775_s4 + $0x410] sm:$0xff]  ;;  %v1301_v56 = vld [vmem:[%s5775_s4 + $0x428] sm:$0xff] }
 0x1cf   : > { %4131 = vrot.lane.b32.xlu1 %v4130_v27, %s4181_s22  ;;  %v1313_v43 = vld [vmem:[%s5775_s4 + $0x488] sm:$0xff]  ;;  %v1315_v35 = vld [vmem:[%s5775_s4 + $0x498] sm:$0xff] }
 0x1d1   : > { %1102 = vrot.lane.b32.xlu0 %v5001_v4, %s4179_s20 }
 0x1d3   : > { %1100 = vrot.lane.b32.xlu1 %v1083_v18, %s4179_s20 }
 0x1d7   : > { %1122 = vrot.lane.b32.xlu1 %v1085_v58, %s4179_s20 }
 0x23f   : > { %v1137_v9 = vpop.permute.xlu0 %1136 }
 0x241   : > { %v5014_v12 = vpop.permute.xlu1 %4131 }
 0x242   : > { %v4134_v48 = vunpack.i.h.bf16 %v5014_v12  ;;  %v4133_v52 = vunpack.i.l.bf16 %v5014_v12 }
 0x243   : > { %v5034_v32 = vpop.permute.xlu0 %1102 }
 0x244   : > { %v1151_v37 = vsel %vm636_vm7, %v4133_v52, %v4134_v48  ;;  %v1150_v57 = vsel %vm636_vm7, %v1137_v9, %v4133_v52  ;;  %v1260_v9 = vld [vmem:[%s5775_s4 + $0x2e0] sm:$0xff]  ;;  %v1262_v52 = vld [vmem:[%s5775_s4 + $0x2f0] sm:$0xff] }
 0x245   : > { %v1101_v10 = vpop.permute.xlu1 %1100  ;;  %v1163_v13 = vmax.f32 %v1116_v63, %v1151_v37  ;;  %v1162_v33 = vmax.f32 %v1115_v29, %v1150_v57  ;;  %v1252_v29 = vld [vmem:[%s5775_s4 + $0x2a0] sm:$0xff]  ;;  %v1254_v63 = vld [vmem:[%s5775_s4 + $0x2b0] sm:$0xff]  ;;  %v3849_v34 = vpack.c.bf16 %v1262_v52, %v1260_v9 }
 0x246   : > { %v1107_v1 = vsel %vm436_vm5, %v4128_v28, %v1101_v10  ;;  %v1108_v21 = vsel %vm436_vm5, %v1101_v10, %v5034_v32  ;;  %v1253_v28 = vld [vmem:[%s5775_s4 + $0x2a8] sm:$0xff]  ;;  %v3841_v27 = vpack.c.bf16 %v1254_v63, %v1252_v29  ;;  %v1264_v37 = vld [vmem:[%s5775_s4 + $0x300] sm:$0xff]  ;;  %v1266_v57 = vld [vmem:[%s5775_s4 + $0x310] sm:$0xff] }
 0x247   : > { %v5047_v17 = vmax.f32 %v1082_v59, %v1107_v1  ;;  %v5049_v51 = vmax.f32 %v1083_v18, %v1108_v21  ;;  %1433 = vmatprep.mubr.f32.mxu0 %v1163_v13  ;;  %v3839_v3 = vpack.c.bf16 %v1255_v6, %v1253_v28  ;;  %v3845_v18 = vpack.c.bf16 %v1258_v14, %v1256_v53  ;;  %v1269_v10 = vld [vmem:[%s5775_s4 + $0x328] sm:$0xff]  ;;  %v1271_v13 = vld [vmem:[%s5775_s4 + $0x338] sm:$0xff]  ;;  %v1268_v1 = vld [vmem:[%s5775_s4 + $0x320] sm:$0xff] }
 0x248   : > { %1434 = vmatmul.mubr.f32.vlgmr.msra.gmra.mrb[0].mxu0 %v1162_v33  ;;  %v3853_v33 = vpack.c.bf16 %v1266_v57, %v1264_v37  ;;  %v1270_v21 = vld [vmem:[%s5775_s4 + $0x330] sm:$0xff]  ;;  %v3875_v6 = vpack.c.bf16 %v1291_v49, %v1289_v41  ;;  %v1293_v29 = vld [vmem:[%s5775_s4 + $0x3e8] sm:$0xff]  ;;  %v1295_v63 = vld [vmem:[%s5775_s4 + $0x3f8] sm:$0xff]  ;;  %v1120_v57 = vmax.f32 %v5001_v4, %v5034_v32 }
 0x249   : > { %v1123_v15 = vpop.permute.xlu1 %1122  ;;  %v4135_v20 = vpack.i.bf16 %v5049_v51, %v5047_v17  ;;  %3822 = vmatpush1.bf16.msra.mxu0 %v3821_v46  ;;  %v3855_v46 = vpack.c.bf16 %v1271_v13, %v1269_v10  ;;  %v3857_v30 = vpack.c.bf16 %v1270_v21, %v1268_v1  ;;  %v3879_v47 = vpack.c.bf16 %v1295_v63, %v1293_v29  ;;  %v1297_v53 = vld [vmem:[%s5775_s4 + $0x408] sm:$0xff]  ;;  %v1299_v14 = vld [vmem:[%s5775_s4 + $0x418] sm:$0xff]  ;;  %v1296_v52 = vld [vmem:[%s5775_s4 + $0x400] sm:$0xff] }
 0x24a   : > { %v1124_v59 = vsel %vm436_vm5, %v5034_v32, %v1123_v15  ;;  %3824 = vmatprep.subr.bf16.mxu0 %v3823_v36  ;;  %v1128_v61 = vmax.f32 %v1085_v58, %v1123_v15  ;;  %v3847_v58 = vpack.c.bf16 %v1263_v19, %v1261_v38  ;;  %v1273_v36 = vld [vmem:[%s5775_s4 + $0x348] sm:$0xff]  ;;  %v1274_v15 = vld [vmem:[%s5775_s4 + $0x350] sm:$0xff]  ;;  %v3883_v19 = vpack.c.bf16 %v1299_v14, %v1297_v53  ;;  %v1300_v21 = vld [vmem:[%s5775_s4 + $0x420] sm:$0xff] }
 0x24b   : > { %v1127_v24 = vmax.f32 %v5001_v4, %v1124_v59  ;;  %4136 = vrot.lane.b32.xlu0 %v4135_v20, %s4181_s22  ;;  %v3859_v16 = vpack.c.bf16 %v1275_v42, %v1273_v36  ;;  %v1277_v20 = vld [vmem:[%s5775_s4 + $0x368] sm:$0xff]  ;;  %v3861_v59 = vpack.c.bf16 %v1274_v15, %v1272_v23  ;;  %v3885_v1 = vpack.c.bf16 %v1298_v50, %v1296_v52  ;;  %v1302_v4 = vld [vmem:[%s5775_s4 + $0x430] sm:$0xff]  ;;  %v1311_v15 = vld [vmem:[%s5775_s4 + $0x478] sm:$0xff] }
 0x24c   : > { %v1305_v32 = vld [vmem:[%s5775_s4 + $0x448] sm:$0xff]  ;;  %v3889_v36 = vpack.c.bf16 %v1302_v4, %v1300_v21  ;;  %v1335_v52 = vld [vmem:[%s5775_s4 + $0x538] sm:$0xff] }
 0x24d   : > { %1146 = vrot.lane.b32.xlu1 %v1127_v24, %s4181_s22  ;;  %3826 = vmatpush1.bf16.msra.mxu0 %v3825_v55  ;;  %v1279_v55 = vld [vmem:[%s5775_s4 + $0x378] sm:$0xff]  ;;  %v1281_v24 = vld [vmem:[%s5775_s4 + $0x388] sm:$0xff] }
 0x24e   : > { %3828 = vmatprep.subr.bf16.mxu0 %v3827_v39  ;;  %v3863_v39 = vpack.c.bf16 %v1279_v55, %v1277_v20  ;;  %v1309_v23 = vld [vmem:[%s5775_s4 + $0x468] sm:$0xff] }
 0x24f   : > { %1148 = vrot.lane.b32.xlu0 %v1128_v61, %s4181_s22  ;;  %v3867_v61 = vpack.c.bf16 %v1283_v60, %v1281_v24  ;;  %v3895_v55 = vpack.c.bf16 %v1311_v15, %v1309_v23  ;;  %v3899_v60 = vpack.c.bf16 %v1315_v35, %v1313_v43  ;;  %v1346_v23 = vld [vmem:[%s5775_s4 + $0x590] sm:$0xff]  ;;  %v1349_v15 = vld [vmem:[%s5775_s4 + $0x5a8] sm:$0xff] }
 0x250   : > { %v1350_v43 = vld [vmem:[%s5775_s4 + $0x5b0] sm:$0xff]  ;;  %v1353_v35 = vld [vmem:[%s5775_s4 + $0x5c8] sm:$0xff] }
 0x251   : > { %3830 = vmatpush1.bf16.msra.mxu0 %v3829_v7  ;;  %v1280_v7 = vld [vmem:[%s5775_s4 + $0x380] sm:$0xff] }
 0x252   : > { %3832 = vmatprep.subr.bf16.mxu0 %v3831_v8  ;;  %v1282_v8 = vld [vmem:[%s5775_s4 + $0x390] sm:$0xff] }
 0x253   : > { %v3869_v44 = vpack.c.bf16 %v1282_v8, %v1280_v7  ;;  %v1317_v7 = vld [vmem:[%s5775_s4 + $0x4a8] sm:$0xff]  ;;  %v1319_v8 = vld [vmem:[%s5775_s4 + $0x4b8] sm:$0xff] }
 0x254   : > { %v3903_v62 = vpack.c.bf16 %v1319_v8, %v1317_v7  ;;  %v1354_v7 = vld [vmem:[%s5775_s4 + $0x5d0] sm:$0xff] }
 0x255   : > { %3834 = vmatpush1.bf16.msra.mxu0 %v3833_v45  ;;  %v1284_v45 = vld [vmem:[%s5775_s4 + $0x3a0] sm:$0xff] }
 0x256   : > { %3836 = vmatprep.subr.bf16.mxu0 %v3835_v40  ;;  %v1286_v40 = vld [vmem:[%s5775_s4 + $0x3b0] sm:$0xff] }
 0x257   : > { %v3873_v28 = vpack.c.bf16 %v1286_v40, %v1284_v45  ;;  %v1321_v45 = vld [vmem:[%s5775_s4 + $0x4c8] sm:$0xff]  ;;  %v1323_v40 = vld [vmem:[%s5775_s4 + $0x4d8] sm:$0xff] }
 0x258   : > { %v3907_v49 = vpack.c.bf16 %v1323_v40, %v1321_v45  ;;  %v4187_v45 = vmov 0.0  }
 0x259   : > { %3838 = vmatpush1.bf16.msra.mxu0 %v3837_v26  ;;  %v1288_v26 = vld [vmem:[%s5775_s4 + $0x3c0] sm:$0xff]  ;;  %1582 = vst [vmem:[#allocation2] sm:$0x3f] %v4187_v45  ;;  %1583 = vst [vmem:[#allocation2 + $0x8] sm:$0x3f] %v4187_v45 }
 0x25a   : > { %3840 = vmatprep.subr.bf16.mxu0 %v3839_v3  ;;  %v1290_v3 = vld [vmem:[%s5775_s4 + $0x3d0] sm:$0xff] }
 0x25b   : > { %v3877_v31 = vpack.c.bf16 %v1290_v3, %v1288_v26  ;;  %v1325_v26 = vld [vmem:[%s5775_s4 + $0x4e8] sm:$0xff]  ;;  %v1327_v3 = vld [vmem:[%s5775_s4 + $0x4f8] sm:$0xff] }
 0x25c   : > { %v3911_v63 = vpack.c.bf16 %v1327_v3, %v1325_v26 }
 0x25d   : > { %3842 = vmatpush1.bf16.msra.mxu0 %v3841_v27  ;;  %v1292_v27 = vld [vmem:[%s5775_s4 + $0x3e0] sm:$0xff] }
 0x25e   : > { %3844 = vmatprep.subr.bf16.mxu0 %v3843_v11  ;;  %v1294_v11 = vld [vmem:[%s5775_s4 + $0x3f0] sm:$0xff] }
 0x25f   : > { %v3881_v38 = vpack.c.bf16 %v1294_v11, %v1292_v27  ;;  %v1329_v27 = vld [vmem:[%s5775_s4 + $0x508] sm:$0xff]  ;;  %v1331_v11 = vld [vmem:[%s5775_s4 + $0x518] sm:$0xff] }
 0x260   : > { %v3915_v14 = vpack.c.bf16 %v1331_v11, %v1329_v27  ;;  %v4141_v11 = vld [vmem:[%s5776_s5] sm:$0xff]  }
 0x261   : > { %3846 = vmatpush1.bf16.msra.mxu0 %v3845_v18 }
 0x262   : > { %3848 = vmatprep.subr.bf16.mxu0 %v3847_v58 }
 0x265   : > { %3850 = vmatpush1.bf16.msra.mxu0 %v3849_v34  ;;  %v1303_v34 = vld [vmem:[%s5775_s4 + $0x438] sm:$0xff] }
 0x266   : > { %3852 = vmatprep.subr.bf16.mxu0 %v3851_v25 }
 0x269   : > { %3854 = vmatpush1.bf16.msra.mxu0 %v3853_v33 }
 0x26a   : > { %3856 = vmatprep.subr.bf16.mxu0 %v3855_v46 }
 0x26d   : > { %3858 = vmatpush1.bf16.msra.mxu0 %v3857_v30  ;;  %v1304_v30 = vld [vmem:[%s5775_s4 + $0x440] sm:$0xff] }
 0x26e   : > { %3860 = vmatprep.subr.bf16.mxu0 %v3859_v16  ;;  %v1306_v16 = vld [vmem:[%s5775_s4 + $0x450] sm:$0xff] }
 0x26f   : > { %v3893_v20 = vpack.c.bf16 %v1306_v16, %v1304_v30  ;;  %v1344_v16 = vld [vmem:[%s5775_s4 + $0x580] sm:$0xff] }
 0x271   : > { %3862 = vmatpush1.bf16.msra.mxu0 %v3861_v59  ;;  %v1308_v59 = vld [vmem:[%s5775_s4 + $0x460] sm:$0xff] }
 0x272   : > { %3864 = vmatprep.subr.bf16.mxu0 %v3863_v39  ;;  %v1310_v39 = vld [vmem:[%s5775_s4 + $0x470] sm:$0xff] }
 0x273   : > { %v3897_v24 = vpack.c.bf16 %v1310_v39, %v1308_v59  ;;  %v1348_v39 = vld [vmem:[%s5775_s4 + $0x5a0] sm:$0xff] }
 0x275   : > { %3866 = vmatpush1.bf16.msra.mxu0 %v3865_v0  ;;  %v1312_v0 = vld [vmem:[%s5775_s4 + $0x480] sm:$0xff] }
 0x276   : > { %3868 = vmatprep.subr.bf16.mxu0 %v3867_v61  ;;  %v1314_v61 = vld [vmem:[%s5775_s4 + $0x490] sm:$0xff] }
 0x277   : > { %v3901_v54 = vpack.c.bf16 %v1314_v61, %v1312_v0  ;;  %v1352_v61 = vld [vmem:[%s5775_s4 + $0x5c0] sm:$0xff] }
 0x278   : > { %v3941_v8 = vpack.c.bf16 %v1354_v7, %v1352_v61  ;;  %v4149_v7 = vld [vmem:[%s5776_s5 + $0x48] sm:$0xff]  }
 0x279   : > { %3870 = vmatpush1.bf16.msra.mxu0 %v3869_v44  ;;  %v1316_v44 = vld [vmem:[%s5775_s4 + $0x4a0] sm:$0xff] }
 0x27a   : > { %3872 = vmatprep.subr.bf16.mxu0 %v3871_v22  ;;  %v1318_v22 = vld [vmem:[%s5775_s4 + $0x4b0] sm:$0xff] }
 0x27b   : > { %v3905_v41 = vpack.c.bf16 %v1318_v22, %v1316_v44  ;;  %v1356_v44 = vld [vmem:[%s5775_s4 + $0x5e0] sm:$0x7] }
 0x27d   : > { %3874 = vmatpush1.bf16.msra.mxu0 %v3873_v28  ;;  %v1320_v28 = vld [vmem:[%s5775_s4 + $0x4c0] sm:$0xff] }
 0x27e   : > { %3876 = vmatprep.subr.bf16.mxu0 %v3875_v6  ;;  %v1322_v6 = vld [vmem:[%s5775_s4 + $0x4d0] sm:$0xff] }
 0x27f   : > { %v3909_v29 = vpack.c.bf16 %v1322_v6, %v1320_v28  ;;  %v3330_v28 = vld [vmem:[%s5777_s6 + $0x8] sm:$0xff] }
 0x281   : > { %3878 = vmatpush1.bf16.msra.mxu0 %v3877_v31  ;;  %v1324_v31 = vld [vmem:[%s5775_s4 + $0x4e0] sm:$0xff] }
 0x282   : > { %3880 = vmatprep.subr.bf16.mxu0 %v3879_v47  ;;  %v1326_v47 = vld [vmem:[%s5775_s4 + $0x4f0] sm:$0xff] }
 0x283   : > { %v3913_v53 = vpack.c.bf16 %v1326_v47, %v1324_v31 }
 0x285   : > { %3882 = vmatpush1.bf16.msra.mxu0 %v3881_v38  ;;  %v1328_v38 = vld [vmem:[%s5775_s4 + $0x500] sm:$0xff] }
 0x286   : > { %3884 = vmatprep.subr.bf16.mxu0 %v3883_v19  ;;  %v1330_v19 = vld [vmem:[%s5775_s4 + $0x510] sm:$0xff] }
 0x287   : > { %v3917_v50 = vpack.c.bf16 %v1330_v19, %v1328_v38 }
 0x2bd   : > { %v5233_v18 = vpop.permute.xlu0 %4136 }
 0x2be   : > { %v4139_v58 = vunpack.i.h.bf16 %v5233_v18  ;;  %v4138_v9 = vunpack.i.l.bf16 %v5233_v18 }
 0x2bf   : > { %v5258_v13 = vpop.permute.xlu1 %1146 }
 0x2c0   : > { %v1152_v25 = vsel %vm636_vm7, %v4134_v48, %v4138_v9  ;;  %v1153_v37 = vsel %vm636_vm7, %v4138_v9, %v4139_v58  ;;  %v3887_v48 = vpack.c.bf16 %v1303_v34, %v1301_v56  ;;  %v1333_v9 = vld [vmem:[%s5775_s4 + $0x528] sm:$0xff]  ;;  %v1332_v34 = vld [vmem:[%s5775_s4 + $0x520] sm:$0xff] }
 0x2c1   : > { %v1164_v10 = vmax.f32 %v4993_v5, %v1152_v25  ;;  %v1149_v33 = vpop.permute.xlu0 %1148  ;;  %v1165_v46 = vmax.f32 %v5047_v17, %v1153_v37  ;;  %v1307_v17 = vld [vmem:[%s5775_s4 + $0x458] sm:$0xff]  ;;  %v3919_v56 = vpack.c.bf16 %v1335_v52, %v1333_v9  ;;  %v1334_v25 = vld [vmem:[%s5775_s4 + $0x530] sm:$0xff]  ;;  %v1337_v37 = vld [vmem:[%s5775_s4 + $0x548] sm:$0xff] }
 0x2c2   : > { %v1155_v12 = vsel %vm636_vm7, %v5258_v13, %v1149_v33  ;;  %v3891_v42 = vpack.c.bf16 %v1307_v17, %v1305_v32  ;;  %v1342_v32 = vld [vmem:[%s5775_s4 + $0x570] sm:$0xff]  ;;  %v1345_v17 = vld [vmem:[%s5775_s4 + $0x588] sm:$0xff] }
 0x2c3   : > { %v1167_v5 = vmax.f32 %v1120_v57, %v1155_v12  ;;  %1504 = vmatprep.mubr.f32.mxu0 %v1165_v46  ;;  %v1339_v57 = vld [vmem:[%s5775_s4 + $0x558] sm:$0xff]  ;;  %v1336_v46 = vld [vmem:[%s5775_s4 + $0x540] sm:$0xff]  ;;  %v1341_v12 = vld [vmem:[%s5775_s4 + $0x568] sm:$0xff] }
 0x2c4   : > { %1505 = vmatmul.mubr.f32.vlgmr.msra.gmra.mrb[0].mxu0 %v1164_v10  ;;  %v3921_v10 = vpack.c.bf16 %v1334_v25, %v1332_v34  ;;  %v3923_v33 = vpack.c.bf16 %v1339_v57, %v1337_v37  ;;  %v4142_v9 = vld [vmem:[%s5776_s5 + $0x10] sm:$0xff]   ;;  %v4143_v25 = vld [vmem:[%s5776_s5 + $0x18] sm:$0xff]  }
 0x2c5   : > { %3886 = vmatpush1.bf16.msra.mxu0 %v3885_v1  ;;  %3572 = vmatprep.mubr.msk.f32.mxu0 %vm1358_vm13, %v1167_v5  ;;  %v1338_v1 = vld [vmem:[%s5775_s4 + $0x550] sm:$0xff]  ;;  %v1340_v5 = vld [vmem:[%s5775_s4 + $0x560] sm:$0xff]  ;;  %vm2151_vm13 = vcmask 908288  }
 0x2c6   : > { %3888 = vmatprep.subr.bf16.mxu0 %v3887_v48  ;;  %v1343_v48 = vld [vmem:[%s5775_s4 + $0x578] sm:$0xff]  ;;  %v3925_v21 = vpack.c.bf16 %v1338_v1, %v1336_v46  ;;  %v4144_v46 = vld [vmem:[%s5776_s5 + $0x20] sm:$0xff]  }
 0x2c7   : > { %v3927_v4 = vpack.c.bf16 %v1343_v48, %v1341_v12 }
 0x2c9   : > { %3890 = vmatpush1.bf16.msra.mxu0 %v3889_v36  ;;  %v1347_v36 = vld [vmem:[%s5775_s4 + $0x598] sm:$0xff] }
 0x2ca   : > { %3892 = vmatprep.subr.bf16.mxu0 %v3891_v42  ;;  %v3929_v42 = vpack.c.bf16 %v1342_v32, %v1340_v5  ;;  %v3931_v30 = vpack.c.bf16 %v1347_v36, %v1345_v17 }
 0x2cd   : > { %3894 = vmatpush1.bf16.msra.mxu0 %v3893_v20  ;;  %v1351_v20 = vld [vmem:[%s5775_s4 + $0x5b8] sm:$0xff] }
 0x2ce   : > { %3896 = vmatprep.subr.bf16.mxu0 %v3895_v55  ;;  %v3933_v55 = vpack.c.bf16 %v1346_v23, %v1344_v16  ;;  %v3935_v59 = vpack.c.bf16 %v1351_v20, %v1349_v15  ;;  %v4147_v20 = vld [vmem:[%s5776_s5 + $0x38] sm:$0xff]  }
 0x2d1   : > { %3898 = vmatpush1.bf16.msra.mxu0 %v3897_v24  ;;  %v1355_v24 = vld [vmem:[%s5775_s4 + $0x5d8] sm:$0xff] }
 0x2d2   : > { %3900 = vmatprep.subr.bf16.mxu0 %v3899_v60  ;;  %v3937_v60 = vpack.c.bf16 %v1350_v43, %v1348_v39  ;;  %v3939_v0 = vpack.c.bf16 %v1355_v24, %v1353_v35  ;;  %v4148_v35 = vld [vmem:[%s5776_s5 + $0x40] sm:$0xff]  }
 0x2d5   : > { %3902 = vmatpush1.bf16.msra.mxu0 %v3901_v54  ;;  %v1357_v54 = vld [vmem:[%s5775_s4 + $0x5e8] sm:$0x7] }
 0x2d6   : > { %3904 = vmatprep.subr.bf16.mxu0 %v3903_v62  ;;  %v1154_v62 = vsel %vm636_vm7, %v4139_v58, %v5258_v13 }
 0x2d7   : > { %v1166_v22 = vmax.f32 %v5049_v51, %v1154_v62  ;;  %v3329_v51 = vld [vmem:[%s5777_s6] sm:$0xff] }
 0x2d9   : > { %3906 = vmatpush1.bf16.msra.mxu0 %v3905_v41 }
 0x2da   : > { %3908 = vmatprep.subr.bf16.mxu0 %v3907_v49 }
 0x2dd   : > { %3910 = vmatpush1.bf16.msra.mxu0 %v3909_v29 }
 0x2de   : > { %3912 = vmatprep.subr.bf16.mxu0 %v3911_v63  ;;  %v4140_v63 = vld [vmem:[%s5776_s5 + $0x8] sm:$0xff]  }
 0x2e1   : > { %3914 = vmatpush1.bf16.msra.mxu0 %v3913_v53 }
 0x2e2   : > { %3916 = vmatprep.subr.bf16.mxu0 %v3915_v14 }
 0x2e5   : > { %3918 = vmatpush1.bf16.msra.mxu0 %v3917_v50 }
 0x2e6   : > { %3920 = vmatprep.subr.bf16.mxu0 %v3919_v56 }
 0x2e9   : > { %3922 = vmatpush1.bf16.msra.mxu0 %v3921_v10 }
 0x2ea   : > { %3924 = vmatprep.subr.bf16.mxu0 %v3923_v33 }
 0x2ed   : > { %3926 = vmatpush1.bf16.msra.mxu0 %v3925_v21 }
 0x2ee   : > { %3928 = vmatprep.subr.bf16.mxu0 %v3927_v4  ;;  %v4145_v4 = vld [vmem:[%s5776_s5 + $0x28] sm:$0xff]  }
 0x2f1   : > { %3930 = vmatpush1.bf16.msra.mxu0 %v3929_v42  ;;  %v4146_v42 = vld [vmem:[%s5776_s5 + $0x30] sm:$0xff]  }
 0x2f2   : > { %3932 = vmatprep.subr.bf16.mxu0 %v3931_v30 }
 0x2f5   : > { %3934 = vmatpush1.bf16.msra.mxu0 %v3933_v55 }
 0x2f6   : > { %3936 = vmatprep.subr.bf16.mxu0 %v3935_v59 }
 0x2f9   : > { %3938 = vmatpush1.bf16.msra.mxu0 %v3937_v60 }
 0x2fa   : > { %3940 = vmatprep.subr.bf16.mxu0 %v3939_v0 }
 0x2fd   : > { %3942 = vmatpush1.bf16.msra.mxu0 %v3941_v8 }
 0x2fe   : > { %3570 = vmatprep.subr.msk.mxu0 %vm1362_vm14, %v1357_v54 }
 0x301   : > { %3571 = vmatpush1.msk.msra.mxu0 %vm1362_vm14, %v1356_v44 }
 0x302   : > { %1576 = vmatmul.mubr.f32.vlgmr.msra.gmra.mrb[0].mxu0 %v1166_v22  ;;  %v4150_v22 = vld [vmem:[%s5776_s5 + $0x50] sm:$0xff]  }
 0x3d5   : > { %v1577_v40 = vpop.f32.mrb[0].mxu0 }
 0x3d6   : > { %1584 = vst [vmem:[#allocation2] sm:$0x3f] %v1577_v40  ;;  %v1579_v18 = vpop.f32.mrb[1].mxu0 }
 0x3d7   : > { %1586 = vst.msk [vmem:[#allocation2 + $0x8] sm:$0x3f] %vm1585_vm15, %v1579_v18  ;;  %vm2221_vm15 = vcmask 900096  }
 0x3dd   : > { %v1587_v58 = vld [vmem:[#allocation2] sm:$0x3f] }
 0x3de   : > { %v5438_v13 = vpack.c.bf16 %v1587_v58, %v1587_v58  ;;  %v1588_v41 = vld [vmem:[#allocation2 + $0x8] sm:$0x3f] }
 0x3df   : > { %v5440_v49 = vpack.c.bf16 %v1588_v41, %v1588_v41 }
 0x3e0   : > { %1603 = vrot.lane.b32.xlu1 %v5438_v13, %s4179_s20  ;;  %v1671_v31 = vsel %vm1362_vm14, %v5438_v13, 0 }
 0x3e1   : > { %1605 = vrot.lane.b32.xlu0 %v5440_v49, %s4179_s20 }
 0x3e4   : > { %1727 = vrot.lane.b32.xlu1 %v5438_v13, %s4180_s21 }
 0x3e5   : > { %1729 = vrot.lane.b32.xlu0 %v5440_v49, %s4180_s21  ;;  %s4192_s21 = smov 112  }
 0x3e8   : > { %1797 = vrot.lane.b32.xlu1 %v5438_v13, %s4188_s16 }
 0x3e9   : > { %1799 = vrot.lane.b32.xlu0 %v5440_v49, %s4188_s16 }
 0x3ec   : > { %1867 = vrot.lane.b32.xlu1 %v5438_v13, %s4189_s17 }
 0x3ed   : > { %1869 = vrot.lane.b32.xlu0 %v5440_v49, %s4189_s17 }
 0x3f0   : > { %1937 = vrot.lane.b32.xlu1 %v5438_v13, %s4190_s18 }
 0x3f1   : > { %1939 = vrot.lane.b32.xlu0 %v5440_v49, %s4190_s18 }
 0x3f4   : > { %2007 = vrot.lane.b32.xlu1 %v5438_v13, %s4191_s19 }
 0x3f5   : > { %2009 = vrot.lane.b32.xlu0 %v5440_v49, %s4191_s19 }
 0x3f8   : > { %2077 = vrot.lane.b32.xlu1 %v5438_v13, %s4192_s21 }
 0x3f9   : > { %2079 = vrot.lane.b32.xlu0 %v5440_v49, %s4192_s21 }
 0x3fc   : > { %2147 = vrot.lane.b32.xlu1 %v5438_v13, %s4193_s30 }
 0x3fd   : > { %2149 = vrot.lane.b32.xlu0 %v5440_v49, %s4193_s30 }
 0x400   : > { %2217 = vrot.lane.b32.xlu1 %v5438_v13, %s4194_s9 }
 0x401   : > { %2219 = vrot.lane.b32.xlu0 %v5440_v49, %s4194_s9 }
 0x404   : > { %2287 = vrot.lane.b32.xlu1 %v5438_v13, %s4181_s22 }
 0x405   : > { %2289 = vrot.lane.b32.xlu0 %v5440_v49, %s4181_s22  ;;  %s4197_s22 = smov 86  }
 0x408   : > { %2357 = vrot.lane.b32.xlu1 %v5438_v13, %s4182_s23 }
 0x409   : > { %2359 = vrot.lane.b32.xlu0 %v5440_v49, %s4182_s23  ;;  %s4198_s23 = smov 85  }
 0x40c   : > { %2427 = vrot.lane.b32.xlu1 %v5438_v13, %s4183_s24 }
 0x40d   : > { %2429 = vrot.lane.b32.xlu0 %v5440_v49, %s4183_s24  ;;  %s4199_s24 = smov 84  }
 0x410   : > { %2497 = vrot.lane.b32.xlu1 %v5438_v13, %s4195_s10 }
 0x411   : > { %2499 = vrot.lane.b32.xlu0 %v5440_v49, %s4195_s10 }
 0x414   : > { %2567 = vrot.lane.b32.xlu1 %v5438_v13, %s4196_s11 }
 0x415   : > { %2569 = vrot.lane.b32.xlu0 %v5440_v49, %s4196_s11 }
 0x418   : > { %2637 = vrot.lane.b32.xlu1 %v5438_v13, %s4197_s22 }
 0x419   : > { %2639 = vrot.lane.b32.xlu0 %v5440_v49, %s4197_s22 }
 0x41c   : > { %2707 = vrot.lane.b32.xlu1 %v5438_v13, %s4198_s23 }
 0x41d   : > { %2709 = vrot.lane.b32.xlu0 %v5440_v49, %s4198_s23 }
 0x420   : > { %2777 = vrot.lane.b32.xlu1 %v5438_v13, %s4199_s24 }
 0x421   : > { %2779 = vrot.lane.b32.xlu0 %v5440_v49, %s4199_s24  ;;  %s3701_s24 = sshll.u32 %s5781_s28, 4 }
 0x424   : > { %2847 = vrot.lane.b32.xlu1 %v5438_v13, %s4200_s12 }
 0x425   : > { %2849 = vrot.lane.b32.xlu0 %v5440_v49, %s4200_s12 }
 0x428   : > { %2917 = vrot.lane.b32.xlu1 %v5438_v13, %s4201_s13 }
 0x429   : > { %2919 = vrot.lane.b32.xlu0 %v5440_v49, %s4201_s13 }
 0x42c   : > { %2987 = vrot.lane.b32.xlu1 %v5438_v13, %s4184_s25 }
 0x42d   : > { %2989 = vrot.lane.b32.xlu0 %v5440_v49, %s4184_s25 }
 0x430   : > { %3057 = vrot.lane.b32.xlu1 %v5438_v13, %s4185_s26 }
 0x431   : > { %3059 = vrot.lane.b32.xlu0 %v5440_v49, %s4185_s26 }
 0x434   : > { %3127 = vrot.lane.b32.xlu1 %v5438_v13, %s4186_s29 }
 0x435   : > { %3129 = vrot.lane.b32.xlu0 %v5440_v49, %s4186_s29 }
 0x438   : > { %3197 = vrot.lane.b32.xlu1 %v5438_v13, %s4202_s14 }
 0x439   : > { %3199 = vrot.lane.b32.xlu0 %v5440_v49, %s4202_s14 }
 0x43c   : > { %3267 = vrot.lane.b32.xlu1 %v5438_v13, %s4203_s15  ;;  %v4151_v13 = vld [vmem:[%s5776_s5 + $0x58] sm:$0xff]  }
 0x43d   : > { %3269 = vrot.lane.b32.xlu0 %v5440_v49, %s4203_s15 }
 0x440   : > { %3333 = vperm.xlu1 %4119, %v3329_v51  }
 0x441   : > { %3338 = vperm.xlu0 %4118, %v3330_v28  }
 0x452   : > { %v1604_v6 = vpop.permute.xlu1 %1603 }
 0x453   : > { %v1606_v26 = vpop.permute.xlu0 %1605 }
 0x454   : > { %3576 = vmatprep.subr.msk.bf16.mxu1 %vm1362_vm14, %v1606_v26  ;;  %v1608_v3 = vsel %vm436_vm5, %v1604_v6, %v1606_v26  ;;  %v4152_v6 = vld [vmem:[%s5776_s5 + $0x60] sm:$0xff]  }
 0x455   : > { %v1614_v29 = vsel %vm1362_vm14, %v1608_v3, 0 }
 0x456   : > { %1620 = vmatpush1.bf16.msra.mxu1 %v1614_v29  ;;  %v1728_v27 = vpop.permute.xlu1 %1727 }
 0x457   : > { %3579 = vmatprep.subr.msk.bf16.mxu1 %vm1362_vm14, %v5440_v49  ;;  %v1730_v47 = vpop.permute.xlu0 %1729 }
 0x458   : > { %v1732_v53 = vsel %vm536_vm6, %v1728_v27, %v1730_v47  ;;  %vm2081_vm6 = vcmask 916480  }
 0x459   : > { %3577 = vmatmul.mubr.msk.bf16.vlgmr.msra.gmra.mrb[0].mxu1 %vm1609_vm0, %v4140_v63  ;;  %v1737_v14 = vsel %vm1362_vm14, %v1732_v53, 0 }
 0x45a   : > { %1677 = vmatpush1.bf16.msra.mxu1 %v1671_v31  ;;  %1708 = vmatprep.mubr.bf16.mxu1 %v4173_v2  ;;  %v1798_v19 = vpop.permute.xlu1 %1797  ;;  %v4153_v31 = vld [vmem:[%s5776_s5 + $0x68] sm:$0xff]  }
 0x45b   : > { %3584 = vmatprep.subr.msk.bf16.mxu1 %vm1362_vm14, %v1730_v47  ;;  %v1800_v38 = vpop.permute.xlu0 %1799 }
 0x45c   : > { %v1802_v52 = vsel %vm1801_vm1, %v1798_v19, %v1800_v38  ;;  %vm2711_vm1 = vcmask 695296  }
 0x45d   : > { %v1807_v50 = vsel %vm1362_vm14, %v1802_v52, 0 }
 0x45e   : > { %v1868_v34 = vpop.permute.xlu1 %1867 }
 0x45f   : > { %v1870_v56 = vpop.permute.xlu0 %1869 }
 0x460   : > { %v1872_v37 = vsel %vm1871_vm2, %v1868_v34, %v1870_v56  ;;  %vm2781_vm2 = vcmask 687104  }
 0x461   : > { %v1877_v57 = vsel %vm1362_vm14, %v1872_v37, 0 }
 0x462   : > { %v1938_v33 = vpop.permute.xlu1 %1937 }
 0x463   : > { %v1940_v10 = vpop.permute.xlu0 %1939 }
 0x464   : > { %v1942_v1 = vsel %vm1941_vm3, %v1938_v33, %v1940_v10 }
 0x465   : > { %3580 = vmatmul.mubr.msk.bf16.vlgmr.msra.gmra.mrb[0].mxu1 %vm1609_vm0, %v4141_v11  ;;  %v1947_v12 = vsel %vm1362_vm14, %v1942_v1, 0 }
 0x466   : > { %1743 = vmatpush1.bf16.msra.mxu1 %v1737_v14  ;;  %1774 = vmatprep.mubr.bf16.mxu1 %v4173_v2  ;;  %v2008_v21 = vpop.permute.xlu1 %2007  ;;  %v4154_v14 = vld [vmem:[%s5776_s5 + $0x70] sm:$0xff]  }
 0x467   : > { %3589 = vmatprep.subr.msk.bf16.mxu1 %vm1362_vm14, %v1800_v38  ;;  %v2010_v48 = vpop.permute.xlu0 %2009 }
 0x468   : > { %v2012_v5 = vsel %vm2011_vm4, %v2008_v21, %v2010_v48  ;;  %vm2851_vm4 = vcmask 678912  }
 0x469   : > { %v2017_v32 = vsel %vm1362_vm14, %v2012_v5, 0 }
 0x46a   : > { %v2078_v36 = vpop.permute.xlu1 %2077 }
 0x46b   : > { %v2080_v17 = vpop.permute.xlu0 %2079 }
 0x46c   : > { %v2082_v30 = vsel %vm2081_vm6, %v2078_v36, %v2080_v17  ;;  %vm2921_vm6 = vcmask 670720  }
 0x46d   : > { %v2087_v16 = vsel %vm1362_vm14, %v2082_v30, 0 }
 0x46e   : > { %v2148_v15 = vpop.permute.xlu1 %2147 }
 0x46f   : > { %v2150_v23 = vpop.permute.xlu0 %2149 }
 0x470   : > { %v2152_v55 = vsel %vm2151_vm13, %v2148_v15, %v2150_v23  ;;  %vm3410_vm13 = vcmask 990208  }
 0x471   : > { %3585 = vmatmul.mubr.msk.bf16.vlgmr.msra.gmra.mrb[0].mxu1 %vm1609_vm0, %v4142_v9  ;;  %v2157_v59 = vsel %vm1362_vm14, %v2152_v55, 0 }
 0x472   : > { %1813 = vmatpush1.bf16.msra.mxu1 %v1807_v50  ;;  %1844 = vmatprep.mubr.bf16.mxu1 %v4173_v2  ;;  %v2218_v43 = vpop.permute.xlu1 %2217  ;;  %v4155_v50 = vld [vmem:[%s5776_s5 + $0x78] sm:$0xff]  }
 0x473   : > { %3594 = vmatprep.subr.msk.bf16.mxu1 %vm1362_vm14, %v1870_v56  ;;  %v2220_v39 = vpop.permute.xlu0 %2219 }
 0x474   : > { %v2222_v24 = vsel %vm2221_vm15, %v2218_v43, %v2220_v39 }
 0x475   : > { %v2227_v60 = vsel %vm1362_vm14, %v2222_v24, 0 }
 0x476   : > { %v2288_v61 = vpop.permute.xlu1 %2287 }
 0x477   : > { %v2290_v0 = vpop.permute.xlu0 %2289 }
 0x478   : > { %v2292_v8 = vsel %vm636_vm7, %v2288_v61, %v2290_v0  ;;  %vm2501_vm7 = vcmask 793600  }
 0x479   : > { %v2297_v54 = vsel %vm1362_vm14, %v2292_v8, 0 }
 0x47a   : > { %v2358_v44 = vpop.permute.xlu1 %2357 }
 0x47b   : > { %v2360_v62 = vpop.permute.xlu0 %2359 }
 0x47c   : > { %v2362_v45 = vsel %vm692_vm8, %v2358_v44, %v2360_v62  ;;  %vm2571_vm8 = vcmask 785408  }
 0x47d   : > { %3590 = vmatmul.mubr.msk.bf16.vlgmr.msra.gmra.mrb[0].mxu1 %vm1609_vm0, %v4143_v25  ;;  %v2367_v40 = vsel %vm1362_vm14, %v2362_v45, 0 }
 0x47e   : > { %1883 = vmatpush1.bf16.msra.mxu1 %v1877_v57  ;;  %1914 = vmatprep.mubr.bf16.mxu1 %v4173_v2  ;;  %v2428_v58 = vpop.permute.xlu1 %2427  ;;  %v4156_v57 = vld [vmem:[%s5776_s5 + $0x80] sm:$0xff]  }
 0x47f   : > { %3599 = vmatprep.subr.msk.bf16.mxu1 %vm1362_vm14, %v1940_v10  ;;  %v2430_v18 = vpop.permute.xlu0 %2429 }
 0x480   : > { %v2432_v41 = vsel %vm791_vm9, %v2428_v58, %v2430_v18  ;;  %vm2641_vm9 = vcmask 703488  }
 0x481   : > { %v2437_v49 = vsel %vm1362_vm14, %v2432_v41, 0 }
 0x482   : > { %v2498_v28 = vpop.permute.xlu1 %2497 }
 0x483   : > { %v2500_v51 = vpop.permute.xlu0 %2499 }
 0x484   : > { %v2502_v26 = vsel %vm2501_vm7, %v2498_v28, %v2500_v51  ;;  %v3395_v28 = vld [vmem:[%s5778_s7 + $0x8] sm:$0xff] }
 0x485   : > { %v2507_v3 = vsel %vm1362_vm14, %v2502_v26, 0 }
 0x486   : > { %v2568_v63 = vpop.permute.xlu1 %2567 }
 0x487   : > { %v2570_v29 = vpop.permute.xlu0 %2569 }
 0x488   : > { %v2572_v47 = vsel %vm2571_vm8, %v2568_v63, %v2570_v29 }
 0x489   : > { %3595 = vmatmul.mubr.msk.bf16.vlgmr.msra.gmra.mrb[0].mxu1 %vm1609_vm0, %v4144_v46  ;;  %v2577_v27 = vsel %vm1362_vm14, %v2572_v47, 0 }
 0x48a   : > { %1953 = vmatpush1.bf16.msra.mxu1 %v1947_v12  ;;  %1984 = vmatprep.mubr.bf16.mxu1 %v4173_v2  ;;  %v2638_v53 = vpop.permute.xlu1 %2637  ;;  %v4157_v12 = vld [vmem:[%s5776_s5 + $0x88] sm:$0xff]  }
 0x48b   : > { %3604 = vmatprep.subr.msk.bf16.mxu1 %vm1362_vm14, %v2010_v48  ;;  %v2640_v11 = vpop.permute.xlu0 %2639 }
 0x48c   : > { %v2642_v38 = vsel %vm2641_vm9, %v2638_v53, %v2640_v11  ;;  %v3399_v53 = vld [vmem:[%s5778_s7 + $0x28] sm:$0xff] }
 0x48d   : > { %v2647_v19 = vsel %vm1362_vm14, %v2642_v38, 0 }
 0x48e   : > { %v2708_v52 = vpop.permute.xlu1 %2707 }
 0x48f   : > { %v2710_v9 = vpop.permute.xlu0 %2709 }
 0x490   : > { %v2712_v56 = vsel %vm2711_vm1, %v2708_v52, %v2710_v9 }
 0x491   : > { %v2717_v34 = vsel %vm1362_vm14, %v2712_v56, 0  ;;  %v3400_v56 = vld [vmem:[%s5778_s7 + $0x30] sm:$0xff] }
 0x492   : > { %v2778_v37 = vpop.permute.xlu1 %2777 }
 0x493   : > { %v2780_v25 = vpop.permute.xlu0 %2779 }
 0x494   : > { %v2782_v10 = vsel %vm2781_vm2, %v2778_v37, %v2780_v25 }
 0x495   : > { %3600 = vmatmul.mubr.msk.bf16.vlgmr.msra.gmra.mrb[0].mxu1 %vm1609_vm0, %v4145_v4  ;;  %v2787_v33 = vsel %vm1362_vm14, %v2782_v10, 0  ;;  %v3402_v10 = vld [vmem:[%s5778_s7 + $0x40] sm:$0xff] }
 0x496   : > { %2023 = vmatpush1.bf16.msra.mxu1 %v2017_v32  ;;  %2054 = vmatprep.mubr.bf16.mxu1 %v4173_v2  ;;  %v2848_v1 = vpop.permute.xlu1 %2847  ;;  %v4158_v32 = vld [vmem:[%s5776_s5 + $0x90] sm:$0xff]  }
 0x497   : > { %3609 = vmatprep.subr.msk.bf16.mxu1 %vm1362_vm14, %v2080_v17  ;;  %v2850_v46 = vpop.permute.xlu0 %2849 }
 0x498   : > { %v2852_v48 = vsel %vm2851_vm4, %v2848_v1, %v2850_v46  ;;  %v3404_v1 = vld [vmem:[%s5778_s7 + $0x50] sm:$0xff] }
 0x499   : > { %v2857_v21 = vsel %vm1362_vm14, %v2852_v48, 0 }
 0x49a   : > { %v2918_v5 = vpop.permute.xlu1 %2917 }
 0x49b   : > { %v2920_v4 = vpop.permute.xlu0 %2919 }
 0x49c   : > { %v2922_v17 = vsel %vm2921_vm6, %v2918_v5, %v2920_v4 }
 0x49d   : > { %v2927_v36 = vsel %vm1362_vm14, %v2922_v17, 0  ;;  %v3409_v17 = vld [vmem:[%s5778_s7 + $0x78] sm:$0x1] }
 0x49e   : > { %v2988_v30 = vpop.permute.xlu1 %2987 }
 0x4a1   : > { %3605 = vmatmul.mubr.msk.bf16.vlgmr.msra.gmra.mrb[0].mxu1 %vm1609_vm0, %v4146_v42  ;;  %v2990_v42 = vpop.permute.xlu0 %2989 }
 0x4a2   : > { %2093 = vmatpush1.bf16.msra.mxu1 %v2087_v16  ;;  %2124 = vmatprep.mubr.bf16.mxu1 %v4173_v2  ;;  %v4159_v16 = vld [vmem:[%s5776_s5 + $0x98] sm:$0xff]   ;;  %v3058_v55 = vpop.permute.xlu1 %3057 }
 0x4a3   : > { %3614 = vmatprep.subr.msk.bf16.mxu1 %vm1362_vm14, %v2150_v23  ;;  %v2992_v23 = vsel %vm890_vm10, %v2988_v30, %v2990_v42  ;;  %vm3201_vm10 = vcmask 564224  }
 0x4a4   : > { %v2997_v15 = vsel %vm1362_vm14, %v2992_v23, 0 }
 0x4a6   : > { %v3128_v24 = vpop.permute.xlu1 %3127 }
 0x4aa   : > { %v3198_v8 = vpop.permute.xlu1 %3197 }
 0x4ad   : > { %3610 = vmatmul.mubr.msk.bf16.vlgmr.msra.gmra.mrb[0].mxu1 %vm1609_vm0, %v4147_v20  ;;  %v3060_v20 = vpop.permute.xlu0 %3059 }
 0x4ae   : > { %2163 = vmatpush1.bf16.msra.mxu1 %v2157_v59  ;;  %2194 = vmatprep.mubr.bf16.mxu1 %v4173_v2  ;;  %v4160_v59 = vld [vmem:[%s5776_s5 + $0xa0] sm:$0xff]   ;;  %v3268_v45 = vpop.permute.xlu1 %3267 }
 0x4af   : > { %3619 = vmatprep.subr.msk.bf16.mxu1 %vm1362_vm14, %v2220_v39  ;;  %v3062_v39 = vsel %vm946_vm11, %v3058_v55, %v3060_v20  ;;  %vm3271_vm11 = vcmask 556032  }
 0x4b0   : > { %v3067_v43 = vsel %vm1362_vm14, %v3062_v39, 0 }
 0x4b9   : > { %3615 = vmatmul.mubr.msk.bf16.vlgmr.msra.gmra.mrb[0].mxu1 %vm1609_vm0, %v4148_v35  ;;  %v3130_v35 = vpop.permute.xlu0 %3129 }
 0x4ba   : > { %2233 = vmatpush1.bf16.msra.mxu1 %v2227_v60  ;;  %2264 = vmatprep.mubr.bf16.mxu1 %v4173_v2  ;;  %v4161_v60 = vld [vmem:[%s5776_s5 + $0xa8] sm:$0xff]  }
 0x4bb   : > { %3624 = vmatprep.subr.msk.bf16.mxu1 %vm1362_vm14, %v2290_v0  ;;  %v3132_v0 = vsel %vm1045_vm12, %v3128_v24, %v3130_v35  ;;  %vm3417_vm12 = vcmask 1040384  }
 0x4bc   : > { %v3137_v61 = vsel %vm1362_vm14, %v3132_v0, 0 }
 0x4bf   : > { %v3334_v41 = vpop.permute.xlu1 %3333 }
 0x4c5   : > { %3620 = vmatmul.mubr.msk.bf16.vlgmr.msra.gmra.mrb[0].mxu1 %vm1609_vm0, %v4149_v7  ;;  %v3200_v7 = vpop.permute.xlu0 %3199 }
 0x4c6   : > { %2303 = vmatpush1.bf16.msra.mxu1 %v2297_v54  ;;  %2334 = vmatprep.mubr.bf16.mxu1 %v4173_v2  ;;  %v4162_v54 = vld [vmem:[%s5776_s5 + $0xb0] sm:$0xff]  }
 0x4c7   : > { %3629 = vmatprep.subr.msk.bf16.mxu1 %vm1362_vm14, %v2360_v62  ;;  %v3202_v62 = vsel %vm3201_vm10, %v3198_v8, %v3200_v7 }
 0x4c8   : > { %v3207_v44 = vsel %vm1362_vm14, %v3202_v62, 0 }
 0x4d1   : > { %3625 = vmatmul.mubr.msk.bf16.vlgmr.msra.gmra.mrb[0].mxu1 %vm1609_vm0, %v4150_v22  ;;  %v3270_v22 = vpop.permute.xlu0 %3269 }
 0x4d2   : > { %2373 = vmatpush1.bf16.msra.mxu1 %v2367_v40  ;;  %2404 = vmatprep.mubr.bf16.mxu1 %v4173_v2  ;;  %v4163_v40 = vld [vmem:[%s5776_s5 + $0xb8] sm:$0xff]  }
 0x4d3   : > { %3634 = vmatprep.subr.msk.bf16.mxu1 %vm1362_vm14, %v2430_v18  ;;  %v3272_v18 = vsel %vm3271_vm11, %v3268_v45, %v3270_v22 }
 0x4d4   : > { %v3277_v58 = vsel %vm1362_vm14, %v3272_v18, 0 }
 0x4d5   : > { %v3339_v63 = vpop.permute.xlu0 %3338 }
 0x4dd   : > { %3630 = vmatmul.mubr.msk.bf16.vlgmr.msra.gmra.mrb[0].mxu1 %vm1609_vm0, %v4151_v13  ;;  %v4164_v13 = vld [vmem:[%s5776_s5 + $0xc0] sm:$0xff]  }
 0x4de   : > { %2443 = vmatpush1.bf16.msra.mxu1 %v2437_v49  ;;  %2474 = vmatprep.mubr.bf16.mxu1 %v4173_v2 }
 0x4df   : > { %3639 = vmatprep.subr.msk.bf16.mxu1 %vm1362_vm14, %v2500_v51  ;;  %v3394_v51 = vld [vmem:[%s5778_s7] sm:$0xff] }
 0x4e9   : > { %3635 = vmatmul.mubr.msk.bf16.vlgmr.msra.gmra.mrb[0].mxu1 %vm1609_vm0, %v4152_v6 }
 0x4ea   : > { %2513 = vmatpush1.bf16.msra.mxu1 %v2507_v3  ;;  %2544 = vmatprep.mubr.bf16.mxu1 %v4173_v2  ;;  %v3943_v3 = vpack.c.bf16 %v3395_v28, %v3394_v51 }
 0x4eb   : > { %3644 = vmatprep.subr.msk.bf16.mxu1 %vm1362_vm14, %v2570_v29  ;;  %v3397_v29 = vld [vmem:[%s5778_s7 + $0x18] sm:$0xff] }
 0x4ec   : > { %3944 = vmatprep.subr.bf16.mxu0 %v3943_v3 }
 0x4ed   : > { %3946 = vmatpush3.bf16.msra.mxu0 %v3943_v3 }
 0x4f5   : > { %3640 = vmatmul.mubr.msk.bf16.vlgmr.msra.gmra.mrb[0].mxu1 %vm1609_vm0, %v4153_v31 }
 0x4f6   : > { %2583 = vmatpush1.bf16.msra.mxu1 %v2577_v27  ;;  %2614 = vmatprep.mubr.bf16.mxu1 %v4173_v2 }
 0x4f7   : > { %3649 = vmatprep.subr.msk.bf16.mxu1 %vm1362_vm14, %v2640_v11  ;;  %v3398_v11 = vld [vmem:[%s5778_s7 + $0x20] sm:$0xff] }
 0x501   : > { %3645 = vmatmul.mubr.msk.bf16.vlgmr.msra.gmra.mrb[0].mxu1 %vm1609_vm0, %v4154_v14 }
 0x502   : > { %2653 = vmatpush1.bf16.msra.mxu1 %v2647_v19  ;;  %2684 = vmatprep.mubr.bf16.mxu1 %v4173_v2 }
 0x503   : > { %3654 = vmatprep.subr.msk.bf16.mxu1 %vm1362_vm14, %v2710_v9 }
 0x50d   : > { %3650 = vmatmul.mubr.msk.bf16.vlgmr.msra.gmra.mrb[0].mxu1 %vm1609_vm0, %v4155_v50  ;;  %v3951_v50 = vpack.c.bf16 %v3399_v53, %v3398_v11 }
 0x50e   : > { %2723 = vmatpush1.bf16.msra.mxu1 %v2717_v34  ;;  %2754 = vmatprep.mubr.bf16.mxu1 %v4173_v2  ;;  %v3401_v34 = vld [vmem:[%s5778_s7 + $0x38] sm:$0xff] }
 0x50f   : > { %3659 = vmatprep.subr.msk.bf16.mxu1 %vm1362_vm14, %v2780_v25 }
 0x519   : > { %3655 = vmatmul.mubr.msk.bf16.vlgmr.msra.gmra.mrb[0].mxu1 %vm1609_vm0, %v4156_v57  ;;  %v3955_v57 = vpack.c.bf16 %v3401_v34, %v3400_v56 }
 0x51a   : > { %2793 = vmatpush1.bf16.msra.mxu1 %v2787_v33  ;;  %2824 = vmatprep.mubr.bf16.mxu1 %v4173_v2  ;;  %v3403_v33 = vld [vmem:[%s5778_s7 + $0x48] sm:$0xff] }
 0x51b   : > { %3664 = vmatprep.subr.msk.bf16.mxu1 %vm1362_vm14, %v2850_v46  ;;  %v3959_v46 = vpack.c.bf16 %v3403_v33, %v3402_v10 }
 0x525   : > { %3660 = vmatmul.mubr.msk.bf16.vlgmr.msra.gmra.mrb[0].mxu1 %vm1609_vm0, %v4157_v12  ;;  %v3405_v12 = vld [vmem:[%s5778_s7 + $0x58] sm:$0xff] }
 0x526   : > { %2863 = vmatpush1.bf16.msra.mxu1 %v2857_v21  ;;  %2894 = vmatprep.mubr.bf16.mxu1 %v4173_v2  ;;  %v3963_v48 = vpack.c.bf16 %v3405_v12, %v3404_v1  ;;  %v3406_v21 = vld [vmem:[%s5778_s7 + $0x60] sm:$0xff] }
 0x527   : > { %3669 = vmatprep.subr.msk.bf16.mxu1 %vm1362_vm14, %v2920_v4  ;;  %v3407_v4 = vld [vmem:[%s5778_s7 + $0x68] sm:$0xff] }
 0x528   : > { %v3967_v5 = vpack.c.bf16 %v3407_v4, %v3406_v21 }
 0x531   : > { %3665 = vmatmul.mubr.msk.bf16.vlgmr.msra.gmra.mrb[0].mxu1 %vm1609_vm0, %v4158_v32  ;;  %v3408_v32 = vld [vmem:[%s5778_s7 + $0x70] sm:$0xff] }
 0x532   : > { %2933 = vmatpush1.bf16.msra.mxu1 %v2927_v36  ;;  %2964 = vmatprep.mubr.bf16.mxu1 %v4173_v2  ;;  %v3971_v36 = vpack.c.bf16 %v3409_v17, %v3408_v32 }
 0x533   : > { %3674 = vmatprep.subr.msk.bf16.mxu1 %vm1362_vm14, %v2990_v42 }
 0x53d   : > { %3670 = vmatmul.mubr.msk.bf16.vlgmr.msra.gmra.mrb[0].mxu1 %vm1609_vm0, %v4159_v16 }
 0x53e   : > { %3003 = vmatpush1.bf16.msra.mxu1 %v2997_v15  ;;  %3034 = vmatprep.mubr.bf16.mxu1 %v4173_v2 }
 0x53f   : > { %3679 = vmatprep.subr.msk.bf16.mxu1 %vm1362_vm14, %v3060_v20 }
 0x549   : > { %3675 = vmatmul.mubr.msk.bf16.vlgmr.msra.gmra.mrb[0].mxu1 %vm1609_vm0, %v4160_v59 }
 0x54a   : > { %3073 = vmatpush1.bf16.msra.mxu1 %v3067_v43  ;;  %3104 = vmatprep.mubr.bf16.mxu1 %v4173_v2 }
 0x54b   : > { %3684 = vmatprep.subr.msk.bf16.mxu1 %vm1362_vm14, %v3130_v35 }
 0x555   : > { %3680 = vmatmul.mubr.msk.bf16.vlgmr.msra.gmra.mrb[0].mxu1 %vm1609_vm0, %v4161_v60 }
 0x556   : > { %3143 = vmatpush1.bf16.msra.mxu1 %v3137_v61  ;;  %3174 = vmatprep.mubr.bf16.mxu1 %v4173_v2 }
 0x557   : > { %3689 = vmatprep.subr.msk.bf16.mxu1 %vm1362_vm14, %v3200_v7 }
 0x561   : > { %3685 = vmatmul.mubr.msk.bf16.vlgmr.msra.gmra.mrb[0].mxu1 %vm1609_vm0, %v4162_v54 }
 0x562   : > { %3213 = vmatpush1.bf16.msra.mxu1 %v3207_v44  ;;  %3244 = vmatprep.mubr.bf16.mxu1 %v4173_v2 }
 0x563   : > { %3694 = vmatprep.subr.msk.bf16.mxu1 %vm1362_vm14, %v3270_v22  ;;  %vm4204_vm14 = vmmov 1  }
 0x56d   : > { %3690 = vmatmul.mubr.msk.bf16.vlgmr.msra.gmra.mrb[0].mxu1 %vm1609_vm0, %v4163_v40 }
 0x56e   : > { %3283 = vmatpush1.bf16.msra.mxu1 %v3277_v58  ;;  %3314 = vmatprep.mubr.bf16.mxu1 %v4173_v2  ;;  %v3396_v2 = vld [vmem:[%s5778_s7 + $0x10] sm:$0xff] }
 0x56f   : > { %v3947_v27 = vpack.c.bf16 %v3397_v29, %v3396_v2 }
 0x571   : > { %3948 = vmatprep.subr.bf16.mxu0 %v3947_v27 }
 0x572   : > { %3950 = vmatpush3.bf16.msra.mxu0 %v3947_v27 }
 0x573   : > { %3952 = vmatprep.subr.bf16.mxu0 %v3951_v50 }
 0x576   : > { %3954 = vmatpush3.bf16.msra.mxu0 %v3951_v50 }
 0x577   : > { %3956 = vmatprep.subr.bf16.mxu0 %v3955_v57 }
 0x579   : > { %3695 = vmatmul.mubr.msk.bf16.vlgmr.msra.gmra.mrb[0].mxu1 %vm1609_vm0, %v4164_v13  ;;  %vm3972_vm0 = vmpackc.low %vm3417_vm12, %vm4204_vm14 }
 0x57a   : > { %3958 = vmatpush3.bf16.msra.mxu0 %v3955_v57 }
 0x57b   : > { %3960 = vmatprep.subr.bf16.mxu0 %v3959_v46 }
 0x57e   : > { %3962 = vmatpush3.bf16.msra.mxu0 %v3959_v46 }
 0x57f   : > { %3964 = vmatprep.subr.bf16.mxu0 %v3963_v48 }
 0x582   : > { %3966 = vmatpush3.bf16.msra.mxu0 %v3963_v48 }
 0x583   : > { %3968 = vmatprep.subr.bf16.mxu0 %v3967_v5 }
 0x586   : > { %3970 = vmatpush3.bf16.msra.mxu0 %v3967_v5 }
 0x587   : > { %3973 = vmatprep.subr.msk.bf16.mxu0 %vm3972_vm0, %v3971_v36 }
 0x58a   : > { %3976 = vmatpush3.bf16.msk.msra.mxu0 %vm3972_vm0, %v3971_v36 }
 0x64c   : > { %v3316_v49 = vpop.f32.mrb[0].mxu1 }
 0x64d   : > { %v3341_v6 = vadd.f32 %v3334_v41, %v3316_v49  ;;  %v3318_v26 = vpop.f32.mrb[1].mxu1 }
 0x64e   : > { %v3342_v31 = vadd.f32 %v3334_v41, %v3318_v26  ;;  %v3320_v47 = vpop.f32.mrb[2].mxu1 }
 0x64f   : > { %v5717_v14 = vmax.f32 %v3341_v6, 0.0  ;;  %v3343_v38 = vadd.f32 %v3339_v63, %v3320_v47  ;;  %v3322_v19 = vpop.f32.mrb[3].mxu1 }
 0x650   : > { %v3346_v9 = vmax.f32 %v3342_v31, 0.0  ;;  %v3344_v52 = vadd.f32 %v3339_v63, %v3322_v19 }
 0x651   : > { %3351 = vrot.lane.b32.xlu1 %v5717_v14, %s4179_s20  ;;  %v3347_v25 = vmax.f32 %v3343_v38, 0.0 }
 0x652   : > { %3361 = vrot.lane.b32.xlu0 %v3346_v9, %s4179_s20  ;;  %v3348_v37 = vmax.f32 %v3344_v52, 0.0 }
 0x655   : > { %3353 = vrot.lane.b32.xlu1 %v3347_v25, %s4179_s20 }
 0x656   : > { %3363 = vrot.lane.b32.xlu0 %v3348_v37, %s4179_s20 }
 0x6c3   : > { %v3352_v42 = vpop.permute.xlu1 %3351 }
 0x6c4   : > { %v3362_v30 = vpop.permute.xlu0 %3361  ;;  %v3357_v24 = vmax.f32 %v5717_v14, %v3352_v42 }
 0x6c5   : > { %v3365_v16 = vsel %vm436_vm5, %v3352_v42, %v3362_v30  ;;  %v3372_v23 = vmax.f32 %v3346_v9, %v3362_v30 }
 0x6c6   : > { %v3371_v15 = vmax.f32 %v5717_v14, %v3365_v16 }
 0x6c7   : > { %v3354_v20 = vpop.permute.xlu1 %3353  ;;  %3381 = vrot.lane.b32.xlu0 %v3372_v23, %s4190_s18 }
 0x6c8   : > { %3379 = vrot.lane.b32.xlu1 %v3371_v15, %s4190_s18  ;;  %v3364_v55 = vpop.permute.xlu0 %3363  ;;  %v3358_v8 = vmax.f32 %v3347_v25, %v3354_v20 }
 0x6c9   : > { %v3366_v59 = vsel %vm436_vm5, %v3354_v20, %v3364_v55  ;;  %v3374_v39 = vmax.f32 %v3348_v37, %v3364_v55  ;;  %vm3496_vm5 = vcmask 203776  }
 0x6ca   : > { %v3373_v43 = vmax.f32 %v3347_v25, %v3366_v59 }
 0x6cb   : > { %3385 = vrot.lane.b32.xlu0 %v3374_v39, %s4190_s18 }
 0x6cc   : > { %3383 = vrot.lane.b32.xlu1 %v3373_v43, %s4190_s18  ;;  %s302_s18 = scalar_lea.vmem %s5779_s8, %s3701_s24 }
 0x739   : > { %v3382_v35 = vpop.permute.xlu0 %3381 }
 0x73a   : > { %v3380_v60 = vpop.permute.xlu1 %3379 }
 0x73b   : > { %v3388_v0 = vsel %vm1941_vm3, %v3380_v60, %v3382_v35 }
 0x73c   : > { %v3392_v61 = vmax.f32 %v3357_v24, %v3388_v0 }
 0x73d   : > { %v3386_v7 = vpop.permute.xlu0 %3385 }
 0x73e   : > { %v3384_v54 = vpop.permute.xlu1 %3383  ;;  %3752 = vmatprep.mubr.msk.f32.mxu0 %vm3410_vm13, %v3392_v61 }
 0x73f   : > { %v3389_v62 = vsel %vm1941_vm3, %v3384_v54, %v3386_v7 }
 0x740   : > { %v3393_v44 = vmax.f32 %v3358_v8, %v3389_v62 }
 0x742   : > { %3753 = vmatmul.mubr.msk.f32.vlgmr.msra.gmra.mrb[2].mxu0 %vm3410_vm13, %v3393_v44 }
 0x815   : > { %v3754_v22 = vpop.f32.mrb[2].mxu0 }
 0x816   : > { %3498 = vst.msk [vmem:[%s302_s18 + $0x8] sm:$0xff] %vm3496_vm5, %v3754_v22  ;;  %v3487_v45 = vpop.f32.mrb[3].mxu0 }
 0x817   : > { %3497 = vst.msk [vmem:[%s302_s18] sm:$0xff] %vm3496_vm5, %v3487_v45 }
 0x818 PF: > { %s18_s27 = sadd.s32 1, %s4171_s27  }
 0x819   : > { %p15_p4 = scmp.ge.s32.totalorder %s18_s27, 4  }
 0x81b   :  { %17 = sbr.rel (!%p15_p4) target bundleno = 1 (0x1), region = 115 }

</bundles_post_ra>
